<compile_context>
chip_gen: v7x
topology: tpu7x:2x2x1
jax: 0.10.0
libtpu: 0.0.40
codegen_flags: <defaults>
</compile_context>

<pallas_src>
import math
from functools import partial

import jax
import jax.numpy as jnp
import numpy as np
from jax.experimental import pallas as pl
from jax.experimental.pallas import tpu as pltpu


def _custom_mel8_kernel(xcol_ref, wconv_ref, bconv_ref,
                        wih_ref, whh_ref, blstm_ref,
                        wfc_ref, bfc_ref,
                        out_ref, *, batch, tsteps, hidden):
    B, T, H = batch, tsteps, hidden
    TB = T * B

    # --- Conv1d + folded BatchNorm + ReLU: one bf16 matmul over all (tap, t, b) rows.
    # Rows ordered (pool-tap p, pooled frame t, batch b); contraction padded 120 -> 128.
    y = jnp.dot(xcol_ref[...].astype(jnp.bfloat16), wconv_ref[...],
                preferred_element_type=jnp.float32) + bconv_ref[...]
    y = jnp.maximum(y, 0.0)                                         # (3*T*B, 128)

    # --- MaxPool1d(3, 3): single max over three sublane-aligned (T*B, H) slabs.
    # Dropout(0.05) between pool and LSTM is identity in eval mode.
    seq = jnp.maximum(jnp.maximum(y[0:TB], y[TB:2 * TB]), y[2 * TB:3 * TB])  # (T*B, H)

    # --- 3-layer LSTM, layer-major: per layer one batched input projection over ALL
    # timesteps (bias folded in), then a short recurrence with only h @ W_hh inside.
    def lstm_layer(seq_in, layer):
        xproj = (jnp.dot(seq_in.astype(jnp.bfloat16), wih_ref[layer],
                         preferred_element_type=jnp.float32)
                 + blstm_ref[layer])                                 # (T*B, 4H), f32
        w_hh = whh_ref[layer]                                        # (H, 4H) bf16, one load
        h = jnp.zeros((B, H), jnp.float32)
        c = jnp.zeros((B, H), jnp.float32)
        outs = []
        for t in range(T):
            g = xproj[t * B:(t + 1) * B] + jnp.dot(
                h.astype(jnp.bfloat16), w_hh, preferred_element_type=jnp.float32)
            i = jax.nn.sigmoid(g[:, 0 * H:1 * H])
            f = jax.nn.sigmoid(g[:, 1 * H:2 * H])
            gg = jnp.tanh(g[:, 2 * H:3 * H])
            o = jax.nn.sigmoid(g[:, 3 * H:4 * H])
            c = f * c + i * gg
            h = o * jnp.tanh(c)
            outs.append(h)
        return outs, h

    outs0, _ = lstm_layer(seq, 0)
    outs1, _ = lstm_layer(jnp.concatenate(outs0, axis=0), 1)
    _, h_last = lstm_layer(jnp.concatenate(outs1, axis=0), 2)

    # --- FullyConnected(128 -> 1) + Sigmoid on the last timestep (VPU reduce, no
    # 1-lane matmul). Written lane-dense; wrapper slices column 0.
    logit = jnp.sum(h_last * wfc_ref[...], axis=-1, keepdims=True) + bfc_ref[...]  # (B, 1)
    out_ref[...] = jnp.broadcast_to(jax.nn.sigmoid(logit), (B, H))


def custom_mel8_forward(params, x):
    """Eval-mode CustomMel8 forward. x: (B, 40, W) -> (B, 1)."""
    B, C, W = x.shape
    H = 128
    T = W // 3                       # MaxPool1d(kernel=3, stride=3), floor like PyTorch
    assert T >= 1

    # --- fold BatchNorm1d (eval mode, running stats) into the conv weight/bias ---
    s = params["bn_g"] / jnp.sqrt(params["bn_v"] + 1e-5)                     # (128,)
    w_fold = params["conv_w"] * s[:, None, None]                             # (O, C, K)
    b_fold = s * params["conv_b"] + params["bn_b"] - s * params["bn_m"]      # (128,)

    Kc = 3 * C                                                               # 120
    Kp = ((Kc + 127) // 128) * 128                                           # 128
    # conv-as-matmul weight: rows ordered (tap k, channel ci), cols = out channel
    w_conv = jnp.transpose(w_fold, (2, 1, 0)).reshape(Kc, H)                 # (120, 128)
    w_conv = jnp.pad(w_conv, ((0, Kp - Kc), (0, 0))).astype(jnp.bfloat16)    # (128, 128)
    b_conv = b_fold[None, :]                                                 # (1, 128)

    # --- im2col in the wrapper, rows ordered (pool-tap p, pooled frame t, batch b):
    # conv output frame = 3*t + p, so MaxPool is a max over 3 contiguous slabs.
    xT = jnp.transpose(x, (2, 0, 1))                                         # (W, B, C)
    xp = jnp.pad(xT, ((1, 1), (0, 0), (0, 0)))                               # (W+2, B, C)
    x_col = jnp.concatenate([xp[0:W], xp[1:W + 1], xp[2:W + 2]], axis=-1)    # (W, B, 3C)
    x_col = x_col[:3 * T].reshape(T, 3, B, Kc).transpose(1, 0, 2, 3)         # (3, T, B, 3C)
    x_col = x_col.reshape(3 * T * B, Kc)
    x_col = jnp.pad(x_col, ((0, 0), (0, Kp - Kc)))                           # (3TB, 128)

    # --- fused LSTM gates: per layer one (H, 4H) input and one (H, 4H) hidden weight,
    # cast to bf16 (f32 accumulation inside the kernel) ---
    w_ih = jnp.stack([params[f"w_ih_{l}"].T for l in range(3)]).astype(jnp.bfloat16)  # (3,H,4H)
    w_hh = jnp.stack([params[f"w_hh_{l}"].T for l in range(3)]).astype(jnp.bfloat16)  # (3,H,4H)
    b_lstm = jnp.stack([(params[f"b_ih_{l}"] + params[f"b_hh_{l}"])[None, :]
                        for l in range(3)])                                  # (3, 1, 4H) f32

    w_fc = params["fc_w"]                                                    # (1, H)
    b_fc = params["fc_b"].reshape(1, 1)                                      # (1, 1)

    kernel = partial(_custom_mel8_kernel, batch=B, tsteps=T, hidden=H)
    vmem = pl.BlockSpec(memory_space=pltpu.MemorySpace.VMEM)
    out = pl.pallas_call(
        kernel,
        out_shape=jax.ShapeDtypeStruct((B, H), jnp.float32),
        in_specs=[vmem] * 8,
        out_specs=vmem,
    )(x_col, w_conv, b_conv, w_ih, w_hh, b_lstm, w_fc, b_fc)
    return out[:, :1]


def _reference(params, x):
    """Pure-JAX (XLA, f32) reference with identical eval-mode math, for correctness check."""
    B, C, W = x.shape
    H = 128
    xpad = jnp.pad(x, ((0, 0), (0, 0), (1, 1)))
    y = sum(jnp.einsum("bcw,oc->bow", xpad[:, :, k:k + W], params["conv_w"][:, :, k])
            for k in range(3)) + params["conv_b"][None, :, None]
    s = params["bn_g"] / jnp.sqrt(params["bn_v"] + 1e-5)
    y = s[None, :, None] * (y - params["bn_m"][None, :, None]) + params["bn_b"][None, :, None]
    y = jnp.maximum(y, 0.0)
    T = W // 3
    y = y[:, :, :T * 3].reshape(B, H, T, 3).max(axis=-1)
    seq = jnp.transpose(y, (0, 2, 1))                                        # (B, T, H)
    for l in range(3):
        wih, whh = params[f"w_ih_{l}"], params[f"w_hh_{l}"]
        b = params[f"b_ih_{l}"] + params[f"b_hh_{l}"]
        h = jnp.zeros((B, H), jnp.float32)
        c = jnp.zeros((B, H), jnp.float32)
        outs = []
        for t in range(T):
            g = seq[:, t, :] @ wih.T + h @ whh.T + b
            i, f, gg, o = jnp.split(g, 4, axis=-1)
            i = jax.nn.sigmoid(i); f = jax.nn.sigmoid(f)
            gg = jnp.tanh(gg); o = jax.nn.sigmoid(o)
            c = f * c + i * gg
            h = o * jnp.tanh(c)
            outs.append(h)
        seq = jnp.stack(outs, axis=1)
    logit = seq[:, -1, :] @ params["fc_w"].T + params["fc_b"]
    return jax.nn.sigmoid(logit)


def init_params(key):
    """Deterministic synthetic parameters in PyTorch layouts/ranges."""
    C, H = 40, 128
    ks = jax.random.split(key, 20)
    u = lambda k, shape, sc: jax.random.uniform(k, shape, jnp.float32, -sc, sc)
    conv_scale = math.sqrt(2.0 / (C * 3)) * math.sqrt(3.0)
    fc_scale = math.sqrt(2.0 / H) * math.sqrt(3.0)
    lstm_scale = 1.0 / math.sqrt(H)
    p = {
        "conv_w": u(ks[0], (H, C, 3), conv_scale),
        "conv_b": jnp.zeros((H,), jnp.float32),
        # perturbed BN stats/affine so the eval-mode folding is actually exercised
        "bn_g": 1.0 + 0.1 * jax.random.normal(ks[1], (H,), jnp.float32),
        "bn_b": 0.1 * jax.random.normal(ks[2], (H,), jnp.float32),
        "bn_m": 0.2 * jax.random.normal(ks[3], (H,), jnp.float32),
        "bn_v": 0.5 + jax.random.uniform(ks[4], (H,), jnp.float32, 0.0, 1.0),
        "fc_w": u(ks[5], (1, H), fc_scale),
        "fc_b": jnp.zeros((1,), jnp.float32),
    }
    for l in range(3):
        p[f"w_ih_{l}"] = u(ks[6 + 4 * l], (4 * H, H), lstm_scale)
        p[f"w_hh_{l}"] = u(ks[7 + 4 * l], (4 * H, H), lstm_scale)
        p[f"b_ih_{l}"] = u(ks[8 + 4 * l], (4 * H,), lstm_scale)
        p[f"b_hh_{l}"] = u(ks[9 + 4 * l], (4 * H,), lstm_scale)
    return p


if __name__ == "__main__":
    B, C, W = 2, 40, 24          # batch, mel bins (fixed by module), frames -> T = 8
    key = jax.random.PRNGKey(0)
    kp, kx = jax.random.split(key)
    params = init_params(kp)
    x = jax.random.normal(kx, (B, C, W), jnp.float32)

    out = custom_mel8_forward(params, x)
    jax.block_until_ready(out)

    ref = _reference(params, x)
    assert out.shape == (B, 1)
    # bf16 matmul weights -> looser tolerance than the pure-f32 reference.
    np.testing.assert_allclose(np.asarray(out), np.asarray(ref), rtol=2.5e-2, atol=2.5e-2)

    print("KERNEL_OK")
</pallas_src>

<mosaic_0001>
module attributes {stable_mosaic.version = 11 : i64} {
  func.func @_custom_mel8_kernel(%arg0: memref<48x128xf32, #tpu.memory_space<vmem>>, %arg1: memref<128x128xbf16, #tpu.memory_space<vmem>>, %arg2: memref<1x128xf32, #tpu.memory_space<vmem>>, %arg3: memref<3x128x512xbf16, #tpu.memory_space<vmem>>, %arg4: memref<3x128x512xbf16, #tpu.memory_space<vmem>>, %arg5: memref<3x1x512xf32, #tpu.memory_space<vmem>>, %arg6: memref<1x128xf32, #tpu.memory_space<vmem>>, %arg7: memref<1x1xf32, #tpu.memory_space<vmem>>, %arg8: memref<2x128xf32, #tpu.memory_space<vmem>>) attributes {dimension_semantics = [], scalar_prefetch = 0 : i64, scratch_operands = 0 : i64, tpu.core_type = #tpu.core_type<tc>} {
    %c0 = arith.constant 0 : index
    %c0_0 = arith.constant 0 : index
    %0 = vector.load %arg0[%c0, %c0_0] : memref<48x128xf32, #tpu.memory_space<vmem>>, vector<48x128xf32>
    %1 = arith.truncf %0 : vector<48x128xf32> to vector<48x128xbf16>
    %c0_1 = arith.constant 0 : index
    %c0_2 = arith.constant 0 : index
    %2 = vector.load %arg1[%c0_1, %c0_2] : memref<128x128xbf16, #tpu.memory_space<vmem>>, vector<128x128xbf16>
    %cst = arith.constant dense<0.000000e+00> : vector<48x128xf32>
    %3 = tpu.matmul %1, %2, %cst {dimension_numbers = #tpu.dot_dimension_numbers<[1], [0], [0], [1], [0, 0, 1, 1], [], []>} : vector<48x128xbf16>, vector<128x128xbf16>, vector<48x128xf32> -> vector<48x128xf32>
    %c0_3 = arith.constant 0 : index
    %c0_4 = arith.constant 0 : index
    %4 = vector.load %arg2[%c0_3, %c0_4] : memref<1x128xf32, #tpu.memory_space<vmem>>, vector<1x128xf32>
    %5 = vector.broadcast %4 : vector<1x128xf32> to vector<48x128xf32>
    %6 = arith.addf %3, %5 : vector<48x128xf32>
    %cst_5 = arith.constant 0.000000e+00 : f32
    %7 = vector.broadcast %cst_5 : f32 to vector<48x128xf32>
    %8 = arith.maximumf %6, %7 : vector<48x128xf32>
    %9 = vector.extract_strided_slice %8 {offsets = [0, 0], sizes = [16, 128], strides = [1, 1]} : vector<48x128xf32> to vector<16x128xf32>
    %10 = vector.extract_strided_slice %8 {offsets = [16, 0], sizes = [16, 128], strides = [1, 1]} : vector<48x128xf32> to vector<16x128xf32>
    %11 = arith.maximumf %9, %10 : vector<16x128xf32>
    %12 = vector.extract_strided_slice %8 {offsets = [32, 0], sizes = [16, 128], strides = [1, 1]} : vector<48x128xf32> to vector<16x128xf32>
    %13 = arith.maximumf %11, %12 : vector<16x128xf32>
    %14 = arith.truncf %13 : vector<16x128xf32> to vector<16x128xbf16>
    %c0_6 = arith.constant 0 : index
    %c0_7 = arith.constant 0 : index
    %c0_8 = arith.constant 0 : index
    %15 = vector.load %arg3[%c0_6, %c0_7, %c0_8] : memref<3x128x512xbf16, #tpu.memory_space<vmem>>, vector<1x128x512xbf16>
    %16 = vector.shape_cast %15 : vector<1x128x512xbf16> to vector<128x512xbf16>
    %cst_9 = arith.constant dense<0.000000e+00> : vector<16x512xf32>
    %17 = tpu.matmul %14, %16, %cst_9 {dimension_numbers = #tpu.dot_dimension_numbers<[1], [0], [0], [1], [0, 0, 1, 1], [], []>} : vector<16x128xbf16>, vector<128x512xbf16>, vector<16x512xf32> -> vector<16x512xf32>
    %c0_10 = arith.constant 0 : index
    %c0_11 = arith.constant 0 : index
    %c0_12 = arith.constant 0 : index
    %18 = vector.load %arg5[%c0_10, %c0_11, %c0_12] : memref<3x1x512xf32, #tpu.memory_space<vmem>>, vector<1x1x512xf32>
    %19 = vector.shape_cast %18 : vector<1x1x512xf32> to vector<1x512xf32>
    %20 = vector.broadcast %19 : vector<1x512xf32> to vector<16x512xf32>
    %21 = arith.addf %17, %20 : vector<16x512xf32>
    %c0_13 = arith.constant 0 : index
    %c0_14 = arith.constant 0 : index
    %c0_15 = arith.constant 0 : index
    %22 = vector.load %arg4[%c0_13, %c0_14, %c0_15] : memref<3x128x512xbf16, #tpu.memory_space<vmem>>, vector<1x128x512xbf16>
    %23 = vector.shape_cast %22 : vector<1x128x512xbf16> to vector<128x512xbf16>
    %cst_16 = arith.constant 0.000000e+00 : f32
    %24 = vector.broadcast %cst_16 : f32 to vector<2x128xf32>
    %cst_17 = arith.constant 0.000000e+00 : f32
    %25 = vector.broadcast %cst_17 : f32 to vector<2x128xf32>
    %26 = vector.extract_strided_slice %21 {offsets = [0, 0], sizes = [2, 512], strides = [1, 1]} : vector<16x512xf32> to vector<2x512xf32>
    %27 = arith.truncf %24 : vector<2x128xf32> to vector<2x128xbf16>
    %cst_18 = arith.constant dense<0.000000e+00> : vector<2x512xf32>
    %28 = tpu.matmul %27, %23, %cst_18 {dimension_numbers = #tpu.dot_dimension_numbers<[1], [0], [0], [1], [0, 0, 1, 1], [], []>} : vector<2x128xbf16>, vector<128x512xbf16>, vector<2x512xf32> -> vector<2x512xf32>
    %29 = arith.addf %26, %28 : vector<2x512xf32>
    %30 = vector.extract_strided_slice %29 {offsets = [0, 0], sizes = [2, 128], strides = [1, 1]} : vector<2x512xf32> to vector<2x128xf32>
    %31 = arith.negf %30 : vector<2x128xf32>
    %32 = math.exp %31 : vector<2x128xf32>
    %cst_19 = arith.constant 1.000000e+00 : f32
    %33 = vector.broadcast %cst_19 : f32 to vector<2x128xf32>
    %34 = arith.addf %33, %32 : vector<2x128xf32>
    %35 = arith.divf %33, %34 : vector<2x128xf32>
    %36 = vector.extract_strided_slice %29 {offsets = [0, 128], sizes = [2, 128], strides = [1, 1]} : vector<2x512xf32> to vector<2x128xf32>
    %37 = arith.negf %36 : vector<2x128xf32>
    %38 = math.exp %37 : vector<2x128xf32>
    %cst_20 = arith.constant 1.000000e+00 : f32
    %39 = vector.broadcast %cst_20 : f32 to vector<2x128xf32>
    %40 = arith.addf %39, %38 : vector<2x128xf32>
    %41 = arith.divf %39, %40 : vector<2x128xf32>
    %42 = vector.extract_strided_slice %29 {offsets = [0, 256], sizes = [2, 128], strides = [1, 1]} : vector<2x512xf32> to vector<2x128xf32>
    %43 = math.tanh %42 : vector<2x128xf32>
    %44 = vector.extract_strided_slice %29 {offsets = [0, 384], sizes = [2, 128], strides = [1, 1]} : vector<2x512xf32> to vector<2x128xf32>
    %45 = arith.negf %44 : vector<2x128xf32>
    %46 = math.exp %45 : vector<2x128xf32>
    %cst_21 = arith.constant 1.000000e+00 : f32
    %47 = vector.broadcast %cst_21 : f32 to vector<2x128xf32>
    %48 = arith.addf %47, %46 : vector<2x128xf32>
    %49 = arith.divf %47, %48 : vector<2x128xf32>
    %50 = arith.mulf %41, %25 : vector<2x128xf32>
    %51 = arith.mulf %35, %43 : vector<2x128xf32>
    %52 = arith.addf %50, %51 : vector<2x128xf32>
    %53 = math.tanh %52 : vector<2x128xf32>
    %54 = arith.mulf %49, %53 : vector<2x128xf32>
    %55 = vector.extract_strided_slice %21 {offsets = [2, 0], sizes = [2, 512], strides = [1, 1]} : vector<16x512xf32> to vector<2x512xf32>
    %56 = arith.truncf %54 : vector<2x128xf32> to vector<2x128xbf16>
    %cst_22 = arith.constant dense<0.000000e+00> : vector<2x512xf32>
    %57 = tpu.matmul %56, %23, %cst_22 {dimension_numbers = #tpu.dot_dimension_numbers<[1], [0], [0], [1], [0, 0, 1, 1], [], []>} : vector<2x128xbf16>, vector<128x512xbf16>, vector<2x512xf32> -> vector<2x512xf32>
    %58 = arith.addf %55, %57 : vector<2x512xf32>
    %59 = vector.extract_strided_slice %58 {offsets = [0, 0], sizes = [2, 128], strides = [1, 1]} : vector<2x512xf32> to vector<2x128xf32>
    %60 = arith.negf %59 : vector<2x128xf32>
    %61 = math.exp %60 : vector<2x128xf32>
    %cst_23 = arith.constant 1.000000e+00 : f32
    %62 = vector.broadcast %cst_23 : f32 to vector<2x128xf32>
    %63 = arith.addf %62, %61 : vector<2x128xf32>
    %64 = arith.divf %62, %63 : vector<2x128xf32>
    %65 = vector.extract_strided_slice %58 {offsets = [0, 128], sizes = [2, 128], strides = [1, 1]} : vector<2x512xf32> to vector<2x128xf32>
    %66 = arith.negf %65 : vector<2x128xf32>
    %67 = math.exp %66 : vector<2x128xf32>
    %cst_24 = arith.constant 1.000000e+00 : f32
    %68 = vector.broadcast %cst_24 : f32 to vector<2x128xf32>
    %69 = arith.addf %68, %67 : vector<2x128xf32>
    %70 = arith.divf %68, %69 : vector<2x128xf32>
    %71 = vector.extract_strided_slice %58 {offsets = [0, 256], sizes = [2, 128], strides = [1, 1]} : vector<2x512xf32> to vector<2x128xf32>
    %72 = math.tanh %71 : vector<2x128xf32>
    %73 = vector.extract_strided_slice %58 {offsets = [0, 384], sizes = [2, 128], strides = [1, 1]} : vector<2x512xf32> to vector<2x128xf32>
    %74 = arith.negf %73 : vector<2x128xf32>
    %75 = math.exp %74 : vector<2x128xf32>
    %cst_25 = arith.constant 1.000000e+00 : f32
    %76 = vector.broadcast %cst_25 : f32 to vector<2x128xf32>
    %77 = arith.addf %76, %75 : vector<2x128xf32>
    %78 = arith.divf %76, %77 : vector<2x128xf32>
    %79 = arith.mulf %70, %52 : vector<2x128xf32>
    %80 = arith.mulf %64, %72 : vector<2x128xf32>
    %81 = arith.addf %79, %80 : vector<2x128xf32>
    %82 = math.tanh %81 : vector<2x128xf32>
    %83 = arith.mulf %78, %82 : vector<2x128xf32>
    %84 = vector.extract_strided_slice %21 {offsets = [4, 0], sizes = [2, 512], strides = [1, 1]} : vector<16x512xf32> to vector<2x512xf32>
    %85 = arith.truncf %83 : vector<2x128xf32> to vector<2x128xbf16>
    %cst_26 = arith.constant dense<0.000000e+00> : vector<2x512xf32>
    %86 = tpu.matmul %85, %23, %cst_26 {dimension_numbers = #tpu.dot_dimension_numbers<[1], [0], [0], [1], [0, 0, 1, 1], [], []>} : vector<2x128xbf16>, vector<128x512xbf16>, vector<2x512xf32> -> vector<2x512xf32>
    %87 = arith.addf %84, %86 : vector<2x512xf32>
    %88 = vector.extract_strided_slice %87 {offsets = [0, 0], sizes = [2, 128], strides = [1, 1]} : vector<2x512xf32> to vector<2x128xf32>
    %89 = arith.negf %88 : vector<2x128xf32>
    %90 = math.exp %89 : vector<2x128xf32>
    %cst_27 = arith.constant 1.000000e+00 : f32
    %91 = vector.broadcast %cst_27 : f32 to vector<2x128xf32>
    %92 = arith.addf %91, %90 : vector<2x128xf32>
    %93 = arith.divf %91, %92 : vector<2x128xf32>
    %94 = vector.extract_strided_slice %87 {offsets = [0, 128], sizes = [2, 128], strides = [1, 1]} : vector<2x512xf32> to vector<2x128xf32>
    %95 = arith.negf %94 : vector<2x128xf32>
    %96 = math.exp %95 : vector<2x128xf32>
    %cst_28 = arith.constant 1.000000e+00 : f32
    %97 = vector.broadcast %cst_28 : f32 to vector<2x128xf32>
    %98 = arith.addf %97, %96 : vector<2x128xf32>
    %99 = arith.divf %97, %98 : vector<2x128xf32>
    %100 = vector.extract_strided_slice %87 {offsets = [0, 256], sizes = [2, 128], strides = [1, 1]} : vector<2x512xf32> to vector<2x128xf32>
    %101 = math.tanh %100 : vector<2x128xf32>
    %102 = vector.extract_strided_slice %87 {offsets = [0, 384], sizes = [2, 128], strides = [1, 1]} : vector<2x512xf32> to vector<2x128xf32>
    %103 = arith.negf %102 : vector<2x128xf32>
    %104 = math.exp %103 : vector<2x128xf32>
    %cst_29 = arith.constant 1.000000e+00 : f32
    %105 = vector.broadcast %cst_29 : f32 to vector<2x128xf32>
    %106 = arith.addf %105, %104 : vector<2x128xf32>
    %107 = arith.divf %105, %106 : vector<2x128xf32>
    %108 = arith.mulf %99, %81 : vector<2x128xf32>
    %109 = arith.mulf %93, %101 : vector<2x128xf32>
    %110 = arith.addf %108, %109 : vector<2x128xf32>
    %111 = math.tanh %110 : vector<2x128xf32>
    %112 = arith.mulf %107, %111 : vector<2x128xf32>
    %113 = vector.extract_strided_slice %21 {offsets = [6, 0], sizes = [2, 512], strides = [1, 1]} : vector<16x512xf32> to vector<2x512xf32>
    %114 = arith.truncf %112 : vector<2x128xf32> to vector<2x128xbf16>
    %cst_30 = arith.constant dense<0.000000e+00> : vector<2x512xf32>
    %115 = tpu.matmul %114, %23, %cst_30 {dimension_numbers = #tpu.dot_dimension_numbers<[1], [0], [0], [1], [0, 0, 1, 1], [], []>} : vector<2x128xbf16>, vector<128x512xbf16>, vector<2x512xf32> -> vector<2x512xf32>
    %116 = arith.addf %113, %115 : vector<2x512xf32>
    %117 = vector.extract_strided_slice %116 {offsets = [0, 0], sizes = [2, 128], strides = [1, 1]} : vector<2x512xf32> to vector<2x128xf32>
    %118 = arith.negf %117 : vector<2x128xf32>
    %119 = math.exp %118 : vector<2x128xf32>
    %cst_31 = arith.constant 1.000000e+00 : f32
    %120 = vector.broadcast %cst_31 : f32 to vector<2x128xf32>
    %121 = arith.addf %120, %119 : vector<2x128xf32>
    %122 = arith.divf %120, %121 : vector<2x128xf32>
    %123 = vector.extract_strided_slice %116 {offsets = [0, 128], sizes = [2, 128], strides = [1, 1]} : vector<2x512xf32> to vector<2x128xf32>
    %124 = arith.negf %123 : vector<2x128xf32>
    %125 = math.exp %124 : vector<2x128xf32>
    %cst_32 = arith.constant 1.000000e+00 : f32
    %126 = vector.broadcast %cst_32 : f32 to vector<2x128xf32>
    %127 = arith.addf %126, %125 : vector<2x128xf32>
    %128 = arith.divf %126, %127 : vector<2x128xf32>
    %129 = vector.extract_strided_slice %116 {offsets = [0, 256], sizes = [2, 128], strides = [1, 1]} : vector<2x512xf32> to vector<2x128xf32>
    %130 = math.tanh %129 : vector<2x128xf32>
    %131 = vector.extract_strided_slice %116 {offsets = [0, 384], sizes = [2, 128], strides = [1, 1]} : vector<2x512xf32> to vector<2x128xf32>
    %132 = arith.negf %131 : vector<2x128xf32>
    %133 = math.exp %132 : vector<2x128xf32>
    %cst_33 = arith.constant 1.000000e+00 : f32
    %134 = vector.broadcast %cst_33 : f32 to vector<2x128xf32>
    %135 = arith.addf %134, %133 : vector<2x128xf32>
    %136 = arith.divf %134, %135 : vector<2x128xf32>
    %137 = arith.mulf %128, %110 : vector<2x128xf32>
    %138 = arith.mulf %122, %130 : vector<2x128xf32>
    %139 = arith.addf %137, %138 : vector<2x128xf32>
    %140 = math.tanh %139 : vector<2x128xf32>
    %141 = arith.mulf %136, %140 : vector<2x128xf32>
    %142 = vector.extract_strided_slice %21 {offsets = [8, 0], sizes = [2, 512], strides = [1, 1]} : vector<16x512xf32> to vector<2x512xf32>
    %143 = arith.truncf %141 : vector<2x128xf32> to vector<2x128xbf16>
    %cst_34 = arith.constant dense<0.000000e+00> : vector<2x512xf32>
    %144 = tpu.matmul %143, %23, %cst_34 {dimension_numbers = #tpu.dot_dimension_numbers<[1], [0], [0], [1], [0, 0, 1, 1], [], []>} : vector<2x128xbf16>, vector<128x512xbf16>, vector<2x512xf32> -> vector<2x512xf32>
    %145 = arith.addf %142, %144 : vector<2x512xf32>
    %146 = vector.extract_strided_slice %145 {offsets = [0, 0], sizes = [2, 128], strides = [1, 1]} : vector<2x512xf32> to vector<2x128xf32>
    %147 = arith.negf %146 : vector<2x128xf32>
    %148 = math.exp %147 : vector<2x128xf32>
    %cst_35 = arith.constant 1.000000e+00 : f32
    %149 = vector.broadcast %cst_35 : f32 to vector<2x128xf32>
    %150 = arith.addf %149, %148 : vector<2x128xf32>
    %151 = arith.divf %149, %150 : vector<2x128xf32>
    %152 = vector.extract_strided_slice %145 {offsets = [0, 128], sizes = [2, 128], strides = [1, 1]} : vector<2x512xf32> to vector<2x128xf32>
    %153 = arith.negf %152 : vector<2x128xf32>
    %154 = math.exp %153 : vector<2x128xf32>
    %cst_36 = arith.constant 1.000000e+00 : f32
    %155 = vector.broadcast %cst_36 : f32 to vector<2x128xf32>
    %156 = arith.addf %155, %154 : vector<2x128xf32>
    %157 = arith.divf %155, %156 : vector<2x128xf32>
    %158 = vector.extract_strided_slice %145 {offsets = [0, 256], sizes = [2, 128], strides = [1, 1]} : vector<2x512xf32> to vector<2x128xf32>
    %159 = math.tanh %158 : vector<2x128xf32>
    %160 = vector.extract_strided_slice %145 {offsets = [0, 384], sizes = [2, 128], strides = [1, 1]} : vector<2x512xf32> to vector<2x128xf32>
    %161 = arith.negf %160 : vector<2x128xf32>
    %162 = math.exp %161 : vector<2x128xf32>
    %cst_37 = arith.constant 1.000000e+00 : f32
    %163 = vector.broadcast %cst_37 : f32 to vector<2x128xf32>
    %164 = arith.addf %163, %162 : vector<2x128xf32>
    %165 = arith.divf %163, %164 : vector<2x128xf32>
    %166 = arith.mulf %157, %139 : vector<2x128xf32>
    %167 = arith.mulf %151, %159 : vector<2x128xf32>
    %168 = arith.addf %166, %167 : vector<2x128xf32>
    %169 = math.tanh %168 : vector<2x128xf32>
    %170 = arith.mulf %165, %169 : vector<2x128xf32>
    %171 = vector.extract_strided_slice %21 {offsets = [10, 0], sizes = [2, 512], strides = [1, 1]} : vector<16x512xf32> to vector<2x512xf32>
    %172 = arith.truncf %170 : vector<2x128xf32> to vector<2x128xbf16>
    %cst_38 = arith.constant dense<0.000000e+00> : vector<2x512xf32>
    %173 = tpu.matmul %172, %23, %cst_38 {dimension_numbers = #tpu.dot_dimension_numbers<[1], [0], [0], [1], [0, 0, 1, 1], [], []>} : vector<2x128xbf16>, vector<128x512xbf16>, vector<2x512xf32> -> vector<2x512xf32>
    %174 = arith.addf %171, %173 : vector<2x512xf32>
    %175 = vector.extract_strided_slice %174 {offsets = [0, 0], sizes = [2, 128], strides = [1, 1]} : vector<2x512xf32> to vector<2x128xf32>
    %176 = arith.negf %175 : vector<2x128xf32>
    %177 = math.exp %176 : vector<2x128xf32>
    %cst_39 = arith.constant 1.000000e+00 : f32
    %178 = vector.broadcast %cst_39 : f32 to vector<2x128xf32>
    %179 = arith.addf %178, %177 : vector<2x128xf32>
    %180 = arith.divf %178, %179 : vector<2x128xf32>
    %181 = vector.extract_strided_slice %174 {offsets = [0, 128], sizes = [2, 128], strides = [1, 1]} : vector<2x512xf32> to vector<2x128xf32>
    %182 = arith.negf %181 : vector<2x128xf32>
    %183 = math.exp %182 : vector<2x128xf32>
    %cst_40 = arith.constant 1.000000e+00 : f32
    %184 = vector.broadcast %cst_40 : f32 to vector<2x128xf32>
    %185 = arith.addf %184, %183 : vector<2x128xf32>
    %186 = arith.divf %184, %185 : vector<2x128xf32>
    %187 = vector.extract_strided_slice %174 {offsets = [0, 256], sizes = [2, 128], strides = [1, 1]} : vector<2x512xf32> to vector<2x128xf32>
    %188 = math.tanh %187 : vector<2x128xf32>
    %189 = vector.extract_strided_slice %174 {offsets = [0, 384], sizes = [2, 128], strides = [1, 1]} : vector<2x512xf32> to vector<2x128xf32>
    %190 = arith.negf %189 : vector<2x128xf32>
    %191 = math.exp %190 : vector<2x128xf32>
    %cst_41 = arith.constant 1.000000e+00 : f32
    %192 = vector.broadcast %cst_41 : f32 to vector<2x128xf32>
    %193 = arith.addf %192, %191 : vector<2x128xf32>
    %194 = arith.divf %192, %193 : vector<2x128xf32>
    %195 = arith.mulf %186, %168 : vector<2x128xf32>
    %196 = arith.mulf %180, %188 : vector<2x128xf32>
    %197 = arith.addf %195, %196 : vector<2x128xf32>
    %198 = math.tanh %197 : vector<2x128xf32>
    %199 = arith.mulf %194, %198 : vector<2x128xf32>
    %200 = vector.extract_strided_slice %21 {offsets = [12, 0], sizes = [2, 512], strides = [1, 1]} : vector<16x512xf32> to vector<2x512xf32>
    %201 = arith.truncf %199 : vector<2x128xf32> to vector<2x128xbf16>
    %cst_42 = arith.constant dense<0.000000e+00> : vector<2x512xf32>
    %202 = tpu.matmul %201, %23, %cst_42 {dimension_numbers = #tpu.dot_dimension_numbers<[1], [0], [0], [1], [0, 0, 1, 1], [], []>} : vector<2x128xbf16>, vector<128x512xbf16>, vector<2x512xf32> -> vector<2x512xf32>
    %203 = arith.addf %200, %202 : vector<2x512xf32>
    %204 = vector.extract_strided_slice %203 {offsets = [0, 0], sizes = [2, 128], strides = [1, 1]} : vector<2x512xf32> to vector<2x128xf32>
    %205 = arith.negf %204 : vector<2x128xf32>
    %206 = math.exp %205 : vector<2x128xf32>
    %cst_43 = arith.constant 1.000000e+00 : f32
    %207 = vector.broadcast %cst_43 : f32 to vector<2x128xf32>
    %208 = arith.addf %207, %206 : vector<2x128xf32>
    %209 = arith.divf %207, %208 : vector<2x128xf32>
    %210 = vector.extract_strided_slice %203 {offsets = [0, 128], sizes = [2, 128], strides = [1, 1]} : vector<2x512xf32> to vector<2x128xf32>
    %211 = arith.negf %210 : vector<2x128xf32>
    %212 = math.exp %211 : vector<2x128xf32>
    %cst_44 = arith.constant 1.000000e+00 : f32
    %213 = vector.broadcast %cst_44 : f32 to vector<2x128xf32>
    %214 = arith.addf %213, %212 : vector<2x128xf32>
    %215 = arith.divf %213, %214 : vector<2x128xf32>
    %216 = vector.extract_strided_slice %203 {offsets = [0, 256], sizes = [2, 128], strides = [1, 1]} : vector<2x512xf32> to vector<2x128xf32>
    %217 = math.tanh %216 : vector<2x128xf32>
    %218 = vector.extract_strided_slice %203 {offsets = [0, 384], sizes = [2, 128], strides = [1, 1]} : vector<2x512xf32> to vector<2x128xf32>
    %219 = arith.negf %218 : vector<2x128xf32>
    %220 = math.exp %219 : vector<2x128xf32>
    %cst_45 = arith.constant 1.000000e+00 : f32
    %221 = vector.broadcast %cst_45 : f32 to vector<2x128xf32>
    %222 = arith.addf %221, %220 : vector<2x128xf32>
    %223 = arith.divf %221, %222 : vector<2x128xf32>
    %224 = arith.mulf %215, %197 : vector<2x128xf32>
    %225 = arith.mulf %209, %217 : vector<2x128xf32>
    %226 = arith.addf %224, %225 : vector<2x128xf32>
    %227 = math.tanh %226 : vector<2x128xf32>
    %228 = arith.mulf %223, %227 : vector<2x128xf32>
    %229 = vector.extract_strided_slice %21 {offsets = [14, 0], sizes = [2, 512], strides = [1, 1]} : vector<16x512xf32> to vector<2x512xf32>
    %230 = arith.truncf %228 : vector<2x128xf32> to vector<2x128xbf16>
    %cst_46 = arith.constant dense<0.000000e+00> : vector<2x512xf32>
    %231 = tpu.matmul %230, %23, %cst_46 {dimension_numbers = #tpu.dot_dimension_numbers<[1], [0], [0], [1], [0, 0, 1, 1], [], []>} : vector<2x128xbf16>, vector<128x512xbf16>, vector<2x512xf32> -> vector<2x512xf32>
    %232 = arith.addf %229, %231 : vector<2x512xf32>
    %233 = vector.extract_strided_slice %232 {offsets = [0, 0], sizes = [2, 128], strides = [1, 1]} : vector<2x512xf32> to vector<2x128xf32>
    %234 = arith.negf %233 : vector<2x128xf32>
    %235 = math.exp %234 : vector<2x128xf32>
    %cst_47 = arith.constant 1.000000e+00 : f32
    %236 = vector.broadcast %cst_47 : f32 to vector<2x128xf32>
    %237 = arith.addf %236, %235 : vector<2x128xf32>
    %238 = arith.divf %236, %237 : vector<2x128xf32>
    %239 = vector.extract_strided_slice %232 {offsets = [0, 128], sizes = [2, 128], strides = [1, 1]} : vector<2x512xf32> to vector<2x128xf32>
    %240 = arith.negf %239 : vector<2x128xf32>
    %241 = math.exp %240 : vector<2x128xf32>
    %cst_48 = arith.constant 1.000000e+00 : f32
    %242 = vector.broadcast %cst_48 : f32 to vector<2x128xf32>
    %243 = arith.addf %242, %241 : vector<2x128xf32>
    %244 = arith.divf %242, %243 : vector<2x128xf32>
    %245 = vector.extract_strided_slice %232 {offsets = [0, 256], sizes = [2, 128], strides = [1, 1]} : vector<2x512xf32> to vector<2x128xf32>
    %246 = math.tanh %245 : vector<2x128xf32>
    %247 = vector.extract_strided_slice %232 {offsets = [0, 384], sizes = [2, 128], strides = [1, 1]} : vector<2x512xf32> to vector<2x128xf32>
    %248 = arith.negf %247 : vector<2x128xf32>
    %249 = math.exp %248 : vector<2x128xf32>
    %cst_49 = arith.constant 1.000000e+00 : f32
    %250 = vector.broadcast %cst_49 : f32 to vector<2x128xf32>
    %251 = arith.addf %250, %249 : vector<2x128xf32>
    %252 = arith.divf %250, %251 : vector<2x128xf32>
    %253 = arith.mulf %244, %226 : vector<2x128xf32>
    %254 = arith.mulf %238, %246 : vector<2x128xf32>
    %255 = arith.addf %253, %254 : vector<2x128xf32>
    %256 = math.tanh %255 : vector<2x128xf32>
    %257 = arith.mulf %252, %256 : vector<2x128xf32>
    %258 = tpu.concatenate %54, %83, %112, %141, %170, %199, %228, %257 in 0 : vector<2x128xf32>, vector<2x128xf32>, vector<2x128xf32>, vector<2x128xf32>, vector<2x128xf32>, vector<2x128xf32>, vector<2x128xf32>, vector<2x128xf32> -> vector<16x128xf32>
    %259 = arith.truncf %258 : vector<16x128xf32> to vector<16x128xbf16>
    %c1 = arith.constant 1 : index
    %c0_50 = arith.constant 0 : index
    %c0_51 = arith.constant 0 : index
    %260 = vector.load %arg3[%c1, %c0_50, %c0_51] : memref<3x128x512xbf16, #tpu.memory_space<vmem>>, vector<1x128x512xbf16>
    %261 = vector.shape_cast %260 : vector<1x128x512xbf16> to vector<128x512xbf16>
    %cst_52 = arith.constant dense<0.000000e+00> : vector<16x512xf32>
    %262 = tpu.matmul %259, %261, %cst_52 {dimension_numbers = #tpu.dot_dimension_numbers<[1], [0], [0], [1], [0, 0, 1, 1], [], []>} : vector<16x128xbf16>, vector<128x512xbf16>, vector<16x512xf32> -> vector<16x512xf32>
    %c1_53 = arith.constant 1 : index
    %c0_54 = arith.constant 0 : index
    %c0_55 = arith.constant 0 : index
    %263 = vector.load %arg5[%c1_53, %c0_54, %c0_55] : memref<3x1x512xf32, #tpu.memory_space<vmem>>, vector<1x1x512xf32>
    %264 = vector.shape_cast %263 : vector<1x1x512xf32> to vector<1x512xf32>
    %265 = vector.broadcast %264 : vector<1x512xf32> to vector<16x512xf32>
    %266 = arith.addf %262, %265 : vector<16x512xf32>
    %c1_56 = arith.constant 1 : index
    %c0_57 = arith.constant 0 : index
    %c0_58 = arith.constant 0 : index
    %267 = vector.load %arg4[%c1_56, %c0_57, %c0_58] : memref<3x128x512xbf16, #tpu.memory_space<vmem>>, vector<1x128x512xbf16>
    %268 = vector.shape_cast %267 : vector<1x128x512xbf16> to vector<128x512xbf16>
    %cst_59 = arith.constant 0.000000e+00 : f32
    %269 = vector.broadcast %cst_59 : f32 to vector<2x128xf32>
    %cst_60 = arith.constant 0.000000e+00 : f32
    %270 = vector.broadcast %cst_60 : f32 to vector<2x128xf32>
    %271 = vector.extract_strided_slice %266 {offsets = [0, 0], sizes = [2, 512], strides = [1, 1]} : vector<16x512xf32> to vector<2x512xf32>
    %272 = arith.truncf %269 : vector<2x128xf32> to vector<2x128xbf16>
    %cst_61 = arith.constant dense<0.000000e+00> : vector<2x512xf32>
    %273 = tpu.matmul %272, %268, %cst_61 {dimension_numbers = #tpu.dot_dimension_numbers<[1], [0], [0], [1], [0, 0, 1, 1], [], []>} : vector<2x128xbf16>, vector<128x512xbf16>, vector<2x512xf32> -> vector<2x512xf32>
    %274 = arith.addf %271, %273 : vector<2x512xf32>
    %275 = vector.extract_strided_slice %274 {offsets = [0, 0], sizes = [2, 128], strides = [1, 1]} : vector<2x512xf32> to vector<2x128xf32>
    %276 = arith.negf %275 : vector<2x128xf32>
    %277 = math.exp %276 : vector<2x128xf32>
    %cst_62 = arith.constant 1.000000e+00 : f32
    %278 = vector.broadcast %cst_62 : f32 to vector<2x128xf32>
    %279 = arith.addf %278, %277 : vector<2x128xf32>
    %280 = arith.divf %278, %279 : vector<2x128xf32>
    %281 = vector.extract_strided_slice %274 {offsets = [0, 128], sizes = [2, 128], strides = [1, 1]} : vector<2x512xf32> to vector<2x128xf32>
    %282 = arith.negf %281 : vector<2x128xf32>
    %283 = math.exp %282 : vector<2x128xf32>
    %cst_63 = arith.constant 1.000000e+00 : f32
    %284 = vector.broadcast %cst_63 : f32 to vector<2x128xf32>
    %285 = arith.addf %284, %283 : vector<2x128xf32>
    %286 = arith.divf %284, %285 : vector<2x128xf32>
    %287 = vector.extract_strided_slice %274 {offsets = [0, 256], sizes = [2, 128], strides = [1, 1]} : vector<2x512xf32> to vector<2x128xf32>
    %288 = math.tanh %287 : vector<2x128xf32>
    %289 = vector.extract_strided_slice %274 {offsets = [0, 384], sizes = [2, 128], strides = [1, 1]} : vector<2x512xf32> to vector<2x128xf32>
    %290 = arith.negf %289 : vector<2x128xf32>
    %291 = math.exp %290 : vector<2x128xf32>
    %cst_64 = arith.constant 1.000000e+00 : f32
    %292 = vector.broadcast %cst_64 : f32 to vector<2x128xf32>
    %293 = arith.addf %292, %291 : vector<2x128xf32>
    %294 = arith.divf %292, %293 : vector<2x128xf32>
    %295 = arith.mulf %286, %270 : vector<2x128xf32>
    %296 = arith.mulf %280, %288 : vector<2x128xf32>
    %297 = arith.addf %295, %296 : vector<2x128xf32>
    %298 = math.tanh %297 : vector<2x128xf32>
    %299 = arith.mulf %294, %298 : vector<2x128xf32>
    %300 = vector.extract_strided_slice %266 {offsets = [2, 0], sizes = [2, 512], strides = [1, 1]} : vector<16x512xf32> to vector<2x512xf32>
    %301 = arith.truncf %299 : vector<2x128xf32> to vector<2x128xbf16>
    %cst_65 = arith.constant dense<0.000000e+00> : vector<2x512xf32>
    %302 = tpu.matmul %301, %268, %cst_65 {dimension_numbers = #tpu.dot_dimension_numbers<[1], [0], [0], [1], [0, 0, 1, 1], [], []>} : vector<2x128xbf16>, vector<128x512xbf16>, vector<2x512xf32> -> vector<2x512xf32>
    %303 = arith.addf %300, %302 : vector<2x512xf32>
    %304 = vector.extract_strided_slice %303 {offsets = [0, 0], sizes = [2, 128], strides = [1, 1]} : vector<2x512xf32> to vector<2x128xf32>
    %305 = arith.negf %304 : vector<2x128xf32>
    %306 = math.exp %305 : vector<2x128xf32>
    %cst_66 = arith.constant 1.000000e+00 : f32
    %307 = vector.broadcast %cst_66 : f32 to vector<2x128xf32>
    %308 = arith.addf %307, %306 : vector<2x128xf32>
    %309 = arith.divf %307, %308 : vector<2x128xf32>
    %310 = vector.extract_strided_slice %303 {offsets = [0, 128], sizes = [2, 128], strides = [1, 1]} : vector<2x512xf32> to vector<2x128xf32>
    %311 = arith.negf %310 : vector<2x128xf32>
    %312 = math.exp %311 : vector<2x128xf32>
    %cst_67 = arith.constant 1.000000e+00 : f32
    %313 = vector.broadcast %cst_67 : f32 to vector<2x128xf32>
    %314 = arith.addf %313, %312 : vector<2x128xf32>
    %315 = arith.divf %313, %314 : vector<2x128xf32>
    %316 = vector.extract_strided_slice %303 {offsets = [0, 256], sizes = [2, 128], strides = [1, 1]} : vector<2x512xf32> to vector<2x128xf32>
    %317 = math.tanh %316 : vector<2x128xf32>
    %318 = vector.extract_strided_slice %303 {offsets = [0, 384], sizes = [2, 128], strides = [1, 1]} : vector<2x512xf32> to vector<2x128xf32>
    %319 = arith.negf %318 : vector<2x128xf32>
    %320 = math.exp %319 : vector<2x128xf32>
    %cst_68 = arith.constant 1.000000e+00 : f32
    %321 = vector.broadcast %cst_68 : f32 to vector<2x128xf32>
    %322 = arith.addf %321, %320 : vector<2x128xf32>
    %323 = arith.divf %321, %322 : vector<2x128xf32>
    %324 = arith.mulf %315, %297 : vector<2x128xf32>
    %325 = arith.mulf %309, %317 : vector<2x128xf32>
    %326 = arith.addf %324, %325 : vector<2x128xf32>
    %327 = math.tanh %326 : vector<2x128xf32>
    %328 = arith.mulf %323, %327 : vector<2x128xf32>
    %329 = vector.extract_strided_slice %266 {offsets = [4, 0], sizes = [2, 512], strides = [1, 1]} : vector<16x512xf32> to vector<2x512xf32>
    %330 = arith.truncf %328 : vector<2x128xf32> to vector<2x128xbf16>
    %cst_69 = arith.constant dense<0.000000e+00> : vector<2x512xf32>
    %331 = tpu.matmul %330, %268, %cst_69 {dimension_numbers = #tpu.dot_dimension_numbers<[1], [0], [0], [1], [0, 0, 1, 1], [], []>} : vector<2x128xbf16>, vector<128x512xbf16>, vector<2x512xf32> -> vector<2x512xf32>
    %332 = arith.addf %329, %331 : vector<2x512xf32>
    %333 = vector.extract_strided_slice %332 {offsets = [0, 0], sizes = [2, 128], strides = [1, 1]} : vector<2x512xf32> to vector<2x128xf32>
    %334 = arith.negf %333 : vector<2x128xf32>
    %335 = math.exp %334 : vector<2x128xf32>
    %cst_70 = arith.constant 1.000000e+00 : f32
    %336 = vector.broadcast %cst_70 : f32 to vector<2x128xf32>
    %337 = arith.addf %336, %335 : vector<2x128xf32>
    %338 = arith.divf %336, %337 : vector<2x128xf32>
    %339 = vector.extract_strided_slice %332 {offsets = [0, 128], sizes = [2, 128], strides = [1, 1]} : vector<2x512xf32> to vector<2x128xf32>
    %340 = arith.negf %339 : vector<2x128xf32>
    %341 = math.exp %340 : vector<2x128xf32>
    %cst_71 = arith.constant 1.000000e+00 : f32
    %342 = vector.broadcast %cst_71 : f32 to vector<2x128xf32>
    %343 = arith.addf %342, %341 : vector<2x128xf32>
    %344 = arith.divf %342, %343 : vector<2x128xf32>
    %345 = vector.extract_strided_slice %332 {offsets = [0, 256], sizes = [2, 128], strides = [1, 1]} : vector<2x512xf32> to vector<2x128xf32>
    %346 = math.tanh %345 : vector<2x128xf32>
    %347 = vector.extract_strided_slice %332 {offsets = [0, 384], sizes = [2, 128], strides = [1, 1]} : vector<2x512xf32> to vector<2x128xf32>
    %348 = arith.negf %347 : vector<2x128xf32>
    %349 = math.exp %348 : vector<2x128xf32>
    %cst_72 = arith.constant 1.000000e+00 : f32
    %350 = vector.broadcast %cst_72 : f32 to vector<2x128xf32>
    %351 = arith.addf %350, %349 : vector<2x128xf32>
    %352 = arith.divf %350, %351 : vector<2x128xf32>
    %353 = arith.mulf %344, %326 : vector<2x128xf32>
    %354 = arith.mulf %338, %346 : vector<2x128xf32>
    %355 = arith.addf %353, %354 : vector<2x128xf32>
    %356 = math.tanh %355 : vector<2x128xf32>
    %357 = arith.mulf %352, %356 : vector<2x128xf32>
    %358 = vector.extract_strided_slice %266 {offsets = [6, 0], sizes = [2, 512], strides = [1, 1]} : vector<16x512xf32> to vector<2x512xf32>
    %359 = arith.truncf %357 : vector<2x128xf32> to vector<2x128xbf16>
    %cst_73 = arith.constant dense<0.000000e+00> : vector<2x512xf32>
    %360 = tpu.matmul %359, %268, %cst_73 {dimension_numbers = #tpu.dot_dimension_numbers<[1], [0], [0], [1], [0, 0, 1, 1], [], []>} : vector<2x128xbf16>, vector<128x512xbf16>, vector<2x512xf32> -> vector<2x512xf32>
    %361 = arith.addf %358, %360 : vector<2x512xf32>
    %362 = vector.extract_strided_slice %361 {offsets = [0, 0], sizes = [2, 128], strides = [1, 1]} : vector<2x512xf32> to vector<2x128xf32>
    %363 = arith.negf %362 : vector<2x128xf32>
    %364 = math.exp %363 : vector<2x128xf32>
    %cst_74 = arith.constant 1.000000e+00 : f32
    %365 = vector.broadcast %cst_74 : f32 to vector<2x128xf32>
    %366 = arith.addf %365, %364 : vector<2x128xf32>
    %367 = arith.divf %365, %366 : vector<2x128xf32>
    %368 = vector.extract_strided_slice %361 {offsets = [0, 128], sizes = [2, 128], strides = [1, 1]} : vector<2x512xf32> to vector<2x128xf32>
    %369 = arith.negf %368 : vector<2x128xf32>
    %370 = math.exp %369 : vector<2x128xf32>
    %cst_75 = arith.constant 1.000000e+00 : f32
    %371 = vector.broadcast %cst_75 : f32 to vector<2x128xf32>
    %372 = arith.addf %371, %370 : vector<2x128xf32>
    %373 = arith.divf %371, %372 : vector<2x128xf32>
    %374 = vector.extract_strided_slice %361 {offsets = [0, 256], sizes = [2, 128], strides = [1, 1]} : vector<2x512xf32> to vector<2x128xf32>
    %375 = math.tanh %374 : vector<2x128xf32>
    %376 = vector.extract_strided_slice %361 {offsets = [0, 384], sizes = [2, 128], strides = [1, 1]} : vector<2x512xf32> to vector<2x128xf32>
    %377 = arith.negf %376 : vector<2x128xf32>
    %378 = math.exp %377 : vector<2x128xf32>
    %cst_76 = arith.constant 1.000000e+00 : f32
    %379 = vector.broadcast %cst_76 : f32 to vector<2x128xf32>
    %380 = arith.addf %379, %378 : vector<2x128xf32>
    %381 = arith.divf %379, %380 : vector<2x128xf32>
    %382 = arith.mulf %373, %355 : vector<2x128xf32>
    %383 = arith.mulf %367, %375 : vector<2x128xf32>
    %384 = arith.addf %382, %383 : vector<2x128xf32>
    %385 = math.tanh %384 : vector<2x128xf32>
    %386 = arith.mulf %381, %385 : vector<2x128xf32>
    %387 = vector.extract_strided_slice %266 {offsets = [8, 0], sizes = [2, 512], strides = [1, 1]} : vector<16x512xf32> to vector<2x512xf32>
    %388 = arith.truncf %386 : vector<2x128xf32> to vector<2x128xbf16>
    %cst_77 = arith.constant dense<0.000000e+00> : vector<2x512xf32>
    %389 = tpu.matmul %388, %268, %cst_77 {dimension_numbers = #tpu.dot_dimension_numbers<[1], [0], [0], [1], [0, 0, 1, 1], [], []>} : vector<2x128xbf16>, vector<128x512xbf16>, vector<2x512xf32> -> vector<2x512xf32>
    %390 = arith.addf %387, %389 : vector<2x512xf32>
    %391 = vector.extract_strided_slice %390 {offsets = [0, 0], sizes = [2, 128], strides = [1, 1]} : vector<2x512xf32> to vector<2x128xf32>
    %392 = arith.negf %391 : vector<2x128xf32>
    %393 = math.exp %392 : vector<2x128xf32>
    %cst_78 = arith.constant 1.000000e+00 : f32
    %394 = vector.broadcast %cst_78 : f32 to vector<2x128xf32>
    %395 = arith.addf %394, %393 : vector<2x128xf32>
    %396 = arith.divf %394, %395 : vector<2x128xf32>
    %397 = vector.extract_strided_slice %390 {offsets = [0, 128], sizes = [2, 128], strides = [1, 1]} : vector<2x512xf32> to vector<2x128xf32>
    %398 = arith.negf %397 : vector<2x128xf32>
    %399 = math.exp %398 : vector<2x128xf32>
    %cst_79 = arith.constant 1.000000e+00 : f32
    %400 = vector.broadcast %cst_79 : f32 to vector<2x128xf32>
    %401 = arith.addf %400, %399 : vector<2x128xf32>
    %402 = arith.divf %400, %401 : vector<2x128xf32>
    %403 = vector.extract_strided_slice %390 {offsets = [0, 256], sizes = [2, 128], strides = [1, 1]} : vector<2x512xf32> to vector<2x128xf32>
    %404 = math.tanh %403 : vector<2x128xf32>
    %405 = vector.extract_strided_slice %390 {offsets = [0, 384], sizes = [2, 128], strides = [1, 1]} : vector<2x512xf32> to vector<2x128xf32>
    %406 = arith.negf %405 : vector<2x128xf32>
    %407 = math.exp %406 : vector<2x128xf32>
    %cst_80 = arith.constant 1.000000e+00 : f32
    %408 = vector.broadcast %cst_80 : f32 to vector<2x128xf32>
    %409 = arith.addf %408, %407 : vector<2x128xf32>
    %410 = arith.divf %408, %409 : vector<2x128xf32>
    %411 = arith.mulf %402, %384 : vector<2x128xf32>
    %412 = arith.mulf %396, %404 : vector<2x128xf32>
    %413 = arith.addf %411, %412 : vector<2x128xf32>
    %414 = math.tanh %413 : vector<2x128xf32>
    %415 = arith.mulf %410, %414 : vector<2x128xf32>
    %416 = vector.extract_strided_slice %266 {offsets = [10, 0], sizes = [2, 512], strides = [1, 1]} : vector<16x512xf32> to vector<2x512xf32>
    %417 = arith.truncf %415 : vector<2x128xf32> to vector<2x128xbf16>
    %cst_81 = arith.constant dense<0.000000e+00> : vector<2x512xf32>
    %418 = tpu.matmul %417, %268, %cst_81 {dimension_numbers = #tpu.dot_dimension_numbers<[1], [0], [0], [1], [0, 0, 1, 1], [], []>} : vector<2x128xbf16>, vector<128x512xbf16>, vector<2x512xf32> -> vector<2x512xf32>
    %419 = arith.addf %416, %418 : vector<2x512xf32>
    %420 = vector.extract_strided_slice %419 {offsets = [0, 0], sizes = [2, 128], strides = [1, 1]} : vector<2x512xf32> to vector<2x128xf32>
    %421 = arith.negf %420 : vector<2x128xf32>
    %422 = math.exp %421 : vector<2x128xf32>
    %cst_82 = arith.constant 1.000000e+00 : f32
    %423 = vector.broadcast %cst_82 : f32 to vector<2x128xf32>
    %424 = arith.addf %423, %422 : vector<2x128xf32>
    %425 = arith.divf %423, %424 : vector<2x128xf32>
    %426 = vector.extract_strided_slice %419 {offsets = [0, 128], sizes = [2, 128], strides = [1, 1]} : vector<2x512xf32> to vector<2x128xf32>
    %427 = arith.negf %426 : vector<2x128xf32>
    %428 = math.exp %427 : vector<2x128xf32>
    %cst_83 = arith.constant 1.000000e+00 : f32
    %429 = vector.broadcast %cst_83 : f32 to vector<2x128xf32>
    %430 = arith.addf %429, %428 : vector<2x128xf32>
    %431 = arith.divf %429, %430 : vector<2x128xf32>
    %432 = vector.extract_strided_slice %419 {offsets = [0, 256], sizes = [2, 128], strides = [1, 1]} : vector<2x512xf32> to vector<2x128xf32>
    %433 = math.tanh %432 : vector<2x128xf32>
    %434 = vector.extract_strided_slice %419 {offsets = [0, 384], sizes = [2, 128], strides = [1, 1]} : vector<2x512xf32> to vector<2x128xf32>
    %435 = arith.negf %434 : vector<2x128xf32>
    %436 = math.exp %435 : vector<2x128xf32>
    %cst_84 = arith.constant 1.000000e+00 : f32
    %437 = vector.broadcast %cst_84 : f32 to vector<2x128xf32>
    %438 = arith.addf %437, %436 : vector<2x128xf32>
    %439 = arith.divf %437, %438 : vector<2x128xf32>
    %440 = arith.mulf %431, %413 : vector<2x128xf32>
    %441 = arith.mulf %425, %433 : vector<2x128xf32>
    %442 = arith.addf %440, %441 : vector<2x128xf32>
    %443 = math.tanh %442 : vector<2x128xf32>
    %444 = arith.mulf %439, %443 : vector<2x128xf32>
    %445 = vector.extract_strided_slice %266 {offsets = [12, 0], sizes = [2, 512], strides = [1, 1]} : vector<16x512xf32> to vector<2x512xf32>
    %446 = arith.truncf %444 : vector<2x128xf32> to vector<2x128xbf16>
    %cst_85 = arith.constant dense<0.000000e+00> : vector<2x512xf32>
    %447 = tpu.matmul %446, %268, %cst_85 {dimension_numbers = #tpu.dot_dimension_numbers<[1], [0], [0], [1], [0, 0, 1, 1], [], []>} : vector<2x128xbf16>, vector<128x512xbf16>, vector<2x512xf32> -> vector<2x512xf32>
    %448 = arith.addf %445, %447 : vector<2x512xf32>
    %449 = vector.extract_strided_slice %448 {offsets = [0, 0], sizes = [2, 128], strides = [1, 1]} : vector<2x512xf32> to vector<2x128xf32>
    %450 = arith.negf %449 : vector<2x128xf32>
    %451 = math.exp %450 : vector<2x128xf32>
    %cst_86 = arith.constant 1.000000e+00 : f32
    %452 = vector.broadcast %cst_86 : f32 to vector<2x128xf32>
    %453 = arith.addf %452, %451 : vector<2x128xf32>
    %454 = arith.divf %452, %453 : vector<2x128xf32>
    %455 = vector.extract_strided_slice %448 {offsets = [0, 128], sizes = [2, 128], strides = [1, 1]} : vector<2x512xf32> to vector<2x128xf32>
    %456 = arith.negf %455 : vector<2x128xf32>
    %457 = math.exp %456 : vector<2x128xf32>
    %cst_87 = arith.constant 1.000000e+00 : f32
    %458 = vector.broadcast %cst_87 : f32 to vector<2x128xf32>
    %459 = arith.addf %458, %457 : vector<2x128xf32>
    %460 = arith.divf %458, %459 : vector<2x128xf32>
    %461 = vector.extract_strided_slice %448 {offsets = [0, 256], sizes = [2, 128], strides = [1, 1]} : vector<2x512xf32> to vector<2x128xf32>
    %462 = math.tanh %461 : vector<2x128xf32>
    %463 = vector.extract_strided_slice %448 {offsets = [0, 384], sizes = [2, 128], strides = [1, 1]} : vector<2x512xf32> to vector<2x128xf32>
    %464 = arith.negf %463 : vector<2x128xf32>
    %465 = math.exp %464 : vector<2x128xf32>
    %cst_88 = arith.constant 1.000000e+00 : f32
    %466 = vector.broadcast %cst_88 : f32 to vector<2x128xf32>
    %467 = arith.addf %466, %465 : vector<2x128xf32>
    %468 = arith.divf %466, %467 : vector<2x128xf32>
    %469 = arith.mulf %460, %442 : vector<2x128xf32>
    %470 = arith.mulf %454, %462 : vector<2x128xf32>
    %471 = arith.addf %469, %470 : vector<2x128xf32>
    %472 = math.tanh %471 : vector<2x128xf32>
    %473 = arith.mulf %468, %472 : vector<2x128xf32>
    %474 = vector.extract_strided_slice %266 {offsets = [14, 0], sizes = [2, 512], strides = [1, 1]} : vector<16x512xf32> to vector<2x512xf32>
    %475 = arith.truncf %473 : vector<2x128xf32> to vector<2x128xbf16>
    %cst_89 = arith.constant dense<0.000000e+00> : vector<2x512xf32>
    %476 = tpu.matmul %475, %268, %cst_89 {dimension_numbers = #tpu.dot_dimension_numbers<[1], [0], [0], [1], [0, 0, 1, 1], [], []>} : vector<2x128xbf16>, vector<128x512xbf16>, vector<2x512xf32> -> vector<2x512xf32>
    %477 = arith.addf %474, %476 : vector<2x512xf32>
    %478 = vector.extract_strided_slice %477 {offsets = [0, 0], sizes = [2, 128], strides = [1, 1]} : vector<2x512xf32> to vector<2x128xf32>
    %479 = arith.negf %478 : vector<2x128xf32>
    %480 = math.exp %479 : vector<2x128xf32>
    %cst_90 = arith.constant 1.000000e+00 : f32
    %481 = vector.broadcast %cst_90 : f32 to vector<2x128xf32>
    %482 = arith.addf %481, %480 : vector<2x128xf32>
    %483 = arith.divf %481, %482 : vector<2x128xf32>
    %484 = vector.extract_strided_slice %477 {offsets = [0, 128], sizes = [2, 128], strides = [1, 1]} : vector<2x512xf32> to vector<2x128xf32>
    %485 = arith.negf %484 : vector<2x128xf32>
    %486 = math.exp %485 : vector<2x128xf32>
    %cst_91 = arith.constant 1.000000e+00 : f32
    %487 = vector.broadcast %cst_91 : f32 to vector<2x128xf32>
    %488 = arith.addf %487, %486 : vector<2x128xf32>
    %489 = arith.divf %487, %488 : vector<2x128xf32>
    %490 = vector.extract_strided_slice %477 {offsets = [0, 256], sizes = [2, 128], strides = [1, 1]} : vector<2x512xf32> to vector<2x128xf32>
    %491 = math.tanh %490 : vector<2x128xf32>
    %492 = vector.extract_strided_slice %477 {offsets = [0, 384], sizes = [2, 128], strides = [1, 1]} : vector<2x512xf32> to vector<2x128xf32>
    %493 = arith.negf %492 : vector<2x128xf32>
    %494 = math.exp %493 : vector<2x128xf32>
    %cst_92 = arith.constant 1.000000e+00 : f32
    %495 = vector.broadcast %cst_92 : f32 to vector<2x128xf32>
    %496 = arith.addf %495, %494 : vector<2x128xf32>
    %497 = arith.divf %495, %496 : vector<2x128xf32>
    %498 = arith.mulf %489, %471 : vector<2x128xf32>
    %499 = arith.mulf %483, %491 : vector<2x128xf32>
    %500 = arith.addf %498, %499 : vector<2x128xf32>
    %501 = math.tanh %500 : vector<2x128xf32>
    %502 = arith.mulf %497, %501 : vector<2x128xf32>
    %503 = tpu.concatenate %299, %328, %357, %386, %415, %444, %473, %502 in 0 : vector<2x128xf32>, vector<2x128xf32>, vector<2x128xf32>, vector<2x128xf32>, vector<2x128xf32>, vector<2x128xf32>, vector<2x128xf32>, vector<2x128xf32> -> vector<16x128xf32>
    %504 = arith.truncf %503 : vector<16x128xf32> to vector<16x128xbf16>
    %c2 = arith.constant 2 : index
    %c0_93 = arith.constant 0 : index
    %c0_94 = arith.constant 0 : index
    %505 = vector.load %arg3[%c2, %c0_93, %c0_94] : memref<3x128x512xbf16, #tpu.memory_space<vmem>>, vector<1x128x512xbf16>
    %506 = vector.shape_cast %505 : vector<1x128x512xbf16> to vector<128x512xbf16>
    %cst_95 = arith.constant dense<0.000000e+00> : vector<16x512xf32>
    %507 = tpu.matmul %504, %506, %cst_95 {dimension_numbers = #tpu.dot_dimension_numbers<[1], [0], [0], [1], [0, 0, 1, 1], [], []>} : vector<16x128xbf16>, vector<128x512xbf16>, vector<16x512xf32> -> vector<16x512xf32>
    %c2_96 = arith.constant 2 : index
    %c0_97 = arith.constant 0 : index
    %c0_98 = arith.constant 0 : index
    %508 = vector.load %arg5[%c2_96, %c0_97, %c0_98] : memref<3x1x512xf32, #tpu.memory_space<vmem>>, vector<1x1x512xf32>
    %509 = vector.shape_cast %508 : vector<1x1x512xf32> to vector<1x512xf32>
    %510 = vector.broadcast %509 : vector<1x512xf32> to vector<16x512xf32>
    %511 = arith.addf %507, %510 : vector<16x512xf32>
    %c2_99 = arith.constant 2 : index
    %c0_100 = arith.constant 0 : index
    %c0_101 = arith.constant 0 : index
    %512 = vector.load %arg4[%c2_99, %c0_100, %c0_101] : memref<3x128x512xbf16, #tpu.memory_space<vmem>>, vector<1x128x512xbf16>
    %513 = vector.shape_cast %512 : vector<1x128x512xbf16> to vector<128x512xbf16>
    %cst_102 = arith.constant 0.000000e+00 : f32
    %514 = vector.broadcast %cst_102 : f32 to vector<2x128xf32>
    %cst_103 = arith.constant 0.000000e+00 : f32
    %515 = vector.broadcast %cst_103 : f32 to vector<2x128xf32>
    %516 = vector.extract_strided_slice %511 {offsets = [0, 0], sizes = [2, 512], strides = [1, 1]} : vector<16x512xf32> to vector<2x512xf32>
    %517 = arith.truncf %514 : vector<2x128xf32> to vector<2x128xbf16>
    %cst_104 = arith.constant dense<0.000000e+00> : vector<2x512xf32>
    %518 = tpu.matmul %517, %513, %cst_104 {dimension_numbers = #tpu.dot_dimension_numbers<[1], [0], [0], [1], [0, 0, 1, 1], [], []>} : vector<2x128xbf16>, vector<128x512xbf16>, vector<2x512xf32> -> vector<2x512xf32>
    %519 = arith.addf %516, %518 : vector<2x512xf32>
    %520 = vector.extract_strided_slice %519 {offsets = [0, 0], sizes = [2, 128], strides = [1, 1]} : vector<2x512xf32> to vector<2x128xf32>
    %521 = arith.negf %520 : vector<2x128xf32>
    %522 = math.exp %521 : vector<2x128xf32>
    %cst_105 = arith.constant 1.000000e+00 : f32
    %523 = vector.broadcast %cst_105 : f32 to vector<2x128xf32>
    %524 = arith.addf %523, %522 : vector<2x128xf32>
    %525 = arith.divf %523, %524 : vector<2x128xf32>
    %526 = vector.extract_strided_slice %519 {offsets = [0, 128], sizes = [2, 128], strides = [1, 1]} : vector<2x512xf32> to vector<2x128xf32>
    %527 = arith.negf %526 : vector<2x128xf32>
    %528 = math.exp %527 : vector<2x128xf32>
    %cst_106 = arith.constant 1.000000e+00 : f32
    %529 = vector.broadcast %cst_106 : f32 to vector<2x128xf32>
    %530 = arith.addf %529, %528 : vector<2x128xf32>
    %531 = arith.divf %529, %530 : vector<2x128xf32>
    %532 = vector.extract_strided_slice %519 {offsets = [0, 256], sizes = [2, 128], strides = [1, 1]} : vector<2x512xf32> to vector<2x128xf32>
    %533 = math.tanh %532 : vector<2x128xf32>
    %534 = vector.extract_strided_slice %519 {offsets = [0, 384], sizes = [2, 128], strides = [1, 1]} : vector<2x512xf32> to vector<2x128xf32>
    %535 = arith.negf %534 : vector<2x128xf32>
    %536 = math.exp %535 : vector<2x128xf32>
    %cst_107 = arith.constant 1.000000e+00 : f32
    %537 = vector.broadcast %cst_107 : f32 to vector<2x128xf32>
    %538 = arith.addf %537, %536 : vector<2x128xf32>
    %539 = arith.divf %537, %538 : vector<2x128xf32>
    %540 = arith.mulf %531, %515 : vector<2x128xf32>
    %541 = arith.mulf %525, %533 : vector<2x128xf32>
    %542 = arith.addf %540, %541 : vector<2x128xf32>
    %543 = math.tanh %542 : vector<2x128xf32>
    %544 = arith.mulf %539, %543 : vector<2x128xf32>
    %545 = vector.extract_strided_slice %511 {offsets = [2, 0], sizes = [2, 512], strides = [1, 1]} : vector<16x512xf32> to vector<2x512xf32>
    %546 = arith.truncf %544 : vector<2x128xf32> to vector<2x128xbf16>
    %cst_108 = arith.constant dense<0.000000e+00> : vector<2x512xf32>
    %547 = tpu.matmul %546, %513, %cst_108 {dimension_numbers = #tpu.dot_dimension_numbers<[1], [0], [0], [1], [0, 0, 1, 1], [], []>} : vector<2x128xbf16>, vector<128x512xbf16>, vector<2x512xf32> -> vector<2x512xf32>
    %548 = arith.addf %545, %547 : vector<2x512xf32>
    %549 = vector.extract_strided_slice %548 {offsets = [0, 0], sizes = [2, 128], strides = [1, 1]} : vector<2x512xf32> to vector<2x128xf32>
    %550 = arith.negf %549 : vector<2x128xf32>
    %551 = math.exp %550 : vector<2x128xf32>
    %cst_109 = arith.constant 1.000000e+00 : f32
    %552 = vector.broadcast %cst_109 : f32 to vector<2x128xf32>
    %553 = arith.addf %552, %551 : vector<2x128xf32>
    %554 = arith.divf %552, %553 : vector<2x128xf32>
    %555 = vector.extract_strided_slice %548 {offsets = [0, 128], sizes = [2, 128], strides = [1, 1]} : vector<2x512xf32> to vector<2x128xf32>
    %556 = arith.negf %555 : vector<2x128xf32>
    %557 = math.exp %556 : vector<2x128xf32>
    %cst_110 = arith.constant 1.000000e+00 : f32
    %558 = vector.broadcast %cst_110 : f32 to vector<2x128xf32>
    %559 = arith.addf %558, %557 : vector<2x128xf32>
    %560 = arith.divf %558, %559 : vector<2x128xf32>
    %561 = vector.extract_strided_slice %548 {offsets = [0, 256], sizes = [2, 128], strides = [1, 1]} : vector<2x512xf32> to vector<2x128xf32>
    %562 = math.tanh %561 : vector<2x128xf32>
    %563 = vector.extract_strided_slice %548 {offsets = [0, 384], sizes = [2, 128], strides = [1, 1]} : vector<2x512xf32> to vector<2x128xf32>
    %564 = arith.negf %563 : vector<2x128xf32>
    %565 = math.exp %564 : vector<2x128xf32>
    %cst_111 = arith.constant 1.000000e+00 : f32
    %566 = vector.broadcast %cst_111 : f32 to vector<2x128xf32>
    %567 = arith.addf %566, %565 : vector<2x128xf32>
    %568 = arith.divf %566, %567 : vector<2x128xf32>
    %569 = arith.mulf %560, %542 : vector<2x128xf32>
    %570 = arith.mulf %554, %562 : vector<2x128xf32>
    %571 = arith.addf %569, %570 : vector<2x128xf32>
    %572 = math.tanh %571 : vector<2x128xf32>
    %573 = arith.mulf %568, %572 : vector<2x128xf32>
    %574 = vector.extract_strided_slice %511 {offsets = [4, 0], sizes = [2, 512], strides = [1, 1]} : vector<16x512xf32> to vector<2x512xf32>
    %575 = arith.truncf %573 : vector<2x128xf32> to vector<2x128xbf16>
    %cst_112 = arith.constant dense<0.000000e+00> : vector<2x512xf32>
    %576 = tpu.matmul %575, %513, %cst_112 {dimension_numbers = #tpu.dot_dimension_numbers<[1], [0], [0], [1], [0, 0, 1, 1], [], []>} : vector<2x128xbf16>, vector<128x512xbf16>, vector<2x512xf32> -> vector<2x512xf32>
    %577 = arith.addf %574, %576 : vector<2x512xf32>
    %578 = vector.extract_strided_slice %577 {offsets = [0, 0], sizes = [2, 128], strides = [1, 1]} : vector<2x512xf32> to vector<2x128xf32>
    %579 = arith.negf %578 : vector<2x128xf32>
    %580 = math.exp %579 : vector<2x128xf32>
    %cst_113 = arith.constant 1.000000e+00 : f32
    %581 = vector.broadcast %cst_113 : f32 to vector<2x128xf32>
    %582 = arith.addf %581, %580 : vector<2x128xf32>
    %583 = arith.divf %581, %582 : vector<2x128xf32>
    %584 = vector.extract_strided_slice %577 {offsets = [0, 128], sizes = [2, 128], strides = [1, 1]} : vector<2x512xf32> to vector<2x128xf32>
    %585 = arith.negf %584 : vector<2x128xf32>
    %586 = math.exp %585 : vector<2x128xf32>
    %cst_114 = arith.constant 1.000000e+00 : f32
    %587 = vector.broadcast %cst_114 : f32 to vector<2x128xf32>
    %588 = arith.addf %587, %586 : vector<2x128xf32>
    %589 = arith.divf %587, %588 : vector<2x128xf32>
    %590 = vector.extract_strided_slice %577 {offsets = [0, 256], sizes = [2, 128], strides = [1, 1]} : vector<2x512xf32> to vector<2x128xf32>
    %591 = math.tanh %590 : vector<2x128xf32>
    %592 = vector.extract_strided_slice %577 {offsets = [0, 384], sizes = [2, 128], strides = [1, 1]} : vector<2x512xf32> to vector<2x128xf32>
    %593 = arith.negf %592 : vector<2x128xf32>
    %594 = math.exp %593 : vector<2x128xf32>
    %cst_115 = arith.constant 1.000000e+00 : f32
    %595 = vector.broadcast %cst_115 : f32 to vector<2x128xf32>
    %596 = arith.addf %595, %594 : vector<2x128xf32>
    %597 = arith.divf %595, %596 : vector<2x128xf32>
    %598 = arith.mulf %589, %571 : vector<2x128xf32>
    %599 = arith.mulf %583, %591 : vector<2x128xf32>
    %600 = arith.addf %598, %599 : vector<2x128xf32>
    %601 = math.tanh %600 : vector<2x128xf32>
    %602 = arith.mulf %597, %601 : vector<2x128xf32>
    %603 = vector.extract_strided_slice %511 {offsets = [6, 0], sizes = [2, 512], strides = [1, 1]} : vector<16x512xf32> to vector<2x512xf32>
    %604 = arith.truncf %602 : vector<2x128xf32> to vector<2x128xbf16>
    %cst_116 = arith.constant dense<0.000000e+00> : vector<2x512xf32>
    %605 = tpu.matmul %604, %513, %cst_116 {dimension_numbers = #tpu.dot_dimension_numbers<[1], [0], [0], [1], [0, 0, 1, 1], [], []>} : vector<2x128xbf16>, vector<128x512xbf16>, vector<2x512xf32> -> vector<2x512xf32>
    %606 = arith.addf %603, %605 : vector<2x512xf32>
    %607 = vector.extract_strided_slice %606 {offsets = [0, 0], sizes = [2, 128], strides = [1, 1]} : vector<2x512xf32> to vector<2x128xf32>
    %608 = arith.negf %607 : vector<2x128xf32>
    %609 = math.exp %608 : vector<2x128xf32>
    %cst_117 = arith.constant 1.000000e+00 : f32
    %610 = vector.broadcast %cst_117 : f32 to vector<2x128xf32>
    %611 = arith.addf %610, %609 : vector<2x128xf32>
    %612 = arith.divf %610, %611 : vector<2x128xf32>
    %613 = vector.extract_strided_slice %606 {offsets = [0, 128], sizes = [2, 128], strides = [1, 1]} : vector<2x512xf32> to vector<2x128xf32>
    %614 = arith.negf %613 : vector<2x128xf32>
    %615 = math.exp %614 : vector<2x128xf32>
    %cst_118 = arith.constant 1.000000e+00 : f32
    %616 = vector.broadcast %cst_118 : f32 to vector<2x128xf32>
    %617 = arith.addf %616, %615 : vector<2x128xf32>
    %618 = arith.divf %616, %617 : vector<2x128xf32>
    %619 = vector.extract_strided_slice %606 {offsets = [0, 256], sizes = [2, 128], strides = [1, 1]} : vector<2x512xf32> to vector<2x128xf32>
    %620 = math.tanh %619 : vector<2x128xf32>
    %621 = vector.extract_strided_slice %606 {offsets = [0, 384], sizes = [2, 128], strides = [1, 1]} : vector<2x512xf32> to vector<2x128xf32>
    %622 = arith.negf %621 : vector<2x128xf32>
    %623 = math.exp %622 : vector<2x128xf32>
    %cst_119 = arith.constant 1.000000e+00 : f32
    %624 = vector.broadcast %cst_119 : f32 to vector<2x128xf32>
    %625 = arith.addf %624, %623 : vector<2x128xf32>
    %626 = arith.divf %624, %625 : vector<2x128xf32>
    %627 = arith.mulf %618, %600 : vector<2x128xf32>
    %628 = arith.mulf %612, %620 : vector<2x128xf32>
    %629 = arith.addf %627, %628 : vector<2x128xf32>
    %630 = math.tanh %629 : vector<2x128xf32>
    %631 = arith.mulf %626, %630 : vector<2x128xf32>
    %632 = vector.extract_strided_slice %511 {offsets = [8, 0], sizes = [2, 512], strides = [1, 1]} : vector<16x512xf32> to vector<2x512xf32>
    %633 = arith.truncf %631 : vector<2x128xf32> to vector<2x128xbf16>
    %cst_120 = arith.constant dense<0.000000e+00> : vector<2x512xf32>
    %634 = tpu.matmul %633, %513, %cst_120 {dimension_numbers = #tpu.dot_dimension_numbers<[1], [0], [0], [1], [0, 0, 1, 1], [], []>} : vector<2x128xbf16>, vector<128x512xbf16>, vector<2x512xf32> -> vector<2x512xf32>
    %635 = arith.addf %632, %634 : vector<2x512xf32>
    %636 = vector.extract_strided_slice %635 {offsets = [0, 0], sizes = [2, 128], strides = [1, 1]} : vector<2x512xf32> to vector<2x128xf32>
    %637 = arith.negf %636 : vector<2x128xf32>
    %638 = math.exp %637 : vector<2x128xf32>
    %cst_121 = arith.constant 1.000000e+00 : f32
    %639 = vector.broadcast %cst_121 : f32 to vector<2x128xf32>
    %640 = arith.addf %639, %638 : vector<2x128xf32>
    %641 = arith.divf %639, %640 : vector<2x128xf32>
    %642 = vector.extract_strided_slice %635 {offsets = [0, 128], sizes = [2, 128], strides = [1, 1]} : vector<2x512xf32> to vector<2x128xf32>
    %643 = arith.negf %642 : vector<2x128xf32>
    %644 = math.exp %643 : vector<2x128xf32>
    %cst_122 = arith.constant 1.000000e+00 : f32
    %645 = vector.broadcast %cst_122 : f32 to vector<2x128xf32>
    %646 = arith.addf %645, %644 : vector<2x128xf32>
    %647 = arith.divf %645, %646 : vector<2x128xf32>
    %648 = vector.extract_strided_slice %635 {offsets = [0, 256], sizes = [2, 128], strides = [1, 1]} : vector<2x512xf32> to vector<2x128xf32>
    %649 = math.tanh %648 : vector<2x128xf32>
    %650 = vector.extract_strided_slice %635 {offsets = [0, 384], sizes = [2, 128], strides = [1, 1]} : vector<2x512xf32> to vector<2x128xf32>
    %651 = arith.negf %650 : vector<2x128xf32>
    %652 = math.exp %651 : vector<2x128xf32>
    %cst_123 = arith.constant 1.000000e+00 : f32
    %653 = vector.broadcast %cst_123 : f32 to vector<2x128xf32>
    %654 = arith.addf %653, %652 : vector<2x128xf32>
    %655 = arith.divf %653, %654 : vector<2x128xf32>
    %656 = arith.mulf %647, %629 : vector<2x128xf32>
    %657 = arith.mulf %641, %649 : vector<2x128xf32>
    %658 = arith.addf %656, %657 : vector<2x128xf32>
    %659 = math.tanh %658 : vector<2x128xf32>
    %660 = arith.mulf %655, %659 : vector<2x128xf32>
    %661 = vector.extract_strided_slice %511 {offsets = [10, 0], sizes = [2, 512], strides = [1, 1]} : vector<16x512xf32> to vector<2x512xf32>
    %662 = arith.truncf %660 : vector<2x128xf32> to vector<2x128xbf16>
    %cst_124 = arith.constant dense<0.000000e+00> : vector<2x512xf32>
    %663 = tpu.matmul %662, %513, %cst_124 {dimension_numbers = #tpu.dot_dimension_numbers<[1], [0], [0], [1], [0, 0, 1, 1], [], []>} : vector<2x128xbf16>, vector<128x512xbf16>, vector<2x512xf32> -> vector<2x512xf32>
    %664 = arith.addf %661, %663 : vector<2x512xf32>
    %665 = vector.extract_strided_slice %664 {offsets = [0, 0], sizes = [2, 128], strides = [1, 1]} : vector<2x512xf32> to vector<2x128xf32>
    %666 = arith.negf %665 : vector<2x128xf32>
    %667 = math.exp %666 : vector<2x128xf32>
    %cst_125 = arith.constant 1.000000e+00 : f32
    %668 = vector.broadcast %cst_125 : f32 to vector<2x128xf32>
    %669 = arith.addf %668, %667 : vector<2x128xf32>
    %670 = arith.divf %668, %669 : vector<2x128xf32>
    %671 = vector.extract_strided_slice %664 {offsets = [0, 128], sizes = [2, 128], strides = [1, 1]} : vector<2x512xf32> to vector<2x128xf32>
    %672 = arith.negf %671 : vector<2x128xf32>
    %673 = math.exp %672 : vector<2x128xf32>
    %cst_126 = arith.constant 1.000000e+00 : f32
    %674 = vector.broadcast %cst_126 : f32 to vector<2x128xf32>
    %675 = arith.addf %674, %673 : vector<2x128xf32>
    %676 = arith.divf %674, %675 : vector<2x128xf32>
    %677 = vector.extract_strided_slice %664 {offsets = [0, 256], sizes = [2, 128], strides = [1, 1]} : vector<2x512xf32> to vector<2x128xf32>
    %678 = math.tanh %677 : vector<2x128xf32>
    %679 = vector.extract_strided_slice %664 {offsets = [0, 384], sizes = [2, 128], strides = [1, 1]} : vector<2x512xf32> to vector<2x128xf32>
    %680 = arith.negf %679 : vector<2x128xf32>
    %681 = math.exp %680 : vector<2x128xf32>
    %cst_127 = arith.constant 1.000000e+00 : f32
    %682 = vector.broadcast %cst_127 : f32 to vector<2x128xf32>
    %683 = arith.addf %682, %681 : vector<2x128xf32>
    %684 = arith.divf %682, %683 : vector<2x128xf32>
    %685 = arith.mulf %676, %658 : vector<2x128xf32>
    %686 = arith.mulf %670, %678 : vector<2x128xf32>
    %687 = arith.addf %685, %686 : vector<2x128xf32>
    %688 = math.tanh %687 : vector<2x128xf32>
    %689 = arith.mulf %684, %688 : vector<2x128xf32>
    %690 = vector.extract_strided_slice %511 {offsets = [12, 0], sizes = [2, 512], strides = [1, 1]} : vector<16x512xf32> to vector<2x512xf32>
    %691 = arith.truncf %689 : vector<2x128xf32> to vector<2x128xbf16>
    %cst_128 = arith.constant dense<0.000000e+00> : vector<2x512xf32>
    %692 = tpu.matmul %691, %513, %cst_128 {dimension_numbers = #tpu.dot_dimension_numbers<[1], [0], [0], [1], [0, 0, 1, 1], [], []>} : vector<2x128xbf16>, vector<128x512xbf16>, vector<2x512xf32> -> vector<2x512xf32>
    %693 = arith.addf %690, %692 : vector<2x512xf32>
    %694 = vector.extract_strided_slice %693 {offsets = [0, 0], sizes = [2, 128], strides = [1, 1]} : vector<2x512xf32> to vector<2x128xf32>
    %695 = arith.negf %694 : vector<2x128xf32>
    %696 = math.exp %695 : vector<2x128xf32>
    %cst_129 = arith.constant 1.000000e+00 : f32
    %697 = vector.broadcast %cst_129 : f32 to vector<2x128xf32>
    %698 = arith.addf %697, %696 : vector<2x128xf32>
    %699 = arith.divf %697, %698 : vector<2x128xf32>
    %700 = vector.extract_strided_slice %693 {offsets = [0, 128], sizes = [2, 128], strides = [1, 1]} : vector<2x512xf32> to vector<2x128xf32>
    %701 = arith.negf %700 : vector<2x128xf32>
    %702 = math.exp %701 : vector<2x128xf32>
    %cst_130 = arith.constant 1.000000e+00 : f32
    %703 = vector.broadcast %cst_130 : f32 to vector<2x128xf32>
    %704 = arith.addf %703, %702 : vector<2x128xf32>
    %705 = arith.divf %703, %704 : vector<2x128xf32>
    %706 = vector.extract_strided_slice %693 {offsets = [0, 256], sizes = [2, 128], strides = [1, 1]} : vector<2x512xf32> to vector<2x128xf32>
    %707 = math.tanh %706 : vector<2x128xf32>
    %708 = vector.extract_strided_slice %693 {offsets = [0, 384], sizes = [2, 128], strides = [1, 1]} : vector<2x512xf32> to vector<2x128xf32>
    %709 = arith.negf %708 : vector<2x128xf32>
    %710 = math.exp %709 : vector<2x128xf32>
    %cst_131 = arith.constant 1.000000e+00 : f32
    %711 = vector.broadcast %cst_131 : f32 to vector<2x128xf32>
    %712 = arith.addf %711, %710 : vector<2x128xf32>
    %713 = arith.divf %711, %712 : vector<2x128xf32>
    %714 = arith.mulf %705, %687 : vector<2x128xf32>
    %715 = arith.mulf %699, %707 : vector<2x128xf32>
    %716 = arith.addf %714, %715 : vector<2x128xf32>
    %717 = math.tanh %716 : vector<2x128xf32>
    %718 = arith.mulf %713, %717 : vector<2x128xf32>
    %719 = vector.extract_strided_slice %511 {offsets = [14, 0], sizes = [2, 512], strides = [1, 1]} : vector<16x512xf32> to vector<2x512xf32>
    %720 = arith.truncf %718 : vector<2x128xf32> to vector<2x128xbf16>
    %cst_132 = arith.constant dense<0.000000e+00> : vector<2x512xf32>
    %721 = tpu.matmul %720, %513, %cst_132 {dimension_numbers = #tpu.dot_dimension_numbers<[1], [0], [0], [1], [0, 0, 1, 1], [], []>} : vector<2x128xbf16>, vector<128x512xbf16>, vector<2x512xf32> -> vector<2x512xf32>
    %722 = arith.addf %719, %721 : vector<2x512xf32>
    %723 = vector.extract_strided_slice %722 {offsets = [0, 0], sizes = [2, 128], strides = [1, 1]} : vector<2x512xf32> to vector<2x128xf32>
    %724 = arith.negf %723 : vector<2x128xf32>
    %725 = math.exp %724 : vector<2x128xf32>
    %cst_133 = arith.constant 1.000000e+00 : f32
    %726 = vector.broadcast %cst_133 : f32 to vector<2x128xf32>
    %727 = arith.addf %726, %725 : vector<2x128xf32>
    %728 = arith.divf %726, %727 : vector<2x128xf32>
    %729 = vector.extract_strided_slice %722 {offsets = [0, 128], sizes = [2, 128], strides = [1, 1]} : vector<2x512xf32> to vector<2x128xf32>
    %730 = arith.negf %729 : vector<2x128xf32>
    %731 = math.exp %730 : vector<2x128xf32>
    %cst_134 = arith.constant 1.000000e+00 : f32
    %732 = vector.broadcast %cst_134 : f32 to vector<2x128xf32>
    %733 = arith.addf %732, %731 : vector<2x128xf32>
    %734 = arith.divf %732, %733 : vector<2x128xf32>
    %735 = vector.extract_strided_slice %722 {offsets = [0, 256], sizes = [2, 128], strides = [1, 1]} : vector<2x512xf32> to vector<2x128xf32>
    %736 = math.tanh %735 : vector<2x128xf32>
    %737 = vector.extract_strided_slice %722 {offsets = [0, 384], sizes = [2, 128], strides = [1, 1]} : vector<2x512xf32> to vector<2x128xf32>
    %738 = arith.negf %737 : vector<2x128xf32>
    %739 = math.exp %738 : vector<2x128xf32>
    %cst_135 = arith.constant 1.000000e+00 : f32
    %740 = vector.broadcast %cst_135 : f32 to vector<2x128xf32>
    %741 = arith.addf %740, %739 : vector<2x128xf32>
    %742 = arith.divf %740, %741 : vector<2x128xf32>
    %743 = arith.mulf %734, %716 : vector<2x128xf32>
    %744 = arith.mulf %728, %736 : vector<2x128xf32>
    %745 = arith.addf %743, %744 : vector<2x128xf32>
    %746 = math.tanh %745 : vector<2x128xf32>
    %747 = arith.mulf %742, %746 : vector<2x128xf32>
    %c0_136 = arith.constant 0 : index
    %c0_137 = arith.constant 0 : index
    %748 = vector.load %arg6[%c0_136, %c0_137] : memref<1x128xf32, #tpu.memory_space<vmem>>, vector<1x128xf32>
    %749 = vector.broadcast %748 : vector<1x128xf32> to vector<2x128xf32>
    %750 = arith.mulf %747, %749 : vector<2x128xf32>
    %cst_138 = arith.constant dense<0.000000e+00> : vector<2xf32>
    %751 = vector.multi_reduction <add>, %750, %cst_138 [1] : vector<2x128xf32> to vector<2xf32>
    %752 = vector.shape_cast %751 : vector<2xf32> to vector<2x1xf32>
    %c0_139 = arith.constant 0 : index
    %c0_140 = arith.constant 0 : index
    %753 = vector.load %arg7[%c0_139, %c0_140] : memref<1x1xf32, #tpu.memory_space<vmem>>, vector<1x1xf32>
    %754 = vector.broadcast %753 : vector<1x1xf32> to vector<2x1xf32>
    %755 = arith.addf %752, %754 : vector<2x1xf32>
    %756 = arith.negf %755 : vector<2x1xf32>
    %757 = math.exp %756 : vector<2x1xf32>
    %cst_141 = arith.constant 1.000000e+00 : f32
    %758 = vector.broadcast %cst_141 : f32 to vector<2x1xf32>
    %759 = arith.addf %758, %757 : vector<2x1xf32>
    %760 = arith.divf %758, %759 : vector<2x1xf32>
    %761 = vector.shape_cast %760 : vector<2x1xf32> to vector<2x1xf32>
    %762 = vector.broadcast %761 : vector<2x1xf32> to vector<2x128xf32>
    %c0_142 = arith.constant 0 : index
    %c0_143 = arith.constant 0 : index
    %763 = vector.load %arg8[%c0_142, %c0_143] : memref<2x128xf32, #tpu.memory_space<vmem>>, vector<2x128xf32>
    tpu.vector_store %arg8[%c0_142, %c0_143], %762 {strides = array<i32>} : memref<2x128xf32, #tpu.memory_space<vmem>>, vector<2x128xf32>,
    return
  }
}

</mosaic_0001>

<bundles_post_ra>
// kernel: tpu_custom_call.1
= control target key start
LH: loop header
LB: loop body
LE: loop exit
PB: predicated region body
PF: predicated region fallthrough
CT: control target
= control target key end

     0   :  { %s7378_s0 = inlined_call_operand.hbm [shape: f32[48,128], index: 0, kind: input, shape index: {}]   ;;  %s7379_s1 = inlined_call_operand.hbm [shape: bf16[128,128], index: 1, kind: input, shape index: {}]   ;;  %s7380_s2 = inlined_call_operand.vmem [shape: f32[1,128], index: 2, kind: input, shape index: {}]   ;;  %s7381_s3 = inlined_call_operand.hbm [shape: bf16[3,128,512], index: 3, kind: input, shape index: {}]   ;;  %s7382_s4 = inlined_call_operand.hbm [shape: bf16[3,128,512], index: 4, kind: input, shape index: {}]   ;;  %s7383_s5 = inlined_call_operand.vmem [shape: f32[3,1,512], index: 5, kind: input, shape index: {}]   ;;  %s7384_s6 = inlined_call_operand.vmem [shape: f32[1,128], index: 6, kind: input, shape index: {}]   ;;  %s7385_s7 = inlined_call_operand.<no memory space> [shape: f32[1,1], index: 7, kind: input, shape index: {}]   ;;  %s7386_s8 = inlined_call_operand.hbm [shape: f32[2,128], index: 8, kind: output, shape index: {}]  }
   0x1   :  { %v13_v0 = vstv %s7385_s7 }
   0x2   :  { %14 = vst [vmem:[#allocation2] sm:$0x1] %v13_v0 }
   0x3   :  { %15 = vsyncpa [#allocation4], 0 }
   0x4   :  { %16 = vsyncpa [#allocation7], 0 }
   0x5   :  { %17 = vsyncpa [#allocation10], 0 }
   0x6   :  { %18 = vsyncpa [#allocation5], 0  ;;  %s5999_s29 = smov [#allocation6]   ;;  %s5881_s11 = scalar_lea.hbm %s7379_s1, 1024 }
   0x7   :  { %s36_s30 = sshll.u32 %s5999_s29, 4  ;;  %p5882_p0 = scmp.ne.s32.totalorder %s7379_s1, %s5881_s11  ;;  %s37_s30 = int_to_ptr.vmem [resolvable:$true] %s36_s30 }
   0x8   :  { %p5885_p1 = scmp.lt.u32.totalorder %s5881_s11, %s7379_s1 }
   0xa   :  { %p5887_p2 = pnand %p5885_p1, %p5882_p0 }
   0xc   :  { %5890 = shalt.err (!%p5887_p2)
}
   0xd   :  { %s5891_s7 = scalar_lea.vmem %s37_s30, 1024  ;;  %p5896_p4 = scmp.lt.s32.totalorder %s37_s30, %s37_s30 }
   0xe   :  { %p5892_p3 = scmp.ne.s32.totalorder %s37_s30, %s5891_s7  ;;  %p5897_p5 = scmp.lt.s32.totalorder %s5891_s7, %s5891_s7 }
  0x10   :  { %p5898_p6 = por %p5897_p5, %p5896_p4 }
  0x12   :  { %p5899_p7 = pnand %p5898_p6, %p5892_p3 }
  0x14   :  { %5902 = shalt.err (!%p5899_p7)
}
  0x15   :  { %s6000_s16 = smov 64   ;;  %s6001_s17 = smov 4  }
  0x16   :  { %42 = dma.hbm_to_vmem [thread:$0]  %s7379_s1, 1024, %s37_s30, [#allocation7], %s6000_s16, %s6000_s16, %s6001_s17  }
  0x17   :  { %s6002_s20 = smov [#allocation3]   ;;  %s5903_s24 = scalar_lea.hbm %s7378_s0, 768 }
  0x18   :  { %s24_s21 = sshll.u32 %s6002_s20, 4  ;;  %p5904_p8 = scmp.ne.s32.totalorder %s7378_s0, %s5903_s24  ;;  %s25_s21 = int_to_ptr.vmem [resolvable:$true] %s24_s21 }
  0x19   :  { %p5907_p9 = scmp.lt.u32.totalorder %s5903_s24, %s7378_s0 }
  0x1b   :  { %p5909_p10 = pnand %p5907_p9, %p5904_p8 }
  0x1d   :  { %5912 = shalt.err (!%p5909_p10)
}
  0x1e   :  { %s5913_s29 = scalar_lea.vmem %s25_s21, 768  ;;  %p5918_p12 = scmp.lt.s32.totalorder %s25_s21, %s25_s21 }
  0x1f   :  { %p5914_p11 = scmp.ne.s32.totalorder %s25_s21, %s5913_s29  ;;  %p5919_p13 = scmp.lt.s32.totalorder %s5913_s29, %s5913_s29 }
  0x21   :  { %p5920_p0 = por %p5919_p13, %p5918_p12 }
  0x23   :  { %p5921_p1 = pnand %p5920_p0, %p5914_p11 }
  0x25   :  { %5924 = shalt.err (!%p5921_p1)
}
  0x26   :  { %s6003_s1 = smov 128   ;;  %s6004_s30 = smov 8  }
  0x27   :  { %30 = dma.hbm_to_vmem [thread:$0]  %s7378_s0, 768, %s25_s21, [#allocation4], %s6003_s1, %s6003_s1, %s6004_s30  }
  0x28   :  { %s6005_s11 = smov [#allocation8]   ;;  %s5925_s15 = scalar_lea.hbm %s7381_s3, 12288 }
  0x29   :  { %s50_s12 = sshll.u32 %s6005_s11, 4  ;;  %p5926_p2 = scmp.ne.s32.totalorder %s7381_s3, %s5925_s15  ;;  %s51_s12 = int_to_ptr.vmem [resolvable:$true] %s50_s12 }
  0x2a   :  { %p5929_p3 = scmp.lt.u32.totalorder %s5925_s15, %s7381_s3 }
  0x2c   :  { %p5931_p4 = pnand %p5929_p3, %p5926_p2 }
  0x2e   :  { %5934 = shalt.err (!%p5931_p4)
}
  0x2f   :  { %s5935_s19 = scalar_lea.vmem %s51_s12, 12288  ;;  %p5940_p6 = scmp.lt.s32.totalorder %s51_s12, %s51_s12 }
  0x30   :  { %p5936_p5 = scmp.ne.s32.totalorder %s51_s12, %s5935_s19  ;;  %p5941_p7 = scmp.lt.s32.totalorder %s5935_s19, %s5935_s19 }
  0x32   :  { %p5942_p8 = por %p5941_p7, %p5940_p6 }
  0x34   :  { %p5943_p9 = pnand %p5942_p8, %p5936_p5 }
  0x36   :  { %5946 = shalt.err (!%p5943_p9)
}
  0x37   :  { %s6006_s0 = smov 256   ;;  %s6007_s20 = smov 16  }
  0x38   :  { %56 = dma.hbm_to_vmem [thread:$0]  %s7381_s3, 12288, %s51_s12, [#allocation7], %s6006_s0, %s6006_s0, %s6007_s20  }
  0x39   :  { %s6008_s23 = smov [#allocation9]   ;;  %s5947_s27 = scalar_lea.hbm %s7382_s4, 12288 }
  0x3a   :  { %s62_s24 = sshll.u32 %s6008_s23, 4  ;;  %p5948_p10 = scmp.ne.s32.totalorder %s7382_s4, %s5947_s27  ;;  %s63_s24 = int_to_ptr.vmem [resolvable:$true] %s62_s24 }
  0x3b   :  { %p5951_p11 = scmp.lt.u32.totalorder %s5947_s27, %s7382_s4 }
  0x3d   :  { %p5953_p12 = pnand %p5951_p11, %p5948_p10 }
  0x3f   :  { %5956 = shalt.err (!%p5953_p12)
}
  0x40   :  { %s5957_s9 = scalar_lea.vmem %s63_s24, 12288  ;;  %p5962_p0 = scmp.lt.s32.totalorder %s63_s24, %s63_s24 }
  0x41   :  { %p5958_p13 = scmp.ne.s32.totalorder %s63_s24, %s5957_s9  ;;  %p5963_p1 = scmp.lt.s32.totalorder %s5957_s9, %s5957_s9 }
  0x43   :  { %p5964_p2 = por %p5963_p1, %p5962_p0 }
  0x45   :  { %p5965_p3 = pnand %p5964_p2, %p5958_p13 }
  0x47   :  { %5968 = shalt.err (!%p5965_p3)
}
  0x48   :  { %68 = dma.hbm_to_vmem [thread:$0]  %s7382_s4, 12288, %s63_s24, [#allocation10], %s6006_s0, %s6006_s0, %s6007_s20  }
  0x49   :  { %5991 = dma.done.wait [#allocation4], 768  }
  0x4a   :  { %5992 = vsyncadd [#allocation4], 4294966528 }
  0x4b   :  { %5993 = dma.done.wait [#allocation7], 13312  }
  0x4c   :  { %5994 = vsyncadd [#allocation7], 4294953984 }
  0x4d   :  { %5995 = dma.done.wait [#allocation10], 12288  }
  0x4e   :  { %5996 = vsyncadd [#allocation10], 4294955008  ;;  %v6009_v1 = vmov 0.0   ;;  %vm6010_vm0 = vmmov 0   ;;  %v5101_v2 = vld [vmem:[#allocation6] sm:$0xff]   ;;  %v5102_v3 = vld [vmem:[#allocation6 + $0x8] sm:$0xff]  }
  0x4f   :  { %5058 = vmatprep.subr.bf16.mxu0 %v6009_v1  ;;  %5074 = vmatprep.mubr.msk.bf16.mxu0 %vm6010_vm0, %v6009_v1  ;;  %v5103_v4 = vld [vmem:[#allocation6 + $0x10] sm:$0xff]   ;;  %v5104_v5 = vld [vmem:[#allocation6 + $0x18] sm:$0xff]   ;;  %v5105_v9 = vld [vmem:[#allocation6 + $0x20] sm:$0xff]   ;;  %v7387_v53 = vmov 0   ;;  %vm1723_vm1 = vcmask 1041408   ;;  %vm1725_vm2 = vcmask 1043456  }
  0x50   :  { %5059 = vmatpush3.bf16.msra.mxu0 %v5101_v2  ;;  %v5109_v6 = vld [vmem:[#allocation8 + $0x4] ss:$16 sps:$4 sm:$0xff]   ;;  %v5114_v7 = vld [vmem:[#allocation8] ss:$16 sps:$4 sm:$0xff]   ;;  %v5106_v11 = vld [vmem:[#allocation6 + $0x28] sm:$0xff]   ;;  %482 = vmatprep.mubr.bf16.mxu1 %v7387_v53  ;;  %vm1727_vm3 = vcmask 1045504  }
  0x51   :  { %5060 = vmatprep.subr.bf16.mxu0 %v6009_v1  ;;  %450 = vmatprep.subr.bf16.mxu1 %v5109_v6  ;;  %v5115_v8 = vld [vmem:[#allocation8 + $0x24] ss:$16 sps:$4 sm:$0xff]   ;;  %v5120_v10 = vld [vmem:[#allocation8 + $0x20] ss:$16 sps:$4 sm:$0xff]   ;;  %v5108_v13 = vld [vmem:[#allocation6 + $0x38] sm:$0xff]   ;;  %vm4728_vm4 = vcmask 1047558  }
  0x52   :  { %451 = vmatpush1.bf16.msra.mxu1 %v5114_v7  ;;  %v5107_v12 = vld [vmem:[#allocation6 + $0x30] sm:$0xff]   ;;  %v89_v15 = vld [vmem:[#allocation3 + $0x8] sm:$0xff]  ;;  %v90_v20 = vld [vmem:[#allocation3 + $0x10] sm:$0xff]  ;;  %5100 = vset.pattern.permute.xlu0 %v7387_v53  ;;  %s6012_s17 = smov [#allocation11]  }
  0x53   :  { %452 = vmatprep.subr.bf16.mxu1 %v5115_v8  ;;  %v88_v14 = vld [vmem:[#allocation3] sm:$0xff]  ;;  %v5113_v16 = vld [vmem:[#allocation8 + $0xc] ss:$16 sps:$4 sm:$0xff]   ;;  %v5111_v17 = vld [vmem:[#allocation8 + $0x8] ss:$16 sps:$4 sm:$0xff]   ;;  %s4758_s18 = sshll.u32 %s6012_s17, 4  ;;  %s4759_s18 = int_to_ptr.vmem [resolvable:$true] %s4758_s18 }
  0x54   :  { %5061 = vmatpush3.bf16.msra.mxu0 %v5102_v3  ;;  %v94_v18 = vpack.c.bf16 %v89_v15, %v88_v14  ;;  %v5119_v19 = vld [vmem:[#allocation8 + $0x2c] ss:$16 sps:$4 sm:$0xff]   ;;  %v5117_v22 = vld [vmem:[#allocation8 + $0x28] ss:$16 sps:$4 sm:$0xff]   ;;  %v92_v24 = vld [vmem:[#allocation3 + $0x20] sm:$0xff]  ;;  %p5974_p5 = scmp.lt.s32.totalorder %s4759_s18, %s4759_s18 }
  0x55   :  { %5062 = vmatprep.subr.bf16.mxu0 %v6009_v1  ;;  %v91_v21 = vld [vmem:[#allocation3 + $0x18] sm:$0xff]  ;;  %v93_v25 = vld [vmem:[#allocation3 + $0x28] sm:$0xff]  ;;  %v5121_v27 = vld [vmem:[#allocation8 + $0x44] ss:$16 sps:$4 sm:$0xff]  }
  0x56   :  { %453 = vmatpush1.bf16.msra.mxu1 %v5120_v10  ;;  %v95_v23 = vpack.c.bf16 %v91_v21, %v90_v20  ;;  %v96_v26 = vpack.c.bf16 %v93_v25, %v92_v24  ;;  %v5125_v28 = vld [vmem:[#allocation8 + $0x4c] ss:$16 sps:$4 sm:$0xff]   ;;  %v5123_v29 = vld [vmem:[#allocation8 + $0x48] ss:$16 sps:$4 sm:$0xff]   ;;  %v5126_v30 = vld [vmem:[#allocation8 + $0x40] ss:$16 sps:$4 sm:$0xff]  }
  0x57   :  { %454 = vmatprep.subr.bf16.mxu1 %v5121_v27  ;;  %v5127_v31 = vld [vmem:[#allocation8 + $0x64] ss:$16 sps:$4 sm:$0xff]   ;;  %v5131_v32 = vld [vmem:[#allocation8 + $0x6c] ss:$16 sps:$4 sm:$0xff]   ;;  %v5129_v33 = vld [vmem:[#allocation8 + $0x68] ss:$16 sps:$4 sm:$0xff]  }
  0x58   :  { %5063 = vmatpush3.bf16.msra.mxu0 %v5103_v4  ;;  %v5132_v34 = vld [vmem:[#allocation8 + $0x60] ss:$16 sps:$4 sm:$0xff]   ;;  %v5133_v35 = vld [vmem:[#allocation8 + $0x84] ss:$16 sps:$4 sm:$0xff]   ;;  %v5137_v36 = vld [vmem:[#allocation8 + $0x8c] ss:$16 sps:$4 sm:$0xff]  }
  0x59   :  { %5064 = vmatprep.subr.bf16.mxu0 %v6009_v1  ;;  %v5135_v37 = vld [vmem:[#allocation8 + $0x88] ss:$16 sps:$4 sm:$0xff]   ;;  %v5138_v38 = vld [vmem:[#allocation8 + $0x80] ss:$16 sps:$4 sm:$0xff]   ;;  %v5139_v39 = vld [vmem:[#allocation8 + $0xa4] ss:$16 sps:$4 sm:$0xff]  }
  0x5a   :  { %455 = vmatpush1.bf16.msra.mxu1 %v5126_v30  ;;  %v5143_v40 = vld [vmem:[#allocation8 + $0xac] ss:$16 sps:$4 sm:$0xff]   ;;  %v5141_v41 = vld [vmem:[#allocation8 + $0xa8] ss:$16 sps:$4 sm:$0xff]   ;;  %v5144_v42 = vld [vmem:[#allocation8 + $0xa0] ss:$16 sps:$4 sm:$0xff]  }
  0x5b   :  { %456 = vmatprep.subr.bf16.mxu1 %v5127_v31  ;;  %v5145_v43 = vld [vmem:[#allocation8 + $0xc4] ss:$16 sps:$4 sm:$0xff]   ;;  %v5149_v44 = vld [vmem:[#allocation8 + $0xcc] ss:$16 sps:$4 sm:$0xff]   ;;  %v5147_v45 = vld [vmem:[#allocation8 + $0xc8] ss:$16 sps:$4 sm:$0xff]  }
  0x5c   :  { %5065 = vmatpush3.bf16.msra.mxu0 %v5104_v5  ;;  %v5150_v46 = vld [vmem:[#allocation8 + $0xc0] ss:$16 sps:$4 sm:$0xff]   ;;  %v5151_v47 = vld [vmem:[#allocation8 + $0xe4] ss:$16 sps:$4 sm:$0xff]   ;;  %v5155_v48 = vld [vmem:[#allocation8 + $0xec] ss:$16 sps:$4 sm:$0xff]  }
  0x5d   :  { %5066 = vmatprep.subr.bf16.mxu0 %v6009_v1  ;;  %v5153_v49 = vld [vmem:[#allocation8 + $0xe8] ss:$16 sps:$4 sm:$0xff]   ;;  %v5156_v50 = vld [vmem:[#allocation8 + $0xe0] ss:$16 sps:$4 sm:$0xff]   ;;  %v6112_v51 = vld [vmem:[#allocation9 + $0x4] ss:$16 sps:$4 sm:$0xff]  }
  0x5e   :  { %457 = vmatpush1.bf16.msra.mxu1 %v5132_v34  ;;  %v6114_v52 = vld [vmem:[#allocation9 + $0xc] ss:$16 sps:$4 sm:$0xff]   ;;  %v6126_v20 = vld [vmem:[#allocation9 + $0x8] ss:$16 sps:$4 sm:$0xff]   ;;  %v6134_v24 = vld [vmem:[#allocation9 + $0x20] ss:$16 sps:$4 sm:$0xff]  }
  0x5f   :  { %458 = vmatprep.subr.bf16.mxu1 %v5133_v35  ;;  %v4769_v58 = vld [vmem:[%s7380_s2] ss:$0 sm:$0xff]  ;;  %v6136_v25 = vld [vmem:[#allocation9 + $0x28] ss:$16 sps:$4 sm:$0xff]   ;;  %v6154_v30 = vld [vmem:[#allocation9 + $0x64] ss:$16 sps:$4 sm:$0xff]  }
  0x60   :  { %5067 = vmatpush3.bf16.msra.mxu0 %v5105_v9  ;;  %v6142_v27 = vld [vmem:[#allocation9 + $0x4c] ss:$16 sps:$4 sm:$0xff]   ;;  %v6166_v34 = vld [vmem:[#allocation9 + $0x84] ss:$16 sps:$4 sm:$0xff]  }
  0x61   :  { %5068 = vmatprep.subr.bf16.mxu0 %v6009_v1  ;;  %v6156_v31 = vld [vmem:[#allocation9 + $0x6c] ss:$16 sps:$4 sm:$0xff]  }
  0x62   :  { %459 = vmatpush1.bf16.msra.mxu1 %v5138_v38  ;;  %v6168_v35 = vld [vmem:[#allocation9 + $0x8c] ss:$16 sps:$4 sm:$0xff]   ;;  %v6178_v38 = vld [vmem:[#allocation9 + $0xa4] ss:$16 sps:$4 sm:$0xff]  }
  0x63   :  { %460 = vmatprep.subr.bf16.mxu1 %v5139_v39  ;;  %v6180_v39 = vld [vmem:[#allocation9 + $0xac] ss:$16 sps:$4 sm:$0xff]  }
  0x64   :  { %5069 = vmatpush3.bf16.msra.mxu0 %v5106_v11 }
  0x65   :  { %5070 = vmatprep.subr.bf16.mxu0 %v6009_v1 }
  0x66   :  { %461 = vmatpush1.bf16.msra.mxu1 %v5144_v42  ;;  %v6190_v42 = vld [vmem:[#allocation9 + $0xc4] ss:$16 sps:$4 sm:$0xff]  }
  0x67   :  { %462 = vmatprep.subr.bf16.mxu1 %v5145_v43  ;;  %v6192_v43 = vld [vmem:[#allocation9 + $0xcc] ss:$16 sps:$4 sm:$0xff]  }
  0x68   :  { %5071 = vmatpush3.bf16.msra.mxu0 %v5107_v12 }
  0x69   :  { %5072 = vmatprep.subr.bf16.mxu0 %v6009_v1 }
  0x6a   :  { %463 = vmatpush1.bf16.msra.mxu1 %v5150_v46  ;;  %v6202_v46 = vld [vmem:[#allocation9 + $0xe4] ss:$16 sps:$4 sm:$0xff]  }
  0x6b   :  { %464 = vmatprep.subr.bf16.mxu1 %v5151_v47  ;;  %v6204_v47 = vld [vmem:[#allocation9 + $0xec] ss:$16 sps:$4 sm:$0xff]  }
  0x6c   :  { %5073 = vmatpush3.bf16.msra.mxu0 %v5108_v13 }
  0x6d   :  { %493 = vmatprep.subr.bf16.mxu0 %v5113_v16 }
  0x6e   :  { %465 = vmatpush1.bf16.msra.mxu1 %v5156_v50  ;;  %v270_v50 = vlaneseq }
  0x6f   :  { %5075 = vmatmul.mubr.bf16.vlgmr.msra.gmra.mrb[0].mxu0 %v94_v18  ;;  %728 = vmatprep.subr.bf16.mxu1 %v6112_v51 }
  0x70   :  { %5078 = vmatprep.mubr.msk.bf16.mxu0 %vm6010_vm0, %v6009_v1  ;;  %494 = vmatpush1.bf16.msra.mxu0 %v5111_v17 }
  0x71   :  { %495 = vmatprep.subr.bf16.mxu0 %v5119_v19  ;;  %v6124_v19 = vld [vmem:[#allocation9] ss:$16 sps:$4 sm:$0xff]  }
  0x74   :  { %496 = vmatpush1.bf16.msra.mxu0 %v5117_v22  ;;  %v6128_v22 = vld [vmem:[#allocation9 + $0x24] ss:$16 sps:$4 sm:$0xff]  }
  0x75   :  { %497 = vmatprep.subr.bf16.mxu0 %v5125_v28  ;;  %v6148_v28 = vld [vmem:[#allocation9 + $0x40] ss:$16 sps:$4 sm:$0xff]  }
  0x77   :  { %5079 = vmatmul.mubr.bf16.gmra.mrb[4].mxu0 %v95_v23  ;;  %v6130_v23 = vld [vmem:[#allocation9 + $0x2c] ss:$16 sps:$4 sm:$0xff]  }
  0x78   :  { %5082 = vmatprep.mubr.msk.bf16.mxu0 %vm6010_vm0, %v6009_v1  ;;  %498 = vmatpush1.bf16.msra.mxu0 %v5123_v29  ;;  %v6150_v29 = vld [vmem:[#allocation9 + $0x48] ss:$16 sps:$4 sm:$0xff]  }
  0x79   :  { %499 = vmatprep.subr.bf16.mxu0 %v5131_v32  ;;  %v6160_v32 = vld [vmem:[#allocation9 + $0x60] ss:$16 sps:$4 sm:$0xff]  }
  0x7c   :  { %500 = vmatpush1.bf16.msra.mxu0 %v5129_v33  ;;  %v6162_v33 = vld [vmem:[#allocation9 + $0x68] ss:$16 sps:$4 sm:$0xff]  }
  0x7d   :  { %501 = vmatprep.subr.bf16.mxu0 %v5137_v36  ;;  %v6172_v36 = vld [vmem:[#allocation9 + $0x80] ss:$16 sps:$4 sm:$0xff]  }
  0x7f   :  { %5083 = vmatmul.mubr.bf16.gmra.mrb[8].mxu0 %v96_v26  ;;  %v6140_v26 = vld [vmem:[#allocation9 + $0x44] ss:$16 sps:$4 sm:$0xff]  }
  0x80   :  { %502 = vmatpush1.bf16.msra.mxu0 %v5135_v37  ;;  %525 = vmatprep.mubr.bf16.mxu0 %v7387_v53  ;;  %v6174_v37 = vld [vmem:[#allocation9 + $0x88] ss:$16 sps:$4 sm:$0xff]  }
  0x81   :  { %503 = vmatprep.subr.bf16.mxu0 %v5143_v40  ;;  %v6184_v40 = vld [vmem:[#allocation9 + $0xa0] ss:$16 sps:$4 sm:$0xff]  }
  0x84   :  { %504 = vmatpush1.bf16.msra.mxu0 %v5141_v41  ;;  %v6186_v41 = vld [vmem:[#allocation9 + $0xa8] ss:$16 sps:$4 sm:$0xff]  }
  0x85   :  { %505 = vmatprep.subr.bf16.mxu0 %v5149_v44  ;;  %v6196_v44 = vld [vmem:[#allocation9 + $0xc0] ss:$16 sps:$4 sm:$0xff]  }
  0x88   :  { %506 = vmatpush1.bf16.msra.mxu0 %v5147_v45  ;;  %v6198_v45 = vld [vmem:[#allocation9 + $0xc8] ss:$16 sps:$4 sm:$0xff]  }
  0x89   :  { %507 = vmatprep.subr.bf16.mxu0 %v5155_v48  ;;  %v6208_v48 = vld [vmem:[#allocation9 + $0xe0] ss:$16 sps:$4 sm:$0xff]  }
  0x8c   :  { %508 = vmatpush1.bf16.msra.mxu0 %v5153_v49  ;;  %v6210_v49 = vld [vmem:[#allocation9 + $0xe8] ss:$16 sps:$4 sm:$0xff]  }
  0x8d   :  { %769 = vmatprep.subr.bf16.mxu0 %v6114_v52 }
 0x142   :  { %v202_v54 = vpop.f32.mrb[0].mxu0 }
 0x143   :  { %v5076_v55 = vpop.f32.mrb[1].mxu0  ;;  %v203_v59 = vadd.f32 %v4769_v58, %v202_v54  ;;  %v271_v54 = vshrl.u32 %v270_v50, 7 }
 0x144   :  { %v205_v56 = vpop.f32.mrb[2].mxu0 }
 0x145   :  { %v5077_v57 = vpop.f32.mrb[3].mxu0  ;;  %v206_v61 = vadd.f32 %v4769_v58, %v205_v56  ;;  %v225_v1 = vmax.f32 %v203_v59, 0.0  ;;  %v6254_v55 = vsub.s32 0, %v271_v54  ;;  %v6256_v56 = vsub.s32 2, %v271_v54 }
 0x146   :  { %v268_v57 = vld [vmem:[%s7383_s5] sm:$0xf]  ;;  %v6263_v59 = vsub.s32 3, %v271_v54 }
 0x147   :  { %v226_v5 = vmax.f32 %v206_v61, 0.0 }
 0x148   :  { %7394 = vst [vmem:[#allocation17_spill] sm:$0xff] %v6263_v59 }
 0x14a   :  { %v210_v60 = vpop.f32.mrb[4].mxu0 }
 0x14b   :  { %v211_v62 = vadd.f32 %v4769_v58, %v210_v60  ;;  %v5080_v63 = vpop.f32.mrb[5].mxu0 }
 0x14c   :  { %v213_v0 = vpop.f32.mrb[6].mxu0  ;;  %v281_v63 = vrot.slane %v268_v57, %v6256_v56 }
 0x14d   :  { %v227_v2 = vmax.f32 %v211_v62, 0.0  ;;  %v214_v3 = vadd.f32 %v4769_v58, %v213_v0  ;;  %v5081_v4 = vpop.f32.mrb[7].mxu0  ;;  %v273_v62 = vrot.slane %v268_v57, %v6254_v55 }
 0x14f   :  { %v231_v6 = vmax.f32 %v225_v1, %v227_v2  ;;  %v228_v7 = vmax.f32 %v214_v3, 0.0  ;;  %v285_v3 = vrot.slane %v268_v57, %v6263_v59 }
 0x151   :  { %v232_v8 = vmax.f32 %v226_v5, %v228_v7 }
 0x152   :  { %v218_v9 = vpop.f32.mrb[8].mxu0 }
 0x153   :  { %v219_v10 = vadd.f32 %v4769_v58, %v218_v9  ;;  %v5084_v11 = vpop.f32.mrb[9].mxu0 }
 0x154   :  { %v221_v12 = vpop.f32.mrb[10].mxu0 }
 0x155   :  { %v229_v13 = vmax.f32 %v219_v10, 0.0  ;;  %v222_v14 = vadd.f32 %v4769_v58, %v221_v12  ;;  %v5085_v15 = vpop.f32.mrb[11].mxu0  ;;  %v6261_v58 = vsub.s32 1, %v271_v54 }
 0x157   :  { %v233_v16 = vmax.f32 %v231_v6, %v229_v13  ;;  %v230_v17 = vmax.f32 %v222_v14, 0.0  ;;  %7393 = vst [vmem:[#allocation16_spill] sm:$0xff] %v6261_v58  ;;  %v277_v2 = vrot.slane %v268_v57, %v6261_v58 }
 0x159   :  { %v234_v18 = vmax.f32 %v232_v8, %v230_v17 }
 0x15b   :  { %v235_v21 = vpack.c.bf16 %v234_v18, %v233_v16 }
 0x15d   :  { %483 = vmatmul.mubr.bf16.vlgmr.msra.gmra.mrb[0].mxu1 %v235_v21  ;;  %526 = vmatmul.mubr.bf16.vlgmr.msra.gmra.mrb[12].mxu0 %v235_v21 }
 0x15e   :  { %729 = vmatpush1.bf16.msra.mxu1 %v6124_v19  ;;  %770 = vmatpush1.bf16.msra.mxu0 %v6126_v20 }
 0x15f   :  { %730 = vmatprep.subr.bf16.mxu1 %v6128_v22  ;;  %771 = vmatprep.subr.bf16.mxu0 %v6130_v23 }
 0x160   :  { %760 = vmatprep.mubr.bf16.mxu1 %v7387_v53  ;;  %801 = vmatprep.mubr.bf16.mxu0 %v7387_v53 }
 0x162   :  { %731 = vmatpush1.bf16.msra.mxu1 %v6134_v24  ;;  %772 = vmatpush1.bf16.msra.mxu0 %v6136_v25 }
 0x163   :  { %732 = vmatprep.subr.bf16.mxu1 %v6140_v26  ;;  %773 = vmatprep.subr.bf16.mxu0 %v6142_v27 }
 0x166   :  { %733 = vmatpush1.bf16.msra.mxu1 %v6148_v28  ;;  %774 = vmatpush1.bf16.msra.mxu0 %v6150_v29 }
 0x167   :  { %734 = vmatprep.subr.bf16.mxu1 %v6154_v30  ;;  %775 = vmatprep.subr.bf16.mxu0 %v6156_v31 }
 0x16a   :  { %735 = vmatpush1.bf16.msra.mxu1 %v6160_v32  ;;  %776 = vmatpush1.bf16.msra.mxu0 %v6162_v33 }
 0x16b   :  { %736 = vmatprep.subr.bf16.mxu1 %v6166_v34  ;;  %777 = vmatprep.subr.bf16.mxu0 %v6168_v35 }
 0x16e   :  { %737 = vmatpush1.bf16.msra.mxu1 %v6172_v36  ;;  %778 = vmatpush1.bf16.msra.mxu0 %v6174_v37 }
 0x16f   :  { %738 = vmatprep.subr.bf16.mxu1 %v6178_v38  ;;  %779 = vmatprep.subr.bf16.mxu0 %v6180_v39 }
 0x172   :  { %739 = vmatpush1.bf16.msra.mxu1 %v6184_v40  ;;  %780 = vmatpush1.bf16.msra.mxu0 %v6186_v41 }
 0x173   :  { %740 = vmatprep.subr.bf16.mxu1 %v6190_v42  ;;  %781 = vmatprep.subr.bf16.mxu0 %v6192_v43 }
 0x176   :  { %741 = vmatpush1.bf16.msra.mxu1 %v6196_v44  ;;  %782 = vmatpush1.bf16.msra.mxu0 %v6198_v45 }
 0x177   :  { %742 = vmatprep.subr.bf16.mxu1 %v6202_v46  ;;  %783 = vmatprep.subr.bf16.mxu0 %v6204_v47 }
 0x17a   :  { %743 = vmatpush1.bf16.msra.mxu1 %v6208_v48  ;;  %784 = vmatpush1.bf16.msra.mxu0 %v6210_v49 }
 0x17b   :  { %839 = vmatprep.subr.bf16.mxu1 %v6112_v51  ;;  %880 = vmatprep.subr.bf16.mxu0 %v6114_v52 }
 0x17d   :  { %761 = vmatmul.mubr.bf16.vlgmr.msra.gmra.mrb[4].mxu1 %v7387_v53  ;;  %802 = vmatmul.mubr.bf16.vlgmr.msra.gmra.mrb[16].mxu0 %v7387_v53 }
 0x17e   :  { %840 = vmatpush1.bf16.msra.mxu1 %v6124_v19  ;;  %881 = vmatpush1.bf16.msra.mxu0 %v6126_v20 }
 0x17f   :  { %841 = vmatprep.subr.bf16.mxu1 %v6128_v22  ;;  %882 = vmatprep.subr.bf16.mxu0 %v6130_v23 }
 0x180   :  { %871 = vmatprep.mubr.bf16.mxu1 %v7387_v53  ;;  %912 = vmatprep.mubr.bf16.mxu0 %v7387_v53 }
 0x182   :  { %842 = vmatpush1.bf16.msra.mxu1 %v6134_v24  ;;  %883 = vmatpush1.bf16.msra.mxu0 %v6136_v25 }
 0x183   :  { %843 = vmatprep.subr.bf16.mxu1 %v6140_v26  ;;  %884 = vmatprep.subr.bf16.mxu0 %v6142_v27 }
 0x186   :  { %844 = vmatpush1.bf16.msra.mxu1 %v6148_v28  ;;  %885 = vmatpush1.bf16.msra.mxu0 %v6150_v29 }
 0x187   :  { %845 = vmatprep.subr.bf16.mxu1 %v6154_v30  ;;  %886 = vmatprep.subr.bf16.mxu0 %v6156_v31 }
 0x18a   :  { %846 = vmatpush1.bf16.msra.mxu1 %v6160_v32  ;;  %887 = vmatpush1.bf16.msra.mxu0 %v6162_v33 }
 0x18b   :  { %847 = vmatprep.subr.bf16.mxu1 %v6166_v34  ;;  %888 = vmatprep.subr.bf16.mxu0 %v6168_v35 }
 0x18e   :  { %848 = vmatpush1.bf16.msra.mxu1 %v6172_v36  ;;  %889 = vmatpush1.bf16.msra.mxu0 %v6174_v37 }
 0x18f   :  { %849 = vmatprep.subr.bf16.mxu1 %v6178_v38  ;;  %890 = vmatprep.subr.bf16.mxu0 %v6180_v39 }
 0x192   :  { %850 = vmatpush1.bf16.msra.mxu1 %v6184_v40  ;;  %891 = vmatpush1.bf16.msra.mxu0 %v6186_v41 }
 0x193   :  { %851 = vmatprep.subr.bf16.mxu1 %v6190_v42  ;;  %892 = vmatprep.subr.bf16.mxu0 %v6192_v43 }
 0x196   :  { %852 = vmatpush1.bf16.msra.mxu1 %v6196_v44  ;;  %893 = vmatpush1.bf16.msra.mxu0 %v6198_v45 }
 0x197   :  { %853 = vmatprep.subr.bf16.mxu1 %v6202_v46  ;;  %894 = vmatprep.subr.bf16.mxu0 %v6204_v47 }
 0x19a   :  { %854 = vmatpush1.bf16.msra.mxu1 %v6208_v48  ;;  %895 = vmatpush1.bf16.msra.mxu0 %v6210_v49 }
 0x19b   :  { %968 = vmatprep.subr.bf16.mxu1 %v6112_v51  ;;  %1009 = vmatprep.subr.bf16.mxu0 %v6114_v52 }
 0x230   :  { %v484_v60 = vpop.f32.mrb[0].mxu1  ;;  %v527_v61 = vpop.f32.mrb[12].mxu0 }
 0x231   :  { %v486_v0 = vpop.f32.mrb[1].mxu1  ;;  %v529_v1 = vpop.f32.mrb[13].mxu0  ;;  %v6277_v12 = vadd.f32 %v484_v60, %v273_v62 }
 0x232   :  { %v488_v4 = vpop.f32.mrb[2].mxu1  ;;  %v531_v5 = vpop.f32.mrb[14].mxu0  ;;  %v6279_v13 = vadd.f32 %v486_v0, %v277_v2 }
 0x233   :  { %v6269_v6 = vadd.f32 %v488_v4, %v273_v62  ;;  %v6271_v7 = vadd.f32 %v531_v5, %v281_v63  ;;  %v490_v8 = vpop.f32.mrb[3].mxu1  ;;  %v533_v9 = vpop.f32.mrb[15].mxu0  ;;  %v6286_v62 = vadd.f32 %v527_v61, %v281_v63 }
 0x234   :  { %v6273_v10 = vadd.f32 %v490_v8, %v277_v2  ;;  %v6275_v11 = vadd.f32 %v533_v9, %v285_v3  ;;  %v6283_v9 = vadd.f32 %v529_v1, %v285_v3 }
 0x250   :  { %v762_v14 = vpop.f32.mrb[4].mxu1  ;;  %v803_v15 = vpop.f32.mrb[16].mxu0 }
 0x251   :  { %v810_v16 = vadd.f32 %v762_v14, %v6277_v12  ;;  %v764_v17 = vpop.f32.mrb[5].mxu1  ;;  %v805_v18 = vpop.f32.mrb[17].mxu0  ;;  %v812_v2 = vadd.f32 %v803_v15, %v6286_v62 }
 0x252   :  { %v811_v21 = vadd.f32 %v764_v17, %v6279_v13  ;;  %v766_v50 = vpop.f32.mrb[6].mxu1  ;;  %v807_v54 = vpop.f32.mrb[18].mxu0  ;;  %v813_v60 = vadd.f32 %v805_v18, %v6283_v9 }
 0x253   :  { %v4842_v57 = vmul.f32 -1.442695, %v810_v16  ;;  %v767_v4 = vpop.f32.mrb[7].mxu1  ;;  %v808_v5 = vpop.f32.mrb[19].mxu0 }
 0x254   :  { %v4843_v8 = vmul.f32 -1.442695, %v811_v21  ;;  %v4844_v0 = vmul.f32 -1.442695, %v813_v60  ;;  %v7395_v5 = vmov 0  }
 0x255   :  { %5397 = vpow2.f32 %v4842_v57 }
 0x256   :  { %5399 = vpow2.f32 %v4843_v8 }
 0x257   :  { %5401 = vpow2.f32 %v4844_v0 }
 0x258   :  { %5403 = vtanh.f32 %v812_v2 }
 0x25f   :  { %v5398_v14 = vpop.eup %5397 }
 0x260   :  { %v5400_v53 = vpop.eup %5399  ;;  %v817_v17 = vadd.f32 1.0, %v5398_v14 }
 0x261   :  { %v823_v16 = vadd.f32 1.0, %v5400_v53  ;;  %v5402_v21 = vpop.eup %5401 }
 0x262   :  { %5405 = vrcp.f32 %v817_v17  ;;  %v5404_v50 = vpop.eup %5403  ;;  %v830_v57 = vadd.f32 1.0, %v5402_v21 }
 0x263   :  { %5407 = vrcp.f32 %v823_v16 }
 0x264   :  { %5409 = vrcp.f32 %v830_v57 }
 0x26c   :  { %v5406_v1 = vpop.eup %5405 }
 0x26d   :  { %v5408_v3 = vpop.eup %5407  ;;  %v834_v54 = vmul.f32 %v5406_v1, %v5404_v50 }
 0x26e   :  { %v833_v18 = vmul.f32 0.0, %v5408_v3  ;;  %v5410_v63 = vpop.eup %5409 }
 0x270   :  { %v6289_v61 = vadd.f32 %v834_v54, %v833_v18 }
 0x272   :  { %5411 = vtanh.f32 %v6289_v61 }
 0x27c   :  { %v5412_v15 = vpop.eup %5411 }
 0x27d   :  { %v6292_v4 = vmul.f32 %v5412_v15, %v5410_v63 }
 0x27f   :  { %v838_v53 = vpack.c.bf16 %v6292_v4, %v6292_v4 }
 0x281   :  { %872 = vmatmul.mubr.bf16.vlgmr.msra.gmra.mrb[8].mxu1 %v838_v53  ;;  %913 = vmatmul.mubr.bf16.vlgmr.msra.gmra.mrb[20].mxu0 %v838_v53 }
 0x282   :  { %969 = vmatpush1.bf16.msra.mxu1 %v6124_v19  ;;  %1010 = vmatpush1.bf16.msra.mxu0 %v6126_v20 }
 0x283   :  { %970 = vmatprep.subr.bf16.mxu1 %v6128_v22  ;;  %1011 = vmatprep.subr.bf16.mxu0 %v6130_v23 }
 0x284   :  { %1000 = vmatprep.mubr.bf16.mxu1 %v7395_v5  ;;  %1041 = vmatprep.mubr.bf16.mxu0 %v7395_v5 }
 0x286   :  { %971 = vmatpush1.bf16.msra.mxu1 %v6134_v24  ;;  %1012 = vmatpush1.bf16.msra.mxu0 %v6136_v25 }
 0x287   :  { %972 = vmatprep.subr.bf16.mxu1 %v6140_v26  ;;  %1013 = vmatprep.subr.bf16.mxu0 %v6142_v27 }
 0x28a   :  { %973 = vmatpush1.bf16.msra.mxu1 %v6148_v28  ;;  %1014 = vmatpush1.bf16.msra.mxu0 %v6150_v29 }
 0x28b   :  { %974 = vmatprep.subr.bf16.mxu1 %v6154_v30  ;;  %1015 = vmatprep.subr.bf16.mxu0 %v6156_v31 }
 0x28e   :  { %975 = vmatpush1.bf16.msra.mxu1 %v6160_v32  ;;  %1016 = vmatpush1.bf16.msra.mxu0 %v6162_v33 }
 0x28f   :  { %976 = vmatprep.subr.bf16.mxu1 %v6166_v34  ;;  %1017 = vmatprep.subr.bf16.mxu0 %v6168_v35 }
 0x292   :  { %977 = vmatpush1.bf16.msra.mxu1 %v6172_v36  ;;  %1018 = vmatpush1.bf16.msra.mxu0 %v6174_v37 }
 0x293   :  { %978 = vmatprep.subr.bf16.mxu1 %v6178_v38  ;;  %1019 = vmatprep.subr.bf16.mxu0 %v6180_v39 }
 0x296   :  { %979 = vmatpush1.bf16.msra.mxu1 %v6184_v40  ;;  %1020 = vmatpush1.bf16.msra.mxu0 %v6186_v41 }
 0x297   :  { %980 = vmatprep.subr.bf16.mxu1 %v6190_v42  ;;  %1021 = vmatprep.subr.bf16.mxu0 %v6192_v43 }
 0x29a   :  { %981 = vmatpush1.bf16.msra.mxu1 %v6196_v44  ;;  %1022 = vmatpush1.bf16.msra.mxu0 %v6198_v45 }
 0x29b   :  { %982 = vmatprep.subr.bf16.mxu1 %v6202_v46  ;;  %1023 = vmatprep.subr.bf16.mxu0 %v6204_v47 }
 0x29e   :  { %983 = vmatpush1.bf16.msra.mxu1 %v6208_v48  ;;  %1024 = vmatpush1.bf16.msra.mxu0 %v6210_v49 }
 0x29f   :  { %1097 = vmatprep.subr.bf16.mxu1 %v6112_v51  ;;  %1138 = vmatprep.subr.bf16.mxu0 %v6114_v52 }
 0x354   :  { %v873_v8 = vpop.f32.mrb[8].mxu1  ;;  %v914_v60 = vpop.f32.mrb[20].mxu0 }
 0x355   :  { %v925_v0 = vrot.slane %v873_v8, 6  ;;  %v875_v2 = vpop.f32.mrb[9].mxu1  ;;  %v916_v14 = vpop.f32.mrb[21].mxu0  ;;  %v927_v53 = vrot.slane %v914_v60, 6 }
 0x356   :  { %v926_v17 = vrot.slane %v875_v2, 6  ;;  %v877_v16 = vpop.f32.mrb[10].mxu1  ;;  %v918_v21 = vpop.f32.mrb[22].mxu0  ;;  %v928_v63 = vrot.slane %v916_v14, 6  ;;  %v957_v14 = vrot.slane %v6289_v61, 6 }
 0x357   :  { %v933_v50 = vadd.f32 %v925_v0, %v6277_v12  ;;  %v878_v1 = vpop.f32.mrb[11].mxu1  ;;  %v919_v3 = vpop.f32.mrb[23].mxu0  ;;  %v935_v59 = vadd.f32 %v927_v53, %v6286_v62 }
 0x358   :  { %v934_v54 = vadd.f32 %v926_v17, %v6279_v13  ;;  %v936_v15 = vadd.f32 %v928_v63, %v6283_v9 }
 0x359   :  { %v4845_v57 = vmul.f32 -1.442695, %v933_v50 }
 0x35a   :  { %v4846_v18 = vmul.f32 -1.442695, %v934_v54  ;;  %v4847_v8 = vmul.f32 -1.442695, %v936_v15 }
 0x35b   :  { %5413 = vpow2.f32 %v4845_v57 }
 0x35c   :  { %5415 = vpow2.f32 %v4846_v18 }
 0x35d   :  { %5417 = vpow2.f32 %v4847_v8 }
 0x35e   :  { %5419 = vtanh.f32 %v935_v59 }
 0x365   :  { %v5414_v2 = vpop.eup %5413 }
 0x366   :  { %v5416_v16 = vpop.eup %5415  ;;  %v940_v21 = vadd.f32 1.0, %v5414_v2 }
 0x367   :  { %v946_v0 = vadd.f32 1.0, %v5416_v16  ;;  %v5418_v17 = vpop.eup %5417 }
 0x368   :  { %5421 = vrcp.f32 %v940_v21  ;;  %v5420_v50 = vpop.eup %5419  ;;  %v953_v57 = vadd.f32 1.0, %v5418_v17 }
 0x369   :  { %5423 = vrcp.f32 %v946_v0 }
 0x36a   :  { %5425 = vrcp.f32 %v953_v57 }
 0x372   :  { %v5422_v1 = vpop.eup %5421 }
 0x373   :  { %v5424_v3 = vpop.eup %5423  ;;  %v960_v54 = vmul.f32 %v5422_v1, %v5420_v50 }
 0x374   :  { %v959_v60 = vmul.f32 %v5424_v3, %v957_v14  ;;  %v5426_v63 = vpop.eup %5425 }
 0x376   :  { %v6335_v18 = vadd.f32 %v960_v54, %v959_v60 }
 0x378   :  { %5427 = vtanh.f32 %v6335_v18 }
 0x382   :  { %v5428_v15 = vpop.eup %5427 }
 0x383   :  { %v6338_v59 = vmul.f32 %v5428_v15, %v5426_v63 }
 0x385   :  { %v964_v53 = vpack.c.bf16 %v6338_v59, %v6338_v59 }
 0x387   :  { %v966_v8 = vrot.slane %v964_v53, 1 }
 0x389   :  { %1001 = vmatmul.mubr.bf16.vlgmr.msra.gmra.mrb[12].mxu1 %v966_v8  ;;  %1042 = vmatmul.mubr.bf16.vlgmr.msra.gmra.mrb[24].mxu0 %v966_v8 }
 0x38a   :  { %1098 = vmatpush1.bf16.msra.mxu1 %v6124_v19  ;;  %1139 = vmatpush1.bf16.msra.mxu0 %v6126_v20 }
 0x38b   :  { %1099 = vmatprep.subr.bf16.mxu1 %v6128_v22  ;;  %1140 = vmatprep.subr.bf16.mxu0 %v6130_v23 }
 0x38c   :  { %1129 = vmatprep.mubr.bf16.mxu1 %v7395_v5  ;;  %1170 = vmatprep.mubr.bf16.mxu0 %v7395_v5 }
 0x38e   :  { %1100 = vmatpush1.bf16.msra.mxu1 %v6134_v24  ;;  %1141 = vmatpush1.bf16.msra.mxu0 %v6136_v25 }
 0x38f   :  { %1101 = vmatprep.subr.bf16.mxu1 %v6140_v26  ;;  %1142 = vmatprep.subr.bf16.mxu0 %v6142_v27 }
 0x392   :  { %1102 = vmatpush1.bf16.msra.mxu1 %v6148_v28  ;;  %1143 = vmatpush1.bf16.msra.mxu0 %v6150_v29 }
 0x393   :  { %1103 = vmatprep.subr.bf16.mxu1 %v6154_v30  ;;  %1144 = vmatprep.subr.bf16.mxu0 %v6156_v31 }
 0x396   :  { %1104 = vmatpush1.bf16.msra.mxu1 %v6160_v32  ;;  %1145 = vmatpush1.bf16.msra.mxu0 %v6162_v33 }
 0x397   :  { %1105 = vmatprep.subr.bf16.mxu1 %v6166_v34  ;;  %1146 = vmatprep.subr.bf16.mxu0 %v6168_v35 }
 0x39a   :  { %1106 = vmatpush1.bf16.msra.mxu1 %v6172_v36  ;;  %1147 = vmatpush1.bf16.msra.mxu0 %v6174_v37 }
 0x39b   :  { %1107 = vmatprep.subr.bf16.mxu1 %v6178_v38  ;;  %1148 = vmatprep.subr.bf16.mxu0 %v6180_v39 }
 0x39e   :  { %1108 = vmatpush1.bf16.msra.mxu1 %v6184_v40  ;;  %1149 = vmatpush1.bf16.msra.mxu0 %v6186_v41 }
 0x39f   :  { %1109 = vmatprep.subr.bf16.mxu1 %v6190_v42  ;;  %1150 = vmatprep.subr.bf16.mxu0 %v6192_v43 }
 0x3a2   :  { %1110 = vmatpush1.bf16.msra.mxu1 %v6196_v44  ;;  %1151 = vmatpush1.bf16.msra.mxu0 %v6198_v45 }
 0x3a3   :  { %1111 = vmatprep.subr.bf16.mxu1 %v6202_v46  ;;  %1152 = vmatprep.subr.bf16.mxu0 %v6204_v47 }
 0x3a6   :  { %1112 = vmatpush1.bf16.msra.mxu1 %v6208_v48  ;;  %1153 = vmatpush1.bf16.msra.mxu0 %v6210_v49 }
 0x3a7   :  { %1226 = vmatprep.subr.bf16.mxu1 %v6112_v51  ;;  %1267 = vmatprep.subr.bf16.mxu0 %v6114_v52 }
 0x45c   :  { %v1002_v61 = vpop.f32.mrb[12].mxu1  ;;  %v1043_v2 = vpop.f32.mrb[24].mxu0 }
 0x45d   :  { %v1054_v16 = vrot.slane %v1002_v61, 4  ;;  %v1004_v21 = vpop.f32.mrb[13].mxu1  ;;  %v1045_v0 = vpop.f32.mrb[25].mxu0  ;;  %v1056_v8 = vrot.slane %v1043_v2, 4 }
 0x45e   :  { %v1055_v17 = vrot.slane %v1004_v21, 4  ;;  %v1006_v50 = vpop.f32.mrb[14].mxu1  ;;  %v1047_v1 = vpop.f32.mrb[26].mxu0  ;;  %v1057_v15 = vrot.slane %v1045_v0, 4  ;;  %v1086_v0 = vrot.slane %v6335_v18, 6 }
 0x45f   :  { %v1062_v14 = vadd.f32 %v1054_v16, %v6277_v12  ;;  %v1007_v3 = vpop.f32.mrb[15].mxu1  ;;  %v1048_v54 = vpop.f32.mrb[27].mxu0  ;;  %v1064_v58 = vadd.f32 %v1056_v8, %v6286_v62  ;;  %v1724_v8 = vsel %vm1723_vm1, %v6292_v4, %v6338_v59 }
 0x460   :  { %v1063_v57 = vadd.f32 %v1055_v17, %v6279_v13  ;;  %v1065_v53 = vadd.f32 %v1057_v15, %v6283_v9 }
 0x461   :  { %v4848_v60 = vmul.f32 -1.442695, %v1062_v14 }
 0x462   :  { %v4849_v63 = vmul.f32 -1.442695, %v1063_v57  ;;  %v4850_v61 = vmul.f32 -1.442695, %v1065_v53 }
 0x463   :  { %5429 = vpow2.f32 %v4848_v60 }
 0x464   :  { %5431 = vpow2.f32 %v4849_v63 }
 0x465   :  { %5433 = vpow2.f32 %v4850_v61 }
 0x466   :  { %5435 = vtanh.f32 %v1064_v58 }
 0x46d   :  { %v5430_v21 = vpop.eup %5429 }
 0x46e   :  { %v5432_v50 = vpop.eup %5431  ;;  %v1069_v1 = vadd.f32 1.0, %v5430_v21 }
 0x46f   :  { %v1075_v16 = vadd.f32 1.0, %v5432_v50  ;;  %v5434_v17 = vpop.eup %5433 }
 0x470   :  { %5437 = vrcp.f32 %v1069_v1  ;;  %v5436_v14 = vpop.eup %5435  ;;  %v1082_v60 = vadd.f32 1.0, %v5434_v17 }
 0x471   :  { %5439 = vrcp.f32 %v1075_v16 }
 0x472   :  { %5441 = vrcp.f32 %v1082_v60 }
 0x47a   :  { %v5438_v3 = vpop.eup %5437 }
 0x47b   :  { %v5440_v54 = vpop.eup %5439  ;;  %v1089_v57 = vmul.f32 %v5438_v3, %v5436_v14 }
 0x47c   :  { %v1088_v2 = vmul.f32 %v5440_v54, %v1086_v0  ;;  %v5442_v15 = vpop.eup %5441 }
 0x47e   :  { %v6381_v63 = vadd.f32 %v1089_v57, %v1088_v2 }
 0x480   :  { %5443 = vtanh.f32 %v6381_v63 }
 0x48a   :  { %v5444_v58 = vpop.eup %5443 }
 0x48b   :  { %v1092_v53 = vmul.f32 %v5444_v58, %v5442_v15 }
 0x48d   :  { %v1093_v61 = vpack.c.bf16 %v1092_v53, %v1092_v53  ;;  %v6388_v18 = vsel %vm1725_vm2, %v1724_v8, %v1092_v53 }
 0x48f   :  { %v1095_v21 = vrot.slane %v1093_v61, 2 }
 0x491   :  { %1130 = vmatmul.mubr.bf16.vlgmr.msra.gmra.mrb[16].mxu1 %v1095_v21  ;;  %1171 = vmatmul.mubr.bf16.vlgmr.msra.gmra.mrb[28].mxu0 %v1095_v21 }
 0x492   :  { %1227 = vmatpush1.bf16.msra.mxu1 %v6124_v19  ;;  %1268 = vmatpush1.bf16.msra.mxu0 %v6126_v20 }
 0x493   :  { %1228 = vmatprep.subr.bf16.mxu1 %v6128_v22  ;;  %1269 = vmatprep.subr.bf16.mxu0 %v6130_v23 }
 0x494   :  { %1258 = vmatprep.mubr.bf16.mxu1 %v7395_v5  ;;  %1299 = vmatprep.mubr.bf16.mxu0 %v7395_v5 }
 0x496   :  { %1229 = vmatpush1.bf16.msra.mxu1 %v6134_v24  ;;  %1270 = vmatpush1.bf16.msra.mxu0 %v6136_v25 }
 0x497   :  { %1230 = vmatprep.subr.bf16.mxu1 %v6140_v26  ;;  %1271 = vmatprep.subr.bf16.mxu0 %v6142_v27 }
 0x49a   :  { %1231 = vmatpush1.bf16.msra.mxu1 %v6148_v28  ;;  %1272 = vmatpush1.bf16.msra.mxu0 %v6150_v29 }
 0x49b   :  { %1232 = vmatprep.subr.bf16.mxu1 %v6154_v30  ;;  %1273 = vmatprep.subr.bf16.mxu0 %v6156_v31 }
 0x49e   :  { %1233 = vmatpush1.bf16.msra.mxu1 %v6160_v32  ;;  %1274 = vmatpush1.bf16.msra.mxu0 %v6162_v33 }
 0x49f   :  { %1234 = vmatprep.subr.bf16.mxu1 %v6166_v34  ;;  %1275 = vmatprep.subr.bf16.mxu0 %v6168_v35 }
 0x4a2   :  { %1235 = vmatpush1.bf16.msra.mxu1 %v6172_v36  ;;  %1276 = vmatpush1.bf16.msra.mxu0 %v6174_v37 }
 0x4a3   :  { %1236 = vmatprep.subr.bf16.mxu1 %v6178_v38  ;;  %1277 = vmatprep.subr.bf16.mxu0 %v6180_v39 }
 0x4a6   :  { %1237 = vmatpush1.bf16.msra.mxu1 %v6184_v40  ;;  %1278 = vmatpush1.bf16.msra.mxu0 %v6186_v41 }
 0x4a7   :  { %1238 = vmatprep.subr.bf16.mxu1 %v6190_v42  ;;  %1279 = vmatprep.subr.bf16.mxu0 %v6192_v43 }
 0x4aa   :  { %1239 = vmatpush1.bf16.msra.mxu1 %v6196_v44  ;;  %1280 = vmatpush1.bf16.msra.mxu0 %v6198_v45 }
 0x4ab   :  { %1240 = vmatprep.subr.bf16.mxu1 %v6202_v46  ;;  %1281 = vmatprep.subr.bf16.mxu0 %v6204_v47 }
 0x4ae   :  { %1241 = vmatpush1.bf16.msra.mxu1 %v6208_v48  ;;  %1282 = vmatpush1.bf16.msra.mxu0 %v6210_v49 }
 0x4af   :  { %1340 = vmatprep.subr.bf16.mxu1 %v6112_v51  ;;  %1381 = vmatprep.subr.bf16.mxu0 %v6114_v52 }
 0x564   :  { %v1131_v4 = vpop.f32.mrb[16].mxu1  ;;  %v1172_v59 = vpop.f32.mrb[28].mxu0 }
 0x565   :  { %v1183_v50 = vrot.slane %v1131_v4, 2  ;;  %v1133_v1 = vpop.f32.mrb[17].mxu1  ;;  %v1174_v16 = vpop.f32.mrb[29].mxu0  ;;  %v1185_v8 = vrot.slane %v1172_v59, 2 }
 0x566   :  { %v1184_v17 = vrot.slane %v1133_v1, 2  ;;  %v1135_v14 = vpop.f32.mrb[18].mxu1  ;;  %v1176_v3 = vpop.f32.mrb[30].mxu0  ;;  %v1186_v58 = vrot.slane %v1174_v16, 2  ;;  %v1215_v16 = vrot.slane %v6381_v63, 6 }
 0x567   :  { %v1191_v0 = vadd.f32 %v1183_v50, %v6277_v12  ;;  %v1136_v54 = vpop.f32.mrb[19].mxu1  ;;  %v1177_v57 = vpop.f32.mrb[31].mxu0  ;;  %v1193_v21 = vadd.f32 %v1185_v8, %v6286_v62 }
 0x568   :  { %v1192_v60 = vadd.f32 %v1184_v17, %v6279_v13  ;;  %v1194_v53 = vadd.f32 %v1186_v58, %v6283_v9 }
 0x569   :  { %v4851_v2 = vmul.f32 -1.442695, %v1191_v0 }
 0x56a   :  { %v4852_v15 = vmul.f32 -1.442695, %v1192_v60  ;;  %v4853_v61 = vmul.f32 -1.442695, %v1194_v53 }
 0x56b   :  { %5445 = vpow2.f32 %v4851_v2 }
 0x56c   :  { %5447 = vpow2.f32 %v4852_v15 }
 0x56d   :  { %5449 = vpow2.f32 %v4853_v61 }
 0x56e   :  { %5451 = vtanh.f32 %v1193_v21 }
 0x575   :  { %v5446_v4 = vpop.eup %5445 }
 0x576   :  { %v5448_v1 = vpop.eup %5447  ;;  %v1198_v14 = vadd.f32 1.0, %v5446_v4 }
 0x577   :  { %v1204_v12 = vadd.f32 1.0, %v5448_v1  ;;  %v5450_v13 = vpop.eup %5449 }
 0x578   :  { %5453 = vrcp.f32 %v1198_v14  ;;  %v5452_v50 = vpop.eup %5451  ;;  %v1211_v9 = vadd.f32 1.0, %v5450_v13 }
 0x579   :  { %5455 = vrcp.f32 %v1204_v12 }
 0x57a   :  { %5457 = vrcp.f32 %v1211_v9 }
 0x582   :  { %v5454_v17 = vpop.eup %5453 }
 0x583   :  { %v5456_v3 = vpop.eup %5455  ;;  %v1218_v0 = vmul.f32 %v5454_v17, %v5452_v50 }
 0x584   :  { %v1217_v59 = vmul.f32 %v5456_v3, %v1215_v16  ;;  %v5458_v62 = vpop.eup %5457 }
 0x586   :  { %v6429_v54 = vadd.f32 %v1218_v0, %v1217_v59 }
 0x588   :  { %5459 = vtanh.f32 %v6429_v54 }
 0x592   :  { %v5460_v57 = vpop.eup %5459 }
 0x593   :  { %v1221_v60 = vmul.f32 %v5460_v57, %v5458_v62 }
 0x595   :  { %v1222_v2 = vpack.c.bf16 %v1221_v60, %v1221_v60  ;;  %v6434_v15 = vsel %vm1727_vm3, %v6388_v18, %v1221_v60  ;;  %v1332_v60 = vrot.slane %v6429_v54, 6 }
 0x597   :  { %v1224_v58 = vrot.slane %v1222_v2, 3 }
 0x599   :  { %1259 = vmatmul.mubr.bf16.vlgmr.msra.gmra.mrb[20].mxu1 %v1224_v58  ;;  %1300 = vmatmul.mubr.bf16.vlgmr.msra.gmra.mrb[32].mxu0 %v1224_v58 }
 0x59a   :  { %1341 = vmatpush1.bf16.msra.mxu1 %v6124_v19  ;;  %1382 = vmatpush1.bf16.msra.mxu0 %v6126_v20 }
 0x59b   :  { %1342 = vmatprep.subr.bf16.mxu1 %v6128_v22  ;;  %1383 = vmatprep.subr.bf16.mxu0 %v6130_v23 }
 0x59c   :  { %1372 = vmatprep.mubr.bf16.mxu1 %v7395_v5  ;;  %1413 = vmatprep.mubr.bf16.mxu0 %v7395_v5 }
 0x59e   :  { %1343 = vmatpush1.bf16.msra.mxu1 %v6134_v24  ;;  %1384 = vmatpush1.bf16.msra.mxu0 %v6136_v25 }
 0x59f   :  { %1344 = vmatprep.subr.bf16.mxu1 %v6140_v26  ;;  %1385 = vmatprep.subr.bf16.mxu0 %v6142_v27 }
 0x5a2   :  { %1345 = vmatpush1.bf16.msra.mxu1 %v6148_v28  ;;  %1386 = vmatpush1.bf16.msra.mxu0 %v6150_v29 }
 0x5a3   :  { %1346 = vmatprep.subr.bf16.mxu1 %v6154_v30  ;;  %1387 = vmatprep.subr.bf16.mxu0 %v6156_v31 }
 0x5a6   :  { %1347 = vmatpush1.bf16.msra.mxu1 %v6160_v32  ;;  %1388 = vmatpush1.bf16.msra.mxu0 %v6162_v33 }
 0x5a7   :  { %1348 = vmatprep.subr.bf16.mxu1 %v6166_v34  ;;  %1389 = vmatprep.subr.bf16.mxu0 %v6168_v35 }
 0x5aa   :  { %1349 = vmatpush1.bf16.msra.mxu1 %v6172_v36  ;;  %1390 = vmatpush1.bf16.msra.mxu0 %v6174_v37 }
 0x5ab   :  { %1350 = vmatprep.subr.bf16.mxu1 %v6178_v38  ;;  %1391 = vmatprep.subr.bf16.mxu0 %v6180_v39 }
 0x5ae   :  { %1351 = vmatpush1.bf16.msra.mxu1 %v6184_v40  ;;  %1392 = vmatpush1.bf16.msra.mxu0 %v6186_v41 }
 0x5af   :  { %1352 = vmatprep.subr.bf16.mxu1 %v6190_v42  ;;  %1393 = vmatprep.subr.bf16.mxu0 %v6192_v43 }
 0x5b2   :  { %1353 = vmatpush1.bf16.msra.mxu1 %v6196_v44  ;;  %1394 = vmatpush1.bf16.msra.mxu0 %v6198_v45 }
 0x5b3   :  { %1354 = vmatprep.subr.bf16.mxu1 %v6202_v46  ;;  %1395 = vmatprep.subr.bf16.mxu0 %v6204_v47 }
 0x5b6   :  { %1355 = vmatpush1.bf16.msra.mxu1 %v6208_v48  ;;  %1396 = vmatpush1.bf16.msra.mxu0 %v6210_v49 }
 0x5b7   :  { %1469 = vmatprep.subr.bf16.mxu1 %v6112_v51  ;;  %1510 = vmatprep.subr.bf16.mxu0 %v6114_v52 }
 0x66c   :  { %v1260_v63 = vpop.f32.mrb[20].mxu1  ;;  %v1301_v18 = vpop.f32.mrb[32].mxu0 }
 0x66d   :  { %v1308_v53 = vadd.f32 %v1260_v63, %v6269_v6  ;;  %v1262_v8 = vpop.f32.mrb[21].mxu1  ;;  %v1303_v61 = vpop.f32.mrb[33].mxu0  ;;  %v1310_v52 = vadd.f32 %v1301_v18, %v6271_v7 }
 0x66e   :  { %v1309_v21 = vadd.f32 %v1262_v8, %v6273_v10  ;;  %v1264_v4 = vpop.f32.mrb[22].mxu1  ;;  %v1305_v1 = vpop.f32.mrb[34].mxu0  ;;  %v1311_v51 = vadd.f32 %v1303_v61, %v6275_v11 }
 0x66f   :  { %v4854_v14 = vmul.f32 -1.442695, %v1308_v53  ;;  %v1265_v12 = vpop.f32.mrb[23].mxu1  ;;  %v1306_v13 = vpop.f32.mrb[35].mxu0 }
 0x670   :  { %v4855_v50 = vmul.f32 -1.442695, %v1309_v21  ;;  %v4856_v17 = vmul.f32 -1.442695, %v1311_v51 }
 0x671   :  { %5461 = vpow2.f32 %v4854_v14 }
 0x672   :  { %5463 = vpow2.f32 %v4855_v50 }
 0x673   :  { %5465 = vpow2.f32 %v4856_v17 }
 0x674   :  { %5467 = vtanh.f32 %v1310_v52 }
 0x67b   :  { %v5462_v16 = vpop.eup %5461 }
 0x67c   :  { %v5464_v3 = vpop.eup %5463  ;;  %v1315_v0 = vadd.f32 1.0, %v5462_v16  ;;  %v5787_v16 = vld [vmem:[#allocation9] ss:$16 sps:$4 sm:$0xff]  }
 0x67d   :  { %v1321_v9 = vadd.f32 1.0, %v5464_v3  ;;  %v5466_v59 = vpop.eup %5465  ;;  %v5788_v3 = vld [vmem:[#allocation9 + $0x8] ss:$16 sps:$4 sm:$0xff]  }
 0x67e   :  { %5469 = vrcp.f32 %v1315_v0  ;;  %v5468_v62 = vpop.eup %5467  ;;  %v1328_v63 = vadd.f32 1.0, %v5466_v59  ;;  %v5789_v0 = vld [vmem:[#allocation9 + $0x24] ss:$16 sps:$4 sm:$0xff]   ;;  %v5791_v59 = vld [vmem:[#allocation9 + $0x20] ss:$16 sps:$4 sm:$0xff]  }
 0x67f   :  { %5471 = vrcp.f32 %v1321_v9  ;;  %v5790_v9 = vld [vmem:[#allocation9 + $0x2c] ss:$16 sps:$4 sm:$0xff]  }
 0x680   :  { %5473 = vrcp.f32 %v1328_v63  ;;  %v5797_v63 = vld [vmem:[#allocation9 + $0x64] ss:$16 sps:$4 sm:$0xff]  }
 0x688   :  { %v5470_v57 = vpop.eup %5469 }
 0x689   :  { %v5472_v2 = vpop.eup %5471  ;;  %v1335_v58 = vmul.f32 %v5470_v57, %v5468_v62  ;;  %v5792_v62 = vld [vmem:[#allocation9 + $0x28] ss:$16 sps:$4 sm:$0xff]   ;;  %v5793_v57 = vld [vmem:[#allocation9 + $0x44] ss:$16 sps:$4 sm:$0xff]  }
 0x68a   :  { %v1334_v53 = vmul.f32 %v5472_v2, %v1332_v60  ;;  %v5474_v18 = vpop.eup %5473  ;;  %v5794_v60 = vld [vmem:[#allocation9 + $0x4c] ss:$16 sps:$4 sm:$0xff]   ;;  %v5795_v2 = vld [vmem:[#allocation9 + $0x40] ss:$16 sps:$4 sm:$0xff]  }
 0x68c   :  { %v6475_v8 = vadd.f32 %v1335_v58, %v1334_v53  ;;  %v5796_v58 = vld [vmem:[#allocation9 + $0x48] ss:$16 sps:$4 sm:$0xff]   ;;  %v5798_v53 = vld [vmem:[#allocation9 + $0x6c] ss:$16 sps:$4 sm:$0xff]  }
 0x68e   :  { %5475 = vtanh.f32 %v6475_v8 }
 0x698   :  { %v5476_v61 = vpop.eup %5475 }
 0x699   :  { %v6478_v21 = vmul.f32 %v5476_v61, %v5474_v18  ;;  %v5800_v18 = vld [vmem:[#allocation9 + $0x68] ss:$16 sps:$4 sm:$0xff]   ;;  %v5801_v61 = vld [vmem:[#allocation9 + $0x84] ss:$16 sps:$4 sm:$0xff]  }
 0x69b   :  { %v1339_v4 = vpack.c.bf16 %v6478_v21, %v6478_v21 }
 0x69d   :  { %1373 = vmatmul.mubr.bf16.vlgmr.msra.gmra.mrb[24].mxu1 %v1339_v4  ;;  %1414 = vmatmul.mubr.bf16.vlgmr.msra.gmra.mrb[36].mxu0 %v1339_v4  ;;  %v5802_v4 = vld [vmem:[#allocation9 + $0x8c] ss:$16 sps:$4 sm:$0xff]  }
 0x69e   :  { %1470 = vmatpush1.bf16.msra.mxu1 %v6124_v19  ;;  %1511 = vmatpush1.bf16.msra.mxu0 %v6126_v20  ;;  %v5785_v19 = vld [vmem:[#allocation9 + $0x4] ss:$16 sps:$4 sm:$0xff]   ;;  %v5786_v20 = vld [vmem:[#allocation9 + $0xc] ss:$16 sps:$4 sm:$0xff]  }
 0x69f   :  { %1471 = vmatprep.subr.bf16.mxu1 %v6128_v22  ;;  %1512 = vmatprep.subr.bf16.mxu0 %v6130_v23 }
 0x6a0   :  { %1501 = vmatprep.mubr.bf16.mxu1 %v7395_v5  ;;  %1542 = vmatprep.mubr.bf16.mxu0 %v7395_v5 }
 0x6a2   :  { %1472 = vmatpush1.bf16.msra.mxu1 %v6134_v24  ;;  %1513 = vmatpush1.bf16.msra.mxu0 %v6136_v25 }
 0x6a3   :  { %1473 = vmatprep.subr.bf16.mxu1 %v6140_v26  ;;  %1514 = vmatprep.subr.bf16.mxu0 %v6142_v27 }
 0x6a6   :  { %1474 = vmatpush1.bf16.msra.mxu1 %v6148_v28  ;;  %1515 = vmatpush1.bf16.msra.mxu0 %v6150_v29 }
 0x6a7   :  { %1475 = vmatprep.subr.bf16.mxu1 %v6154_v30  ;;  %1516 = vmatprep.subr.bf16.mxu0 %v6156_v31 }
 0x6aa   :  { %1476 = vmatpush1.bf16.msra.mxu1 %v6160_v32  ;;  %1517 = vmatpush1.bf16.msra.mxu0 %v6162_v33 }
 0x6ab   :  { %1477 = vmatprep.subr.bf16.mxu1 %v6166_v34  ;;  %1518 = vmatprep.subr.bf16.mxu0 %v6168_v35 }
 0x6ae   :  { %1478 = vmatpush1.bf16.msra.mxu1 %v6172_v36  ;;  %1519 = vmatpush1.bf16.msra.mxu0 %v6174_v37 }
 0x6af   :  { %1479 = vmatprep.subr.bf16.mxu1 %v6178_v38  ;;  %1520 = vmatprep.subr.bf16.mxu0 %v6180_v39 }
 0x6b2   :  { %1480 = vmatpush1.bf16.msra.mxu1 %v6184_v40  ;;  %1521 = vmatpush1.bf16.msra.mxu0 %v6186_v41 }
 0x6b3   :  { %1481 = vmatprep.subr.bf16.mxu1 %v6190_v42  ;;  %1522 = vmatprep.subr.bf16.mxu0 %v6192_v43 }
 0x6b6   :  { %1482 = vmatpush1.bf16.msra.mxu1 %v6196_v44  ;;  %1523 = vmatpush1.bf16.msra.mxu0 %v6198_v45 }
 0x6b7   :  { %1483 = vmatprep.subr.bf16.mxu1 %v6202_v46  ;;  %1524 = vmatprep.subr.bf16.mxu0 %v6204_v47 }
 0x6ba   :  { %1484 = vmatpush1.bf16.msra.mxu1 %v6208_v48  ;;  %1525 = vmatpush1.bf16.msra.mxu0 %v6210_v49  ;;  %v1458_v48 = vrot.slane %v6475_v8, 6  ;;  %v5799_v8 = vld [vmem:[#allocation9 + $0x60] ss:$16 sps:$4 sm:$0xff]  }
 0x6bb   :  { %1598 = vmatprep.subr.bf16.mxu1 %v5785_v19  ;;  %1639 = vmatprep.subr.bf16.mxu0 %v5786_v20  ;;  %v5803_v19 = vld [vmem:[#allocation9 + $0x80] ss:$16 sps:$4 sm:$0xff]   ;;  %v5804_v20 = vld [vmem:[#allocation9 + $0x88] ss:$16 sps:$4 sm:$0xff]  }
 0x770   :  { %v1374_v22 = vpop.f32.mrb[24].mxu1  ;;  %v1415_v23 = vpop.f32.mrb[36].mxu0 }
 0x771   :  { %v1426_v24 = vrot.slane %v1374_v22, 6  ;;  %v1376_v25 = vpop.f32.mrb[25].mxu1  ;;  %v1417_v26 = vpop.f32.mrb[37].mxu0  ;;  %v1428_v38 = vrot.slane %v1415_v23, 6  ;;  %v5805_v22 = vld [vmem:[#allocation9 + $0xa4] ss:$16 sps:$4 sm:$0xff]  }
 0x772   :  { %v1427_v27 = vrot.slane %v1376_v25, 6  ;;  %v1378_v28 = vpop.f32.mrb[26].mxu1  ;;  %v1419_v29 = vpop.f32.mrb[38].mxu0  ;;  %v1429_v36 = vrot.slane %v1417_v26, 6  ;;  %v5806_v23 = vld [vmem:[#allocation9 + $0xac] ss:$16 sps:$4 sm:$0xff]  }
 0x773   :  { %v1434_v30 = vadd.f32 %v1426_v24, %v6269_v6  ;;  %v1379_v31 = vpop.f32.mrb[27].mxu1  ;;  %v1420_v32 = vpop.f32.mrb[39].mxu0  ;;  %v1436_v40 = vadd.f32 %v1428_v38, %v6271_v7  ;;  %v5807_v24 = vld [vmem:[#allocation9 + $0xa0] ss:$16 sps:$4 sm:$0xff]   ;;  %v5808_v25 = vld [vmem:[#allocation9 + $0xa8] ss:$16 sps:$4 sm:$0xff]  }
 0x774   :  { %v1435_v33 = vadd.f32 %v1427_v27, %v6273_v10  ;;  %v1437_v37 = vadd.f32 %v1429_v36, %v6275_v11  ;;  %v5809_v26 = vld [vmem:[#allocation9 + $0xc4] ss:$16 sps:$4 sm:$0xff]   ;;  %v5810_v27 = vld [vmem:[#allocation9 + $0xcc] ss:$16 sps:$4 sm:$0xff]   ;;  %v5811_v28 = vld [vmem:[#allocation9 + $0xc0] ss:$16 sps:$4 sm:$0xff]  }
 0x775   :  { %v4857_v34 = vmul.f32 -1.442695, %v1434_v30  ;;  %v5812_v29 = vld [vmem:[#allocation9 + $0xc8] ss:$16 sps:$4 sm:$0xff]   ;;  %v5813_v30 = vld [vmem:[#allocation9 + $0xe4] ss:$16 sps:$4 sm:$0xff]  }
 0x776   :  { %v4858_v35 = vmul.f32 -1.442695, %v1435_v33  ;;  %v4859_v39 = vmul.f32 -1.442695, %v1437_v37  ;;  %v5814_v31 = vld [vmem:[#allocation9 + $0xec] ss:$16 sps:$4 sm:$0xff]  }
 0x777   :  { %5477 = vpow2.f32 %v4857_v34  ;;  %v5815_v32 = vld [vmem:[#allocation9 + $0xe0] ss:$16 sps:$4 sm:$0xff]   ;;  %v5816_v33 = vld [vmem:[#allocation9 + $0xe8] ss:$16 sps:$4 sm:$0xff]  }
 0x778   :  { %5479 = vpow2.f32 %v4858_v35 }
 0x779   :  { %5481 = vpow2.f32 %v4859_v39 }
 0x77a   :  { %5483 = vtanh.f32 %v1436_v40 }
 0x781   :  { %v5478_v41 = vpop.eup %5477 }
 0x782   :  { %v5480_v42 = vpop.eup %5479  ;;  %v1441_v43 = vadd.f32 1.0, %v5478_v41 }
 0x783   :  { %v1447_v44 = vadd.f32 1.0, %v5480_v42  ;;  %v5482_v45 = vpop.eup %5481 }
 0x784   :  { %5485 = vrcp.f32 %v1441_v43  ;;  %v5484_v46 = vpop.eup %5483  ;;  %v1454_v1 = vadd.f32 1.0, %v5482_v45 }
 0x785   :  { %5487 = vrcp.f32 %v1447_v44 }
 0x786   :  { %5489 = vrcp.f32 %v1454_v1 }
 0x78e   :  { %v5486_v47 = vpop.eup %5485 }
 0x78f   :  { %v5488_v49 = vpop.eup %5487  ;;  %v1461_v54 = vmul.f32 %v5486_v47, %v5484_v46 }
 0x790   :  { %v1460_v14 = vmul.f32 %v5488_v49, %v1458_v48  ;;  %v5490_v13 = vpop.eup %5489 }
 0x792   :  { %v6519_v12 = vadd.f32 %v1461_v54, %v1460_v14 }
 0x794   :  { %5491 = vtanh.f32 %v6519_v12 }
 0x79e   :  { %v5492_v50 = vpop.eup %5491 }
 0x79f   :  { %v6522_v51 = vmul.f32 %v5492_v50, %v5490_v13 }
 0x7a1   :  { %v1465_v17 = vpack.c.bf16 %v6522_v51, %v6522_v51 }
 0x7a3   :  { %v1467_v52 = vrot.slane %v1465_v17, 1 }
 0x7a5   :  { %1502 = vmatmul.mubr.bf16.vlgmr.msra.gmra.mrb[28].mxu1 %v1467_v52  ;;  %1543 = vmatmul.mubr.bf16.vlgmr.msra.gmra.mrb[40].mxu0 %v1467_v52 }
 0x7a6   :  { %1599 = vmatpush1.bf16.msra.mxu1 %v5787_v16  ;;  %1640 = vmatpush1.bf16.msra.mxu0 %v5788_v3 }
 0x7a7   :  { %1600 = vmatprep.subr.bf16.mxu1 %v5789_v0  ;;  %1641 = vmatprep.subr.bf16.mxu0 %v5790_v9  ;;  %v1587_v9 = vrot.slane %v6519_v12, 6 }
 0x7a8   :  { %1630 = vmatprep.mubr.bf16.mxu1 %v7395_v5  ;;  %1671 = vmatprep.mubr.bf16.mxu0 %v7395_v5 }
 0x7aa   :  { %1601 = vmatpush1.bf16.msra.mxu1 %v5791_v59  ;;  %1642 = vmatpush1.bf16.msra.mxu0 %v5792_v62 }
 0x7ab   :  { %1602 = vmatprep.subr.bf16.mxu1 %v5793_v57  ;;  %1643 = vmatprep.subr.bf16.mxu0 %v5794_v60 }
 0x7ae   :  { %1603 = vmatpush1.bf16.msra.mxu1 %v5795_v2  ;;  %1644 = vmatpush1.bf16.msra.mxu0 %v5796_v58 }
 0x7af   :  { %1604 = vmatprep.subr.bf16.mxu1 %v5797_v63  ;;  %1645 = vmatprep.subr.bf16.mxu0 %v5798_v53 }
 0x7b2   :  { %1605 = vmatpush1.bf16.msra.mxu1 %v5799_v8  ;;  %1646 = vmatpush1.bf16.msra.mxu0 %v5800_v18  ;;  %v1729_v8 = vsel %vm1723_vm1, %v6478_v21, %v6522_v51  ;;  %v5213_v21 = vld [vmem:[#allocation8 + $0x124] ss:$16 sps:$4 sm:$0xff]   ;;  %v5216_v51 = vld [vmem:[#allocation8 + $0x12c] ss:$16 sps:$4 sm:$0xff]  }
 0x7b3   :  { %1606 = vmatprep.subr.bf16.mxu1 %v5801_v61  ;;  %1647 = vmatprep.subr.bf16.mxu0 %v5802_v4  ;;  %v5207_v4 = vld [vmem:[#allocation8 + $0x104] ss:$16 sps:$4 sm:$0xff]  }
 0x7b6   :  { %1607 = vmatpush1.bf16.msra.mxu1 %v5803_v19  ;;  %1648 = vmatpush1.bf16.msra.mxu0 %v5804_v20  ;;  %v5210_v19 = vld [vmem:[#allocation8 + $0x10c] ss:$16 sps:$4 sm:$0xff]   ;;  %v5205_v20 = vld [vmem:[#allocation8 + $0x100] ss:$16 sps:$4 sm:$0xff]  }
 0x7b7   :  { %1608 = vmatprep.subr.bf16.mxu1 %v5805_v22  ;;  %1649 = vmatprep.subr.bf16.mxu0 %v5806_v23  ;;  %v5208_v22 = vld [vmem:[#allocation8 + $0x108] ss:$16 sps:$4 sm:$0xff]   ;;  %v5211_v23 = vld [vmem:[#allocation8 + $0x120] ss:$16 sps:$4 sm:$0xff]  }
 0x7ba   :  { %1609 = vmatpush1.bf16.msra.mxu1 %v5807_v24  ;;  %1650 = vmatpush1.bf16.msra.mxu0 %v5808_v25  ;;  %v5214_v24 = vld [vmem:[#allocation8 + $0x128] ss:$16 sps:$4 sm:$0xff]   ;;  %v5219_v25 = vld [vmem:[#allocation8 + $0x144] ss:$16 sps:$4 sm:$0xff]  }
 0x7bb   :  { %1610 = vmatprep.subr.bf16.mxu1 %v5809_v26  ;;  %1651 = vmatprep.subr.bf16.mxu0 %v5810_v27  ;;  %v5222_v26 = vld [vmem:[#allocation8 + $0x14c] ss:$16 sps:$4 sm:$0xff]   ;;  %v5217_v27 = vld [vmem:[#allocation8 + $0x140] ss:$16 sps:$4 sm:$0xff]  }
 0x7be   :  { %1611 = vmatpush1.bf16.msra.mxu1 %v5811_v28  ;;  %1652 = vmatpush1.bf16.msra.mxu0 %v5812_v29  ;;  %v5220_v28 = vld [vmem:[#allocation8 + $0x148] ss:$16 sps:$4 sm:$0xff]   ;;  %v5225_v29 = vld [vmem:[#allocation8 + $0x164] ss:$16 sps:$4 sm:$0xff]  }
 0x7bf   :  { %1612 = vmatprep.subr.bf16.mxu1 %v5813_v30  ;;  %1653 = vmatprep.subr.bf16.mxu0 %v5814_v31  ;;  %v5228_v30 = vld [vmem:[#allocation8 + $0x16c] ss:$16 sps:$4 sm:$0xff]   ;;  %v5223_v31 = vld [vmem:[#allocation8 + $0x160] ss:$16 sps:$4 sm:$0xff]  }
 0x7c2   :  { %1613 = vmatpush1.bf16.msra.mxu1 %v5815_v32  ;;  %1654 = vmatpush1.bf16.msra.mxu0 %v5816_v33  ;;  %v5226_v32 = vld [vmem:[#allocation8 + $0x168] ss:$16 sps:$4 sm:$0xff]   ;;  %v5231_v33 = vld [vmem:[#allocation8 + $0x184] ss:$16 sps:$4 sm:$0xff]  }
 0x7c3   :  { %1949 = vmatprep.subr.bf16.mxu1 %v5207_v4  ;;  %1992 = vmatprep.subr.bf16.mxu0 %v5210_v19 }
 0x878   :  { %v1503_v34 = vpop.f32.mrb[28].mxu1  ;;  %v1544_v35 = vpop.f32.mrb[40].mxu0 }
 0x879   :  { %v1555_v36 = vrot.slane %v1503_v34, 4  ;;  %v1505_v37 = vpop.f32.mrb[29].mxu1  ;;  %v1546_v38 = vpop.f32.mrb[41].mxu0  ;;  %v1557_v54 = vrot.slane %v1544_v35, 4  ;;  %v5234_v34 = vld [vmem:[#allocation8 + $0x18c] ss:$16 sps:$4 sm:$0xff]  }
 0x87a   :  { %v1556_v39 = vrot.slane %v1505_v37, 4  ;;  %v1507_v40 = vpop.f32.mrb[30].mxu1  ;;  %v1548_v41 = vpop.f32.mrb[42].mxu0  ;;  %v1558_v48 = vrot.slane %v1546_v38, 4  ;;  %v5229_v35 = vld [vmem:[#allocation8 + $0x180] ss:$16 sps:$4 sm:$0xff]  }
 0x87b   :  { %v1563_v42 = vadd.f32 %v1555_v36, %v6269_v6  ;;  %v1508_v43 = vpop.f32.mrb[31].mxu1  ;;  %v1549_v44 = vpop.f32.mrb[43].mxu0  ;;  %v1565_v14 = vadd.f32 %v1557_v54, %v6271_v7  ;;  %v5232_v36 = vld [vmem:[#allocation8 + $0x188] ss:$16 sps:$4 sm:$0xff]   ;;  %v5237_v37 = vld [vmem:[#allocation8 + $0x1a4] ss:$16 sps:$4 sm:$0xff]  }
 0x87c   :  { %v1564_v45 = vadd.f32 %v1556_v39, %v6273_v10  ;;  %v1566_v49 = vadd.f32 %v1558_v48, %v6275_v11  ;;  %v5235_v38 = vld [vmem:[#allocation8 + $0x1a0] ss:$16 sps:$4 sm:$0xff]   ;;  %v5238_v39 = vld [vmem:[#allocation8 + $0x1a8] ss:$16 sps:$4 sm:$0xff]   ;;  %v5240_v40 = vld [vmem:[#allocation8 + $0x1ac] ss:$16 sps:$4 sm:$0xff]  }
 0x87d   :  { %v4860_v46 = vmul.f32 -1.442695, %v1563_v42  ;;  %v5243_v41 = vld [vmem:[#allocation8 + $0x1c4] ss:$16 sps:$4 sm:$0xff]   ;;  %v5246_v42 = vld [vmem:[#allocation8 + $0x1cc] ss:$16 sps:$4 sm:$0xff]  }
 0x87e   :  { %v4861_v47 = vmul.f32 -1.442695, %v1564_v45  ;;  %v4862_v1 = vmul.f32 -1.442695, %v1566_v49  ;;  %v5241_v43 = vld [vmem:[#allocation8 + $0x1c0] ss:$16 sps:$4 sm:$0xff]  }
 0x87f   :  { %5493 = vpow2.f32 %v4860_v46  ;;  %v5244_v44 = vld [vmem:[#allocation8 + $0x1c8] ss:$16 sps:$4 sm:$0xff]   ;;  %v5249_v45 = vld [vmem:[#allocation8 + $0x1e4] ss:$16 sps:$4 sm:$0xff]   ;;  %v5252_v46 = vld [vmem:[#allocation8 + $0x1ec] ss:$16 sps:$4 sm:$0xff]  }
 0x880   :  { %5495 = vpow2.f32 %v4861_v47  ;;  %v5247_v47 = vld [vmem:[#allocation8 + $0x1e0] ss:$16 sps:$4 sm:$0xff]   ;;  %v5250_v48 = vld [vmem:[#allocation8 + $0x1e8] ss:$16 sps:$4 sm:$0xff]   ;;  %v6544_v49 = vld [vmem:[#allocation9 + $0x104] ss:$16 sps:$4 sm:$0xff]  }
 0x881   :  { %5497 = vpow2.f32 %v4862_v1  ;;  %v6546_v54 = vld [vmem:[#allocation9 + $0x10c] ss:$16 sps:$4 sm:$0xff]  }
 0x882   :  { %5499 = vtanh.f32 %v1565_v14 }
 0x889   :  { %v5494_v13 = vpop.eup %5493 }
 0x88a   :  { %v5496_v50 = vpop.eup %5495  ;;  %v1570_v17 = vadd.f32 1.0, %v5494_v13 }
 0x88b   :  { %v1576_v52 = vadd.f32 1.0, %v5496_v50  ;;  %v5498_v16 = vpop.eup %5497 }
 0x88c   :  { %5501 = vrcp.f32 %v1570_v17  ;;  %v5500_v3 = vpop.eup %5499  ;;  %v1583_v57 = vadd.f32 1.0, %v5498_v16 }
 0x88d   :  { %5503 = vrcp.f32 %v1576_v52 }
 0x88e   :  { %5505 = vrcp.f32 %v1583_v57 }
 0x896   :  { %v5502_v0 = vpop.eup %5501 }
 0x897   :  { %v5504_v59 = vpop.eup %5503  ;;  %v1590_v62 = vmul.f32 %v5502_v0, %v5500_v3 }
 0x898   :  { %v1589_v60 = vmul.f32 %v5504_v59, %v1587_v9  ;;  %v5506_v58 = vpop.eup %5505 }
 0x89a   :  { %v6533_v2 = vadd.f32 %v1590_v62, %v1589_v60 }
 0x89c   :  { %5507 = vtanh.f32 %v6533_v2 }
 0x8a6   :  { %v5508_v63 = vpop.eup %5507 }
 0x8a7   :  { %v1593_v53 = vmul.f32 %v5508_v63, %v5506_v58 }
 0x8a9   :  { %v1594_v18 = vpack.c.bf16 %v1593_v53, %v1593_v53  ;;  %v6540_v61 = vsel %vm1725_vm2, %v1729_v8, %v1593_v53 }
 0x8ab   :  { %v1596_v12 = vrot.slane %v1594_v18, 2 }
 0x8ad   :  { %1631 = vmatmul.mubr.bf16.vlgmr.msra.gmra.mrb[32].mxu1 %v1596_v12  ;;  %1672 = vmatmul.mubr.bf16.vlgmr.msra.gmra.mrb[44].mxu0 %v1596_v12 }
 0x8ae   :  { %1981 = vmatprep.mubr.bf16.mxu1 %v7395_v5  ;;  %2024 = vmatprep.mubr.bf16.mxu0 %v7395_v5 }
 0x8af   :  { %1950 = vmatpush1.bf16.msra.mxu1 %v5205_v20  ;;  %1993 = vmatpush1.bf16.msra.mxu0 %v5208_v22 }
 0x8b0   :  { %1951 = vmatprep.subr.bf16.mxu1 %v5213_v21  ;;  %1994 = vmatprep.subr.bf16.mxu0 %v5216_v51  ;;  %v1716_v21 = vrot.slane %v6533_v2, 6  ;;  %v6562_v2 = vld [vmem:[#allocation9 + $0x124] ss:$16 sps:$4 sm:$0xff]  }
 0x8b3   :  { %1952 = vmatpush1.bf16.msra.mxu1 %v5211_v23  ;;  %1995 = vmatpush1.bf16.msra.mxu0 %v5214_v24 }
 0x8b4   :  { %1953 = vmatprep.subr.bf16.mxu1 %v5219_v25  ;;  %1996 = vmatprep.subr.bf16.mxu0 %v5222_v26 }
 0x8b7   :  { %1954 = vmatpush1.bf16.msra.mxu1 %v5217_v27  ;;  %1997 = vmatpush1.bf16.msra.mxu0 %v5220_v28 }
 0x8b8   :  { %1955 = vmatprep.subr.bf16.mxu1 %v5225_v29  ;;  %1998 = vmatprep.subr.bf16.mxu0 %v5228_v30  ;;  %v6557_v29 = vld [vmem:[#allocation9 + $0x100] ss:$16 sps:$4 sm:$0xff]   ;;  %v6559_v30 = vld [vmem:[#allocation9 + $0x108] ss:$16 sps:$4 sm:$0xff]  }
 0x8bb   :  { %1956 = vmatpush1.bf16.msra.mxu1 %v5223_v31  ;;  %1999 = vmatpush1.bf16.msra.mxu0 %v5226_v32  ;;  %v6564_v32 = vld [vmem:[#allocation9 + $0x12c] ss:$16 sps:$4 sm:$0xff]  }
 0x8bc   :  { %1957 = vmatprep.subr.bf16.mxu1 %v5231_v33  ;;  %2000 = vmatprep.subr.bf16.mxu0 %v5234_v34  ;;  %v6568_v33 = vld [vmem:[#allocation9 + $0x120] ss:$16 sps:$4 sm:$0xff]   ;;  %v6570_v34 = vld [vmem:[#allocation9 + $0x128] ss:$16 sps:$4 sm:$0xff]  }
 0x8bf   :  { %1958 = vmatpush1.bf16.msra.mxu1 %v5229_v35  ;;  %2001 = vmatpush1.bf16.msra.mxu0 %v5232_v36  ;;  %v6582_v35 = vld [vmem:[#allocation9 + $0x140] ss:$16 sps:$4 sm:$0xff]   ;;  %v6584_v36 = vld [vmem:[#allocation9 + $0x148] ss:$16 sps:$4 sm:$0xff]  }
 0x8c0   :  { %1959 = vmatprep.subr.bf16.mxu1 %v5237_v37  ;;  %2002 = vmatprep.subr.bf16.mxu0 %v5240_v40  ;;  %v6588_v37 = vld [vmem:[#allocation9 + $0x164] ss:$16 sps:$4 sm:$0xff]   ;;  %v6596_v40 = vld [vmem:[#allocation9 + $0x168] ss:$16 sps:$4 sm:$0xff]  }
 0x8c3   :  { %1960 = vmatpush1.bf16.msra.mxu1 %v5235_v38  ;;  %2003 = vmatpush1.bf16.msra.mxu0 %v5238_v39  ;;  %v6590_v38 = vld [vmem:[#allocation9 + $0x16c] ss:$16 sps:$4 sm:$0xff]   ;;  %v6594_v39 = vld [vmem:[#allocation9 + $0x160] ss:$16 sps:$4 sm:$0xff]  }
 0x8c4   :  { %1961 = vmatprep.subr.bf16.mxu1 %v5243_v41  ;;  %2004 = vmatprep.subr.bf16.mxu0 %v5246_v42  ;;  %v6600_v41 = vld [vmem:[#allocation9 + $0x184] ss:$16 sps:$4 sm:$0xff]   ;;  %v6602_v42 = vld [vmem:[#allocation9 + $0x18c] ss:$16 sps:$4 sm:$0xff]  }
 0x8c7   :  { %1962 = vmatpush1.bf16.msra.mxu1 %v5241_v43  ;;  %2005 = vmatpush1.bf16.msra.mxu0 %v5244_v44  ;;  %v6606_v43 = vld [vmem:[#allocation9 + $0x180] ss:$16 sps:$4 sm:$0xff]   ;;  %v6608_v44 = vld [vmem:[#allocation9 + $0x188] ss:$16 sps:$4 sm:$0xff]  }
 0x8c8   :  { %1963 = vmatprep.subr.bf16.mxu1 %v5249_v45  ;;  %2006 = vmatprep.subr.bf16.mxu0 %v5252_v46  ;;  %v6612_v45 = vld [vmem:[#allocation9 + $0x1a4] ss:$16 sps:$4 sm:$0xff]   ;;  %v6614_v46 = vld [vmem:[#allocation9 + $0x1ac] ss:$16 sps:$4 sm:$0xff]  }
 0x8cb   :  { %1964 = vmatpush1.bf16.msra.mxu1 %v5247_v47  ;;  %2007 = vmatpush1.bf16.msra.mxu0 %v5250_v48  ;;  %v6618_v47 = vld [vmem:[#allocation9 + $0x1a0] ss:$16 sps:$4 sm:$0xff]   ;;  %v6620_v48 = vld [vmem:[#allocation9 + $0x1a8] ss:$16 sps:$4 sm:$0xff]  }
 0x8cc   :  { %2228 = vmatprep.subr.bf16.mxu1 %v6544_v49  ;;  %2269 = vmatprep.subr.bf16.mxu0 %v6546_v54 }
 0x980   :  { %v1632_v1 = vpop.f32.mrb[32].mxu1  ;;  %v1673_v14 = vpop.f32.mrb[44].mxu0 }
 0x981   :  { %v1684_v13 = vrot.slane %v1632_v1, 2  ;;  %v1634_v50 = vpop.f32.mrb[33].mxu1  ;;  %v1675_v17 = vpop.f32.mrb[45].mxu0  ;;  %v1686_v53 = vrot.slane %v1673_v14, 2  ;;  %v6624_v1 = vld [vmem:[#allocation9 + $0x1c4] ss:$16 sps:$4 sm:$0xff]  }
 0x982   :  { %v1685_v52 = vrot.slane %v1634_v50, 2  ;;  %v1636_v16 = vpop.f32.mrb[34].mxu1  ;;  %v1677_v3 = vpop.f32.mrb[46].mxu0  ;;  %v1687_v58 = vrot.slane %v1675_v17, 2  ;;  %v6626_v14 = vld [vmem:[#allocation9 + $0x1cc] ss:$16 sps:$4 sm:$0xff]  }
 0x983   :  { %v1692_v0 = vadd.f32 %v1684_v13, %v6269_v6  ;;  %v1637_v9 = vpop.f32.mrb[35].mxu1  ;;  %v1678_v59 = vpop.f32.mrb[47].mxu0  ;;  %v1694_v18 = vadd.f32 %v1686_v53, %v6271_v7  ;;  %v6630_v13 = vld [vmem:[#allocation9 + $0x1c0] ss:$16 sps:$4 sm:$0xff]   ;;  %v6632_v50 = vld [vmem:[#allocation9 + $0x1c8] ss:$16 sps:$4 sm:$0xff]  }
 0x984   :  { %v1693_v62 = vadd.f32 %v1685_v52, %v6273_v10  ;;  %v1695_v63 = vadd.f32 %v1687_v58, %v6275_v11  ;;  %v6636_v17 = vld [vmem:[#allocation9 + $0x1e4] ss:$16 sps:$4 sm:$0xff]   ;;  %v6638_v52 = vld [vmem:[#allocation9 + $0x1ec] ss:$16 sps:$4 sm:$0xff]   ;;  %v6642_v16 = vld [vmem:[#allocation9 + $0x1e0] ss:$16 sps:$4 sm:$0xff]  }
 0x985   :  { %v4863_v57 = vmul.f32 -1.442695, %v1692_v0  ;;  %v6644_v3 = vld [vmem:[#allocation9 + $0x1e8] ss:$16 sps:$4 sm:$0xff]   ;;  %v4866_v0 = vld [vmem:[%s7383_s5 + $0x4] sm:$0xf] }
 0x986   :  { %v4864_v60 = vmul.f32 -1.442695, %v1693_v62  ;;  %v4865_v8 = vmul.f32 -1.442695, %v1695_v63  ;;  %v1772_v62 = vrot.slane %v4866_v0, %v6254_v55  ;;  %v7396_v63 = vld [vmem:[#allocation16_spill] sm:$0xff] }
 0x987   :  { %5509 = vpow2.f32 %v4863_v57  ;;  %v1780_v57 = vrot.slane %v4866_v0, %v6256_v56  ;;  %v1776_v53 = vrot.slane %v4866_v0, %v7396_v63 }
 0x988   :  { %5511 = vpow2.f32 %v4864_v60 }
 0x989   :  { %5513 = vpow2.f32 %v4865_v8  ;;  %v7397_v8 = vld [vmem:[#allocation17_spill] sm:$0xff] }
 0x98a   :  { %5515 = vtanh.f32 %v1694_v18  ;;  %v1784_v18 = vrot.slane %v4866_v0, %v7397_v8 }
 0x991   :  { %v5510_v12 = vpop.eup %5509 }
 0x992   :  { %v5512_v4 = vpop.eup %5511  ;;  %v1699_v19 = vadd.f32 1.0, %v5510_v12 }
 0x993   :  { %v1705_v6 = vadd.f32 1.0, %v5512_v4  ;;  %v5514_v10 = vpop.eup %5513 }
 0x994   :  { %5517 = vrcp.f32 %v1699_v19  ;;  %v5516_v20 = vpop.eup %5515  ;;  %v1712_v11 = vadd.f32 1.0, %v5514_v10 }
 0x995   :  { %5519 = vrcp.f32 %v1705_v6 }
 0x996   :  { %5521 = vrcp.f32 %v1712_v11 }
 0x99e   :  { %v5518_v22 = vpop.eup %5517 }
 0x99f   :  { %v5520_v51 = vpop.eup %5519  ;;  %v1719_v23 = vmul.f32 %v5518_v22, %v5516_v20 }
 0x9a0   :  { %v1718_v24 = vmul.f32 %v5520_v51, %v1716_v21  ;;  %v5522_v7 = vpop.eup %5521 }
 0x9a2   :  { %v1720_v25 = vadd.f32 %v1719_v23, %v1718_v24 }
 0x9a4   :  { %5523 = vtanh.f32 %v1720_v25 }
 0x9ae   :  { %v5524_v26 = vpop.eup %5523 }
 0x9af   :  { %v1722_v27 = vmul.f32 %v5524_v26, %v5522_v7 }
 0x9b1   :  { %v1731_v28 = vsel %vm1727_vm3, %v6540_v61, %v1722_v27  ;;  %v6574_v61 = vld [vmem:[#allocation9 + $0x144] ss:$16 sps:$4 sm:$0xff]  }
 0x9b2   :  { %v1732_v31 = vpack.c.bf16 %v1731_v28, %v6434_v15  ;;  %v6576_v15 = vld [vmem:[#allocation9 + $0x14c] ss:$16 sps:$4 sm:$0xff]  }
 0x9b4   :  { %1982 = vmatmul.mubr.bf16.vlgmr.msra.gmra.mrb[36].mxu1 %v1732_v31  ;;  %2025 = vmatmul.mubr.bf16.vlgmr.msra.gmra.mrb[48].mxu0 %v1732_v31 }
 0x9b5   :  { %2229 = vmatpush1.bf16.msra.mxu1 %v6557_v29  ;;  %2270 = vmatpush1.bf16.msra.mxu0 %v6559_v30 }
 0x9b6   :  { %2230 = vmatprep.subr.bf16.mxu1 %v6562_v2  ;;  %2271 = vmatprep.subr.bf16.mxu0 %v6564_v32 }
 0x9b7   :  { %2260 = vmatprep.mubr.bf16.mxu1 %v7395_v5  ;;  %2301 = vmatprep.mubr.bf16.mxu0 %v7395_v5 }
 0x9b9   :  { %2231 = vmatpush1.bf16.msra.mxu1 %v6568_v33  ;;  %2272 = vmatpush1.bf16.msra.mxu0 %v6570_v34 }
 0x9ba   :  { %2232 = vmatprep.subr.bf16.mxu1 %v6574_v61  ;;  %2273 = vmatprep.subr.bf16.mxu0 %v6576_v15 }
 0x9bd   :  { %2233 = vmatpush1.bf16.msra.mxu1 %v6582_v35  ;;  %2274 = vmatpush1.bf16.msra.mxu0 %v6584_v36 }
 0x9be   :  { %2234 = vmatprep.subr.bf16.mxu1 %v6588_v37  ;;  %2275 = vmatprep.subr.bf16.mxu0 %v6590_v38 }
 0x9c1   :  { %2235 = vmatpush1.bf16.msra.mxu1 %v6594_v39  ;;  %2276 = vmatpush1.bf16.msra.mxu0 %v6596_v40 }
 0x9c2   :  { %2236 = vmatprep.subr.bf16.mxu1 %v6600_v41  ;;  %2277 = vmatprep.subr.bf16.mxu0 %v6602_v42 }
 0x9c5   :  { %2237 = vmatpush1.bf16.msra.mxu1 %v6606_v43  ;;  %2278 = vmatpush1.bf16.msra.mxu0 %v6608_v44 }
 0x9c6   :  { %2238 = vmatprep.subr.bf16.mxu1 %v6612_v45  ;;  %2279 = vmatprep.subr.bf16.mxu0 %v6614_v46 }
 0x9c9   :  { %2239 = vmatpush1.bf16.msra.mxu1 %v6618_v47  ;;  %2280 = vmatpush1.bf16.msra.mxu0 %v6620_v48 }
 0x9ca   :  { %2240 = vmatprep.subr.bf16.mxu1 %v6624_v1  ;;  %2281 = vmatprep.subr.bf16.mxu0 %v6626_v14 }
 0x9cd   :  { %2241 = vmatpush1.bf16.msra.mxu1 %v6630_v13  ;;  %2282 = vmatpush1.bf16.msra.mxu0 %v6632_v50 }
 0x9ce   :  { %2242 = vmatprep.subr.bf16.mxu1 %v6636_v17  ;;  %2283 = vmatprep.subr.bf16.mxu0 %v6638_v52 }
 0x9d1   :  { %2243 = vmatpush1.bf16.msra.mxu1 %v6642_v16  ;;  %2284 = vmatpush1.bf16.msra.mxu0 %v6644_v3 }
 0x9d2   :  { %2339 = vmatprep.subr.bf16.mxu1 %v6544_v49  ;;  %2380 = vmatprep.subr.bf16.mxu0 %v6546_v54 }
 0x9d4   :  { %2261 = vmatmul.mubr.bf16.vlgmr.msra.gmra.mrb[40].mxu1 %v7395_v5  ;;  %2302 = vmatmul.mubr.bf16.vlgmr.msra.gmra.mrb[52].mxu0 %v7395_v5 }
 0x9d5   :  { %2340 = vmatpush1.bf16.msra.mxu1 %v6557_v29  ;;  %2381 = vmatpush1.bf16.msra.mxu0 %v6559_v30 }
 0x9d6   :  { %2341 = vmatprep.subr.bf16.mxu1 %v6562_v2  ;;  %2382 = vmatprep.subr.bf16.mxu0 %v6564_v32 }
 0x9d7   :  { %2371 = vmatprep.mubr.bf16.mxu1 %v7395_v5  ;;  %2412 = vmatprep.mubr.bf16.mxu0 %v7395_v5 }
 0x9d9   :  { %2342 = vmatpush1.bf16.msra.mxu1 %v6568_v33  ;;  %2383 = vmatpush1.bf16.msra.mxu0 %v6570_v34 }
 0x9da   :  { %2343 = vmatprep.subr.bf16.mxu1 %v6574_v61  ;;  %2384 = vmatprep.subr.bf16.mxu0 %v6576_v15 }
 0x9dd   :  { %2344 = vmatpush1.bf16.msra.mxu1 %v6582_v35  ;;  %2385 = vmatpush1.bf16.msra.mxu0 %v6584_v36 }
 0x9de   :  { %2345 = vmatprep.subr.bf16.mxu1 %v6588_v37  ;;  %2386 = vmatprep.subr.bf16.mxu0 %v6590_v38 }
 0x9e1   :  { %2346 = vmatpush1.bf16.msra.mxu1 %v6594_v39  ;;  %2387 = vmatpush1.bf16.msra.mxu0 %v6596_v40 }
 0x9e2   :  { %2347 = vmatprep.subr.bf16.mxu1 %v6600_v41  ;;  %2388 = vmatprep.subr.bf16.mxu0 %v6602_v42 }
 0x9e5   :  { %2348 = vmatpush1.bf16.msra.mxu1 %v6606_v43  ;;  %2389 = vmatpush1.bf16.msra.mxu0 %v6608_v44 }
 0x9e6   :  { %2349 = vmatprep.subr.bf16.mxu1 %v6612_v45  ;;  %2390 = vmatprep.subr.bf16.mxu0 %v6614_v46 }
 0x9e9   :  { %2350 = vmatpush1.bf16.msra.mxu1 %v6618_v47  ;;  %2391 = vmatpush1.bf16.msra.mxu0 %v6620_v48 }
 0x9ea   :  { %2351 = vmatprep.subr.bf16.mxu1 %v6624_v1  ;;  %2392 = vmatprep.subr.bf16.mxu0 %v6626_v14 }
 0x9ed   :  { %2352 = vmatpush1.bf16.msra.mxu1 %v6630_v13  ;;  %2393 = vmatpush1.bf16.msra.mxu0 %v6632_v50 }
 0x9ee   :  { %2353 = vmatprep.subr.bf16.mxu1 %v6636_v17  ;;  %2394 = vmatprep.subr.bf16.mxu0 %v6638_v52 }
 0x9f1   :  { %2354 = vmatpush1.bf16.msra.mxu1 %v6642_v16  ;;  %2395 = vmatpush1.bf16.msra.mxu0 %v6644_v3 }
 0x9f2   :  { %2468 = vmatprep.subr.bf16.mxu1 %v6544_v49  ;;  %2509 = vmatprep.subr.bf16.mxu0 %v6546_v54 }
 0xa87   :  { %v1983_v9 = vpop.f32.mrb[36].mxu1  ;;  %v2026_v59 = vpop.f32.mrb[48].mxu0 }
 0xa88   :  { %v1985_v60 = vpop.f32.mrb[37].mxu1  ;;  %v2028_v58 = vpop.f32.mrb[49].mxu0  ;;  %v6703_v51 = vadd.f32 %v1983_v9, %v1772_v62 }
 0xa89   :  { %v1987_v12 = vpop.f32.mrb[38].mxu1  ;;  %v2030_v4 = vpop.f32.mrb[50].mxu0  ;;  %v6705_v23 = vadd.f32 %v1985_v60, %v1776_v53 }
 0xa8a   :  { %v6695_v19 = vadd.f32 %v1987_v12, %v1772_v62  ;;  %v6697_v6 = vadd.f32 %v2030_v4, %v1780_v57  ;;  %v1989_v10 = vpop.f32.mrb[39].mxu1  ;;  %v2032_v20 = vpop.f32.mrb[51].mxu0  ;;  %v6712_v62 = vadd.f32 %v2026_v59, %v1780_v57 }
 0xa8b   :  { %v6699_v22 = vadd.f32 %v1989_v10, %v1776_v53  ;;  %v6701_v21 = vadd.f32 %v2032_v20, %v1784_v18  ;;  %v6709_v20 = vadd.f32 %v2028_v58, %v1784_v18 }
 0xaa7   :  { %v2262_v11 = vpop.f32.mrb[40].mxu1  ;;  %v2303_v24 = vpop.f32.mrb[52].mxu0 }
 0xaa8   :  { %v2310_v25 = vadd.f32 %v2262_v11, %v6703_v51  ;;  %v2264_v7 = vpop.f32.mrb[41].mxu1  ;;  %v2305_v26 = vpop.f32.mrb[53].mxu0  ;;  %v2312_v53 = vadd.f32 %v2303_v24, %v6712_v62 }
 0xaa9   :  { %v2311_v27 = vadd.f32 %v2264_v7, %v6705_v23  ;;  %v2266_v28 = vpop.f32.mrb[42].mxu1  ;;  %v2307_v31 = vpop.f32.mrb[54].mxu0  ;;  %v2313_v9 = vadd.f32 %v2305_v26, %v6709_v20 }
 0xaaa   :  { %v4931_v0 = vmul.f32 -1.442695, %v2310_v25  ;;  %v2267_v12 = vpop.f32.mrb[43].mxu1  ;;  %v2308_v4 = vpop.f32.mrb[55].mxu0 }
 0xaab   :  { %v4932_v10 = vmul.f32 -1.442695, %v2311_v27  ;;  %v4933_v60 = vmul.f32 -1.442695, %v2313_v9 }
 0xaac   :  { %5525 = vpow2.f32 %v4931_v0 }
 0xaad   :  { %5527 = vpow2.f32 %v4932_v10 }
 0xaae   :  { %5529 = vpow2.f32 %v4933_v60 }
 0xaaf   :  { %5531 = vtanh.f32 %v2312_v53 }
 0xab6   :  { %v5526_v11 = vpop.eup %5525 }
 0xab7   :  { %v5528_v8 = vpop.eup %5527  ;;  %v2317_v7 = vadd.f32 1.0, %v5526_v11 }
 0xab8   :  { %v2323_v25 = vadd.f32 1.0, %v5528_v8  ;;  %v5530_v27 = vpop.eup %5529 }
 0xab9   :  { %5533 = vrcp.f32 %v2317_v7  ;;  %v5532_v28 = vpop.eup %5531  ;;  %v2330_v0 = vadd.f32 1.0, %v5530_v27 }
 0xaba   :  { %5535 = vrcp.f32 %v2323_v25 }
 0xabb   :  { %5537 = vrcp.f32 %v2330_v0 }
 0xac3   :  { %v5534_v58 = vpop.eup %5533 }
 0xac4   :  { %v5536_v18 = vpop.eup %5535  ;;  %v2334_v31 = vmul.f32 %v5534_v58, %v5532_v28 }
 0xac5   :  { %v2333_v26 = vmul.f32 0.0, %v5536_v18  ;;  %v5538_v57 = vpop.eup %5537 }
 0xac7   :  { %v6715_v59 = vadd.f32 %v2334_v31, %v2333_v26 }
 0xac9   :  { %5539 = vtanh.f32 %v6715_v59 }
 0xad3   :  { %v5540_v24 = vpop.eup %5539 }
 0xad4   :  { %v6718_v12 = vmul.f32 %v5540_v24, %v5538_v57 }
 0xad6   :  { %v2338_v8 = vpack.c.bf16 %v6718_v12, %v6718_v12 }
 0xad8   :  { %2372 = vmatmul.mubr.bf16.vlgmr.msra.gmra.mrb[44].mxu1 %v2338_v8  ;;  %2413 = vmatmul.mubr.bf16.vlgmr.msra.gmra.mrb[56].mxu0 %v2338_v8 }
 0xad9   :  { %2469 = vmatpush1.bf16.msra.mxu1 %v6557_v29  ;;  %2510 = vmatpush1.bf16.msra.mxu0 %v6559_v30 }
 0xada   :  { %2470 = vmatprep.subr.bf16.mxu1 %v6562_v2  ;;  %2511 = vmatprep.subr.bf16.mxu0 %v6564_v32 }
 0xadb   :  { %2500 = vmatprep.mubr.bf16.mxu1 %v7395_v5  ;;  %2541 = vmatprep.mubr.bf16.mxu0 %v7395_v5 }
 0xadd   :  { %2471 = vmatpush1.bf16.msra.mxu1 %v6568_v33  ;;  %2512 = vmatpush1.bf16.msra.mxu0 %v6570_v34 }
 0xade   :  { %2472 = vmatprep.subr.bf16.mxu1 %v6574_v61  ;;  %2513 = vmatprep.subr.bf16.mxu0 %v6576_v15 }
 0xae1   :  { %2473 = vmatpush1.bf16.msra.mxu1 %v6582_v35  ;;  %2514 = vmatpush1.bf16.msra.mxu0 %v6584_v36 }
 0xae2   :  { %2474 = vmatprep.subr.bf16.mxu1 %v6588_v37  ;;  %2515 = vmatprep.subr.bf16.mxu0 %v6590_v38 }
 0xae5   :  { %2475 = vmatpush1.bf16.msra.mxu1 %v6594_v39  ;;  %2516 = vmatpush1.bf16.msra.mxu0 %v6596_v40 }
 0xae6   :  { %2476 = vmatprep.subr.bf16.mxu1 %v6600_v41  ;;  %2517 = vmatprep.subr.bf16.mxu0 %v6602_v42 }
 0xae9   :  { %2477 = vmatpush1.bf16.msra.mxu1 %v6606_v43  ;;  %2518 = vmatpush1.bf16.msra.mxu0 %v6608_v44 }
 0xaea   :  { %2478 = vmatprep.subr.bf16.mxu1 %v6612_v45  ;;  %2519 = vmatprep.subr.bf16.mxu0 %v6614_v46 }
 0xaed   :  { %2479 = vmatpush1.bf16.msra.mxu1 %v6618_v47  ;;  %2520 = vmatpush1.bf16.msra.mxu0 %v6620_v48 }
 0xaee   :  { %2480 = vmatprep.subr.bf16.mxu1 %v6624_v1  ;;  %2521 = vmatprep.subr.bf16.mxu0 %v6626_v14 }
 0xaf1   :  { %2481 = vmatpush1.bf16.msra.mxu1 %v6630_v13  ;;  %2522 = vmatpush1.bf16.msra.mxu0 %v6632_v50 }
 0xaf2   :  { %2482 = vmatprep.subr.bf16.mxu1 %v6636_v17  ;;  %2523 = vmatprep.subr.bf16.mxu0 %v6638_v52 }
 0xaf5   :  { %2483 = vmatpush1.bf16.msra.mxu1 %v6642_v16  ;;  %2524 = vmatpush1.bf16.msra.mxu0 %v6644_v3 }
 0xaf6   :  { %2597 = vmatprep.subr.bf16.mxu1 %v6544_v49  ;;  %2638 = vmatprep.subr.bf16.mxu0 %v6546_v54 }
 0xbab   :  { %v2373_v4 = vpop.f32.mrb[44].mxu1  ;;  %v2414_v10 = vpop.f32.mrb[56].mxu0 }
 0xbac   :  { %v2425_v9 = vrot.slane %v2373_v4, 6  ;;  %v2375_v60 = vpop.f32.mrb[45].mxu1  ;;  %v2416_v53 = vpop.f32.mrb[57].mxu0  ;;  %v2427_v24 = vrot.slane %v2414_v10, 6 }
 0xbad   :  { %v2426_v11 = vrot.slane %v2375_v60, 6  ;;  %v2377_v7 = vpop.f32.mrb[46].mxu1  ;;  %v2418_v25 = vpop.f32.mrb[58].mxu0  ;;  %v2428_v26 = vrot.slane %v2416_v53, 6  ;;  %v2457_v53 = vrot.slane %v6715_v59, 6 }
 0xbae   :  { %v2433_v27 = vadd.f32 %v2425_v9, %v6703_v51  ;;  %v2378_v28 = vpop.f32.mrb[47].mxu1  ;;  %v2419_v58 = vpop.f32.mrb[59].mxu0  ;;  %v2435_v4 = vadd.f32 %v2427_v24, %v6712_v62 }
 0xbaf   :  { %v2434_v18 = vadd.f32 %v2426_v11, %v6705_v23  ;;  %v2436_v57 = vadd.f32 %v2428_v26, %v6709_v20 }
 0xbb0   :  { %v4934_v31 = vmul.f32 -1.442695, %v2433_v27 }
 0xbb1   :  { %v4935_v0 = vmul.f32 -1.442695, %v2434_v18  ;;  %v4936_v8 = vmul.f32 -1.442695, %v2436_v57 }
 0xbb2   :  { %5541 = vpow2.f32 %v4934_v31 }
 0xbb3   :  { %5543 = vpow2.f32 %v4935_v0 }
 0xbb4   :  { %5545 = vpow2.f32 %v4936_v8 }
 0xbb5   :  { %5547 = vtanh.f32 %v2435_v4 }
 0xbbc   :  { %v5542_v60 = vpop.eup %5541 }
 0xbbd   :  { %v5544_v7 = vpop.eup %5543  ;;  %v2440_v25 = vadd.f32 1.0, %v5542_v60 }
 0xbbe   :  { %v2446_v9 = vadd.f32 1.0, %v5544_v7  ;;  %v5546_v11 = vpop.eup %5545 }
 0xbbf   :  { %5549 = vrcp.f32 %v2440_v25  ;;  %v5548_v27 = vpop.eup %5547  ;;  %v2453_v31 = vadd.f32 1.0, %v5546_v11 }
 0xbc0   :  { %5551 = vrcp.f32 %v2446_v9 }
 0xbc1   :  { %5553 = vrcp.f32 %v2453_v31 }
 0xbc9   :  { %v5550_v28 = vpop.eup %5549 }
 0xbca   :  { %v5552_v58 = vpop.eup %5551  ;;  %v2460_v18 = vmul.f32 %v5550_v28, %v5548_v27 }
 0xbcb   :  { %v2459_v10 = vmul.f32 %v5552_v58, %v2457_v53  ;;  %v5554_v26 = vpop.eup %5553 }
 0xbcd   :  { %v6761_v0 = vadd.f32 %v2460_v18, %v2459_v10 }
 0xbcf   :  { %5555 = vtanh.f32 %v6761_v0 }
 0xbd9   :  { %v5556_v57 = vpop.eup %5555 }
 0xbda   :  { %v6764_v24 = vmul.f32 %v5556_v57, %v5554_v26 }
 0xbdc   :  { %v2464_v8 = vpack.c.bf16 %v6764_v24, %v6764_v24 }
 0xbde   :  { %v2466_v4 = vrot.slane %v2464_v8, 1 }
 0xbe0   :  { %2501 = vmatmul.mubr.bf16.vlgmr.msra.gmra.mrb[48].mxu1 %v2466_v4  ;;  %2542 = vmatmul.mubr.bf16.vlgmr.msra.gmra.mrb[60].mxu0 %v2466_v4 }
 0xbe1   :  { %2598 = vmatpush1.bf16.msra.mxu1 %v6557_v29  ;;  %2639 = vmatpush1.bf16.msra.mxu0 %v6559_v30 }
 0xbe2   :  { %2599 = vmatprep.subr.bf16.mxu1 %v6562_v2  ;;  %2640 = vmatprep.subr.bf16.mxu0 %v6564_v32 }
 0xbe3   :  { %2629 = vmatprep.mubr.bf16.mxu1 %v7395_v5  ;;  %2670 = vmatprep.mubr.bf16.mxu0 %v7395_v5 }
 0xbe5   :  { %2600 = vmatpush1.bf16.msra.mxu1 %v6568_v33  ;;  %2641 = vmatpush1.bf16.msra.mxu0 %v6570_v34 }
 0xbe6   :  { %2601 = vmatprep.subr.bf16.mxu1 %v6574_v61  ;;  %2642 = vmatprep.subr.bf16.mxu0 %v6576_v15 }
 0xbe9   :  { %2602 = vmatpush1.bf16.msra.mxu1 %v6582_v35  ;;  %2643 = vmatpush1.bf16.msra.mxu0 %v6584_v36 }
 0xbea   :  { %2603 = vmatprep.subr.bf16.mxu1 %v6588_v37  ;;  %2644 = vmatprep.subr.bf16.mxu0 %v6590_v38 }
 0xbed   :  { %2604 = vmatpush1.bf16.msra.mxu1 %v6594_v39  ;;  %2645 = vmatpush1.bf16.msra.mxu0 %v6596_v40 }
 0xbee   :  { %2605 = vmatprep.subr.bf16.mxu1 %v6600_v41  ;;  %2646 = vmatprep.subr.bf16.mxu0 %v6602_v42 }
 0xbf1   :  { %2606 = vmatpush1.bf16.msra.mxu1 %v6606_v43  ;;  %2647 = vmatpush1.bf16.msra.mxu0 %v6608_v44 }
 0xbf2   :  { %2607 = vmatprep.subr.bf16.mxu1 %v6612_v45  ;;  %2648 = vmatprep.subr.bf16.mxu0 %v6614_v46 }
 0xbf5   :  { %2608 = vmatpush1.bf16.msra.mxu1 %v6618_v47  ;;  %2649 = vmatpush1.bf16.msra.mxu0 %v6620_v48 }
 0xbf6   :  { %2609 = vmatprep.subr.bf16.mxu1 %v6624_v1  ;;  %2650 = vmatprep.subr.bf16.mxu0 %v6626_v14 }
 0xbf9   :  { %2610 = vmatpush1.bf16.msra.mxu1 %v6630_v13  ;;  %2651 = vmatpush1.bf16.msra.mxu0 %v6632_v50 }
 0xbfa   :  { %2611 = vmatprep.subr.bf16.mxu1 %v6636_v17  ;;  %2652 = vmatprep.subr.bf16.mxu0 %v6638_v52 }
 0xbfd   :  { %2612 = vmatpush1.bf16.msra.mxu1 %v6642_v16  ;;  %2653 = vmatpush1.bf16.msra.mxu0 %v6644_v3 }
 0xbfe   :  { %2726 = vmatprep.subr.bf16.mxu1 %v6544_v49  ;;  %2767 = vmatprep.subr.bf16.mxu0 %v6546_v54 }
 0xcb3   :  { %v2502_v59 = vpop.f32.mrb[48].mxu1  ;;  %v2543_v60 = vpop.f32.mrb[60].mxu0 }
 0xcb4   :  { %v2554_v7 = vrot.slane %v2502_v59, 4  ;;  %v2504_v25 = vpop.f32.mrb[49].mxu1  ;;  %v2545_v9 = vpop.f32.mrb[61].mxu0  ;;  %v2556_v4 = vrot.slane %v2543_v60, 4 }
 0xcb5   :  { %v2555_v11 = vrot.slane %v2504_v25, 4  ;;  %v2506_v27 = vpop.f32.mrb[50].mxu1  ;;  %v2547_v28 = vpop.f32.mrb[62].mxu0  ;;  %v2557_v57 = vrot.slane %v2545_v9, 4  ;;  %v2586_v9 = vrot.slane %v6761_v0, 6 }
 0xcb6   :  { %v2562_v53 = vadd.f32 %v2554_v7, %v6703_v51  ;;  %v2507_v58 = vpop.f32.mrb[51].mxu1  ;;  %v2548_v18 = vpop.f32.mrb[63].mxu0  ;;  %v2564_v63 = vadd.f32 %v2556_v4, %v6712_v62  ;;  %v3223_v4 = vsel %vm1723_vm1, %v6718_v12, %v6764_v24 }
 0xcb7   :  { %v2563_v31 = vadd.f32 %v2555_v11, %v6705_v23  ;;  %v2565_v8 = vadd.f32 %v2557_v57, %v6709_v20 }
 0xcb8   :  { %v4937_v10 = vmul.f32 -1.442695, %v2562_v53 }
 0xcb9   :  { %v4938_v26 = vmul.f32 -1.442695, %v2563_v31  ;;  %v4939_v59 = vmul.f32 -1.442695, %v2565_v8 }
 0xcba   :  { %5557 = vpow2.f32 %v4937_v10 }
 0xcbb   :  { %5559 = vpow2.f32 %v4938_v26 }
 0xcbc   :  { %5561 = vpow2.f32 %v4939_v59 }
 0xcbd   :  { %5563 = vtanh.f32 %v2564_v63 }
 0xcc4   :  { %v5558_v25 = vpop.eup %5557 }
 0xcc5   :  { %v5560_v27 = vpop.eup %5559  ;;  %v2569_v28 = vadd.f32 1.0, %v5558_v25 }
 0xcc6   :  { %v2575_v7 = vadd.f32 1.0, %v5560_v27  ;;  %v5562_v11 = vpop.eup %5561 }
 0xcc7   :  { %5565 = vrcp.f32 %v2569_v28  ;;  %v5564_v53 = vpop.eup %5563  ;;  %v2582_v10 = vadd.f32 1.0, %v5562_v11 }
 0xcc8   :  { %5567 = vrcp.f32 %v2575_v7 }
 0xcc9   :  { %5569 = vrcp.f32 %v2582_v10 }
 0xcd1   :  { %v5566_v58 = vpop.eup %5565 }
 0xcd2   :  { %v5568_v18 = vpop.eup %5567  ;;  %v2589_v31 = vmul.f32 %v5566_v58, %v5564_v53 }
 0xcd3   :  { %v2588_v60 = vmul.f32 %v5568_v18, %v2586_v9  ;;  %v5570_v57 = vpop.eup %5569 }
 0xcd5   :  { %v6807_v26 = vadd.f32 %v2589_v31, %v2588_v60 }
 0xcd7   :  { %5571 = vtanh.f32 %v6807_v26 }
 0xce1   :  { %v5572_v8 = vpop.eup %5571 }
 0xce2   :  { %v2592_v63 = vmul.f32 %v5572_v8, %v5570_v57 }
 0xce4   :  { %v2593_v59 = vpack.c.bf16 %v2592_v63, %v2592_v63  ;;  %v6814_v25 = vsel %vm1725_vm2, %v3223_v4, %v2592_v63 }
 0xce6   :  { %v2595_v0 = vrot.slane %v2593_v59, 2 }
 0xce8   :  { %2630 = vmatmul.mubr.bf16.vlgmr.msra.gmra.mrb[52].mxu1 %v2595_v0  ;;  %2671 = vmatmul.mubr.bf16.vlgmr.msra.gmra.mrb[64].mxu0 %v2595_v0 }
 0xce9   :  { %2727 = vmatpush1.bf16.msra.mxu1 %v6557_v29  ;;  %2768 = vmatpush1.bf16.msra.mxu0 %v6559_v30 }
 0xcea   :  { %2728 = vmatprep.subr.bf16.mxu1 %v6562_v2  ;;  %2769 = vmatprep.subr.bf16.mxu0 %v6564_v32 }
 0xceb   :  { %2758 = vmatprep.mubr.bf16.mxu1 %v7395_v5  ;;  %2799 = vmatprep.mubr.bf16.mxu0 %v7395_v5 }
 0xced   :  { %2729 = vmatpush1.bf16.msra.mxu1 %v6568_v33  ;;  %2770 = vmatpush1.bf16.msra.mxu0 %v6570_v34 }
 0xcee   :  { %2730 = vmatprep.subr.bf16.mxu1 %v6574_v61  ;;  %2771 = vmatprep.subr.bf16.mxu0 %v6576_v15 }
 0xcf1   :  { %2731 = vmatpush1.bf16.msra.mxu1 %v6582_v35  ;;  %2772 = vmatpush1.bf16.msra.mxu0 %v6584_v36 }
 0xcf2   :  { %2732 = vmatprep.subr.bf16.mxu1 %v6588_v37  ;;  %2773 = vmatprep.subr.bf16.mxu0 %v6590_v38 }
 0xcf5   :  { %2733 = vmatpush1.bf16.msra.mxu1 %v6594_v39  ;;  %2774 = vmatpush1.bf16.msra.mxu0 %v6596_v40 }
 0xcf6   :  { %2734 = vmatprep.subr.bf16.mxu1 %v6600_v41  ;;  %2775 = vmatprep.subr.bf16.mxu0 %v6602_v42 }
 0xcf9   :  { %2735 = vmatpush1.bf16.msra.mxu1 %v6606_v43  ;;  %2776 = vmatpush1.bf16.msra.mxu0 %v6608_v44 }
 0xcfa   :  { %2736 = vmatprep.subr.bf16.mxu1 %v6612_v45  ;;  %2777 = vmatprep.subr.bf16.mxu0 %v6614_v46 }
 0xcfd   :  { %2737 = vmatpush1.bf16.msra.mxu1 %v6618_v47  ;;  %2778 = vmatpush1.bf16.msra.mxu0 %v6620_v48 }
 0xcfe   :  { %2738 = vmatprep.subr.bf16.mxu1 %v6624_v1  ;;  %2779 = vmatprep.subr.bf16.mxu0 %v6626_v14 }
 0xd01   :  { %2739 = vmatpush1.bf16.msra.mxu1 %v6630_v13  ;;  %2780 = vmatpush1.bf16.msra.mxu0 %v6632_v50 }
 0xd02   :  { %2740 = vmatprep.subr.bf16.mxu1 %v6636_v17  ;;  %2781 = vmatprep.subr.bf16.mxu0 %v6638_v52 }
 0xd05   :  { %2741 = vmatpush1.bf16.msra.mxu1 %v6642_v16  ;;  %2782 = vmatpush1.bf16.msra.mxu0 %v6644_v3 }
 0xd06   :  { %2840 = vmatprep.subr.bf16.mxu1 %v6544_v49  ;;  %2881 = vmatprep.subr.bf16.mxu0 %v6546_v54 }
 0xdbb   :  { %v2631_v12 = vpop.f32.mrb[52].mxu1  ;;  %v2672_v24 = vpop.f32.mrb[64].mxu0 }
 0xdbc   :  { %v2683_v27 = vrot.slane %v2631_v12, 2  ;;  %v2633_v28 = vpop.f32.mrb[53].mxu1  ;;  %v2674_v7 = vpop.f32.mrb[65].mxu0  ;;  %v2685_v4 = vrot.slane %v2672_v24, 2 }
 0xdbd   :  { %v2684_v11 = vrot.slane %v2633_v28, 2  ;;  %v2635_v53 = vpop.f32.mrb[54].mxu1  ;;  %v2676_v58 = vpop.f32.mrb[66].mxu0  ;;  %v2686_v8 = vrot.slane %v2674_v7, 2  ;;  %v2715_v7 = vrot.slane %v6807_v26, 6 }
 0xdbe   :  { %v2691_v9 = vadd.f32 %v2683_v27, %v6703_v51  ;;  %v2636_v18 = vpop.f32.mrb[55].mxu1  ;;  %v2677_v31 = vpop.f32.mrb[67].mxu0  ;;  %v2693_v0 = vadd.f32 %v2685_v4, %v6712_v62 }
 0xdbf   :  { %v2692_v10 = vadd.f32 %v2684_v11, %v6705_v23  ;;  %v2694_v63 = vadd.f32 %v2686_v8, %v6709_v20 }
 0xdc0   :  { %v4940_v60 = vmul.f32 -1.442695, %v2691_v9 }
 0xdc1   :  { %v4941_v57 = vmul.f32 -1.442695, %v2692_v10  ;;  %v4942_v59 = vmul.f32 -1.442695, %v2694_v63 }
 0xdc2   :  { %5573 = vpow2.f32 %v4940_v60 }
 0xdc3   :  { %5575 = vpow2.f32 %v4941_v57 }
 0xdc4   :  { %5577 = vpow2.f32 %v4942_v59 }
 0xdc5   :  { %5579 = vtanh.f32 %v2693_v0 }
 0xdcc   :  { %v5574_v12 = vpop.eup %5573 }
 0xdcd   :  { %v5576_v28 = vpop.eup %5575  ;;  %v2698_v53 = vadd.f32 1.0, %v5574_v12 }
 0xdce   :  { %v2704_v51 = vadd.f32 1.0, %v5576_v28  ;;  %v5578_v23 = vpop.eup %5577 }
 0xdcf   :  { %5581 = vrcp.f32 %v2698_v53  ;;  %v5580_v27 = vpop.eup %5579  ;;  %v2711_v20 = vadd.f32 1.0, %v5578_v23 }
 0xdd0   :  { %5583 = vrcp.f32 %v2704_v51 }
 0xdd1   :  { %5585 = vrcp.f32 %v2711_v20 }
 0xdd9   :  { %v5582_v11 = vpop.eup %5581 }
 0xdda   :  { %v5584_v58 = vpop.eup %5583  ;;  %v2718_v9 = vmul.f32 %v5582_v11, %v5580_v27 }
 0xddb   :  { %v2717_v24 = vmul.f32 %v5584_v58, %v2715_v7  ;;  %v5586_v62 = vpop.eup %5585 }
 0xddd   :  { %v6855_v18 = vadd.f32 %v2718_v9, %v2717_v24 }
 0xddf   :  { %5587 = vtanh.f32 %v6855_v18 }
 0xde9   :  { %v5588_v31 = vpop.eup %5587 }
 0xdea   :  { %v2721_v10 = vmul.f32 %v5588_v31, %v5586_v62 }
 0xdec   :  { %v2722_v60 = vpack.c.bf16 %v2721_v10, %v2721_v10  ;;  %v6860_v57 = vsel %vm1727_vm3, %v6814_v25, %v2721_v10  ;;  %v2832_v10 = vrot.slane %v6855_v18, 6 }
 0xdee   :  { %v2724_v8 = vrot.slane %v2722_v60, 3 }
 0xdf0   :  { %2759 = vmatmul.mubr.bf16.vlgmr.msra.gmra.mrb[56].mxu1 %v2724_v8  ;;  %2800 = vmatmul.mubr.bf16.vlgmr.msra.gmra.mrb[68].mxu0 %v2724_v8 }
 0xdf1   :  { %2841 = vmatpush1.bf16.msra.mxu1 %v6557_v29  ;;  %2882 = vmatpush1.bf16.msra.mxu0 %v6559_v30 }
 0xdf2   :  { %2842 = vmatprep.subr.bf16.mxu1 %v6562_v2  ;;  %2883 = vmatprep.subr.bf16.mxu0 %v6564_v32 }
 0xdf3   :  { %2872 = vmatprep.mubr.bf16.mxu1 %v7395_v5  ;;  %2913 = vmatprep.mubr.bf16.mxu0 %v7395_v5 }
 0xdf5   :  { %2843 = vmatpush1.bf16.msra.mxu1 %v6568_v33  ;;  %2884 = vmatpush1.bf16.msra.mxu0 %v6570_v34 }
 0xdf6   :  { %2844 = vmatprep.subr.bf16.mxu1 %v6574_v61  ;;  %2885 = vmatprep.subr.bf16.mxu0 %v6576_v15 }
 0xdf9   :  { %2845 = vmatpush1.bf16.msra.mxu1 %v6582_v35  ;;  %2886 = vmatpush1.bf16.msra.mxu0 %v6584_v36 }
 0xdfa   :  { %2846 = vmatprep.subr.bf16.mxu1 %v6588_v37  ;;  %2887 = vmatprep.subr.bf16.mxu0 %v6590_v38 }
 0xdfd   :  { %2847 = vmatpush1.bf16.msra.mxu1 %v6594_v39  ;;  %2888 = vmatpush1.bf16.msra.mxu0 %v6596_v40 }
 0xdfe   :  { %2848 = vmatprep.subr.bf16.mxu1 %v6600_v41  ;;  %2889 = vmatprep.subr.bf16.mxu0 %v6602_v42 }
 0xe01   :  { %2849 = vmatpush1.bf16.msra.mxu1 %v6606_v43  ;;  %2890 = vmatpush1.bf16.msra.mxu0 %v6608_v44 }
 0xe02   :  { %2850 = vmatprep.subr.bf16.mxu1 %v6612_v45  ;;  %2891 = vmatprep.subr.bf16.mxu0 %v6614_v46 }
 0xe05   :  { %2851 = vmatpush1.bf16.msra.mxu1 %v6618_v47  ;;  %2892 = vmatpush1.bf16.msra.mxu0 %v6620_v48 }
 0xe06   :  { %2852 = vmatprep.subr.bf16.mxu1 %v6624_v1  ;;  %2893 = vmatprep.subr.bf16.mxu0 %v6626_v14 }
 0xe09   :  { %2853 = vmatpush1.bf16.msra.mxu1 %v6630_v13  ;;  %2894 = vmatpush1.bf16.msra.mxu0 %v6632_v50 }
 0xe0a   :  { %2854 = vmatprep.subr.bf16.mxu1 %v6636_v17  ;;  %2895 = vmatprep.subr.bf16.mxu0 %v6638_v52 }
 0xe0d   :  { %2855 = vmatpush1.bf16.msra.mxu1 %v6642_v16  ;;  %2896 = vmatpush1.bf16.msra.mxu0 %v6644_v3 }
 0xe0e   :  { %2969 = vmatprep.subr.bf16.mxu1 %v6544_v49  ;;  %3010 = vmatprep.subr.bf16.mxu0 %v6546_v54 }
 0xec3   :  { %v2760_v26 = vpop.f32.mrb[56].mxu1  ;;  %v2801_v25 = vpop.f32.mrb[68].mxu0 }
 0xec4   :  { %v2808_v63 = vadd.f32 %v2760_v26, %v6695_v19  ;;  %v2762_v4 = vpop.f32.mrb[57].mxu1  ;;  %v2803_v59 = vpop.f32.mrb[69].mxu0  ;;  %v2810_v54 = vadd.f32 %v2801_v25, %v6697_v6 }
 0xec5   :  { %v2809_v0 = vadd.f32 %v2762_v4, %v6699_v22  ;;  %v2764_v12 = vpop.f32.mrb[58].mxu1  ;;  %v2805_v28 = vpop.f32.mrb[70].mxu0  ;;  %v2811_v49 = vadd.f32 %v2803_v59, %v6701_v21 }
 0xec6   :  { %v4943_v53 = vmul.f32 -1.442695, %v2808_v63  ;;  %v2765_v51 = vpop.f32.mrb[59].mxu1  ;;  %v2806_v23 = vpop.f32.mrb[71].mxu0 }
 0xec7   :  { %v4944_v27 = vmul.f32 -1.442695, %v2809_v0  ;;  %v4945_v11 = vmul.f32 -1.442695, %v2811_v49 }
 0xec8   :  { %5589 = vpow2.f32 %v4943_v53 }
 0xec9   :  { %5591 = vpow2.f32 %v4944_v27 }
 0xeca   :  { %5593 = vpow2.f32 %v4945_v11 }
 0xecb   :  { %5595 = vtanh.f32 %v2810_v54 }
 0xed2   :  { %v5590_v7 = vpop.eup %5589 }
 0xed3   :  { %v5592_v58 = vpop.eup %5591  ;;  %v2815_v9 = vadd.f32 1.0, %v5590_v7  ;;  %v5819_v7 = vld [vmem:[#allocation9 + $0x100] ss:$16 sps:$4 sm:$0xff]  }
 0xed4   :  { %v2821_v20 = vadd.f32 1.0, %v5592_v58  ;;  %v5594_v24 = vpop.eup %5593  ;;  %v5820_v58 = vld [vmem:[#allocation9 + $0x108] ss:$16 sps:$4 sm:$0xff]  }
 0xed5   :  { %5597 = vrcp.f32 %v2815_v9  ;;  %v5596_v62 = vpop.eup %5595  ;;  %v2828_v26 = vadd.f32 1.0, %v5594_v24  ;;  %v5821_v9 = vld [vmem:[#allocation9 + $0x124] ss:$16 sps:$4 sm:$0xff]   ;;  %v5823_v24 = vld [vmem:[#allocation9 + $0x120] ss:$16 sps:$4 sm:$0xff]  }
 0xed6   :  { %5599 = vrcp.f32 %v2821_v20  ;;  %v5822_v20 = vld [vmem:[#allocation9 + $0x12c] ss:$16 sps:$4 sm:$0xff]  }
 0xed7   :  { %5601 = vrcp.f32 %v2828_v26  ;;  %v5829_v26 = vld [vmem:[#allocation9 + $0x164] ss:$16 sps:$4 sm:$0xff]  }
 0xedf   :  { %v5598_v31 = vpop.eup %5597 }
 0xee0   :  { %v5600_v60 = vpop.eup %5599  ;;  %v2835_v8 = vmul.f32 %v5598_v31, %v5596_v62  ;;  %v5824_v62 = vld [vmem:[#allocation9 + $0x128] ss:$16 sps:$4 sm:$0xff]   ;;  %v5825_v31 = vld [vmem:[#allocation9 + $0x144] ss:$16 sps:$4 sm:$0xff]  }
 0xee1   :  { %v2834_v63 = vmul.f32 %v5600_v60, %v2832_v10  ;;  %v5602_v25 = vpop.eup %5601  ;;  %v5826_v10 = vld [vmem:[#allocation9 + $0x14c] ss:$16 sps:$4 sm:$0xff]   ;;  %v5827_v60 = vld [vmem:[#allocation9 + $0x140] ss:$16 sps:$4 sm:$0xff]  }
 0xee3   :  { %v6901_v4 = vadd.f32 %v2835_v8, %v2834_v63  ;;  %v5828_v8 = vld [vmem:[#allocation9 + $0x148] ss:$16 sps:$4 sm:$0xff]   ;;  %v5830_v63 = vld [vmem:[#allocation9 + $0x16c] ss:$16 sps:$4 sm:$0xff]  }
 0xee5   :  { %5603 = vtanh.f32 %v6901_v4 }
 0xeef   :  { %v5604_v59 = vpop.eup %5603 }
 0xef0   :  { %v6904_v0 = vmul.f32 %v5604_v59, %v5602_v25  ;;  %v5832_v25 = vld [vmem:[#allocation9 + $0x168] ss:$16 sps:$4 sm:$0xff]   ;;  %v5833_v59 = vld [vmem:[#allocation9 + $0x184] ss:$16 sps:$4 sm:$0xff]  }
 0xef2   :  { %v2839_v12 = vpack.c.bf16 %v6904_v0, %v6904_v0 }
 0xef4   :  { %2873 = vmatmul.mubr.bf16.vlgmr.msra.gmra.mrb[60].mxu1 %v2839_v12  ;;  %2914 = vmatmul.mubr.bf16.vlgmr.msra.gmra.mrb[72].mxu0 %v2839_v12  ;;  %v5834_v12 = vld [vmem:[#allocation9 + $0x18c] ss:$16 sps:$4 sm:$0xff]  }
 0xef5   :  { %2970 = vmatpush1.bf16.msra.mxu1 %v6557_v29  ;;  %3011 = vmatpush1.bf16.msra.mxu0 %v6559_v30  ;;  %v5817_v29 = vld [vmem:[#allocation9 + $0x104] ss:$16 sps:$4 sm:$0xff]   ;;  %v5818_v30 = vld [vmem:[#allocation9 + $0x10c] ss:$16 sps:$4 sm:$0xff]  }
 0xef6   :  { %2971 = vmatprep.subr.bf16.mxu1 %v6562_v2  ;;  %3012 = vmatprep.subr.bf16.mxu0 %v6564_v32 }
 0xef7   :  { %3001 = vmatprep.mubr.bf16.mxu1 %v7395_v5  ;;  %3042 = vmatprep.mubr.bf16.mxu0 %v7395_v5 }
 0xef9   :  { %2972 = vmatpush1.bf16.msra.mxu1 %v6568_v33  ;;  %3013 = vmatpush1.bf16.msra.mxu0 %v6570_v34 }
 0xefa   :  { %2973 = vmatprep.subr.bf16.mxu1 %v6574_v61  ;;  %3014 = vmatprep.subr.bf16.mxu0 %v6576_v15 }
 0xefd   :  { %2974 = vmatpush1.bf16.msra.mxu1 %v6582_v35  ;;  %3015 = vmatpush1.bf16.msra.mxu0 %v6584_v36 }
 0xefe   :  { %2975 = vmatprep.subr.bf16.mxu1 %v6588_v37  ;;  %3016 = vmatprep.subr.bf16.mxu0 %v6590_v38 }
 0xf01   :  { %2976 = vmatpush1.bf16.msra.mxu1 %v6594_v39  ;;  %3017 = vmatpush1.bf16.msra.mxu0 %v6596_v40 }
 0xf02   :  { %2977 = vmatprep.subr.bf16.mxu1 %v6600_v41  ;;  %3018 = vmatprep.subr.bf16.mxu0 %v6602_v42 }
 0xf05   :  { %2978 = vmatpush1.bf16.msra.mxu1 %v6606_v43  ;;  %3019 = vmatpush1.bf16.msra.mxu0 %v6608_v44 }
 0xf06   :  { %2979 = vmatprep.subr.bf16.mxu1 %v6612_v45  ;;  %3020 = vmatprep.subr.bf16.mxu0 %v6614_v46 }
 0xf09   :  { %2980 = vmatpush1.bf16.msra.mxu1 %v6618_v47  ;;  %3021 = vmatpush1.bf16.msra.mxu0 %v6620_v48 }
 0xf0a   :  { %2981 = vmatprep.subr.bf16.mxu1 %v6624_v1  ;;  %3022 = vmatprep.subr.bf16.mxu0 %v6626_v14 }
 0xf0d   :  { %2982 = vmatpush1.bf16.msra.mxu1 %v6630_v13  ;;  %3023 = vmatpush1.bf16.msra.mxu0 %v6632_v50 }
 0xf0e   :  { %2983 = vmatprep.subr.bf16.mxu1 %v6636_v17  ;;  %3024 = vmatprep.subr.bf16.mxu0 %v6638_v52 }
 0xf11   :  { %2984 = vmatpush1.bf16.msra.mxu1 %v6642_v16  ;;  %3025 = vmatpush1.bf16.msra.mxu0 %v6644_v3  ;;  %v2958_v16 = vrot.slane %v6901_v4, 6  ;;  %v5831_v4 = vld [vmem:[#allocation9 + $0x160] ss:$16 sps:$4 sm:$0xff]  }
 0xf12   :  { %3098 = vmatprep.subr.bf16.mxu1 %v5817_v29  ;;  %3139 = vmatprep.subr.bf16.mxu0 %v5818_v30  ;;  %v5835_v29 = vld [vmem:[#allocation9 + $0x180] ss:$16 sps:$4 sm:$0xff]   ;;  %v5836_v30 = vld [vmem:[#allocation9 + $0x188] ss:$16 sps:$4 sm:$0xff]  }
 0xfc7   :  { %v2874_v2 = vpop.f32.mrb[60].mxu1  ;;  %v2915_v32 = vpop.f32.mrb[72].mxu0 }
 0xfc8   :  { %v2926_v33 = vrot.slane %v2874_v2, 6  ;;  %v2876_v34 = vpop.f32.mrb[61].mxu1  ;;  %v2917_v61 = vpop.f32.mrb[73].mxu0  ;;  %v2928_v45 = vrot.slane %v2915_v32, 6  ;;  %v5837_v2 = vld [vmem:[#allocation9 + $0x1a4] ss:$16 sps:$4 sm:$0xff]  }
 0xfc9   :  { %v2927_v15 = vrot.slane %v2876_v34, 6  ;;  %v2878_v35 = vpop.f32.mrb[62].mxu1  ;;  %v2919_v36 = vpop.f32.mrb[74].mxu0  ;;  %v2929_v43 = vrot.slane %v2917_v61, 6  ;;  %v5838_v32 = vld [vmem:[#allocation9 + $0x1ac] ss:$16 sps:$4 sm:$0xff]  }
 0xfca   :  { %v2934_v37 = vadd.f32 %v2926_v33, %v6695_v19  ;;  %v2879_v38 = vpop.f32.mrb[63].mxu1  ;;  %v2920_v39 = vpop.f32.mrb[75].mxu0  ;;  %v2936_v47 = vadd.f32 %v2928_v45, %v6697_v6  ;;  %v5839_v33 = vld [vmem:[#allocation9 + $0x1a0] ss:$16 sps:$4 sm:$0xff]   ;;  %v5840_v34 = vld [vmem:[#allocation9 + $0x1a8] ss:$16 sps:$4 sm:$0xff]  }
 0xfcb   :  { %v2935_v40 = vadd.f32 %v2927_v15, %v6699_v22  ;;  %v2937_v44 = vadd.f32 %v2929_v43, %v6701_v21  ;;  %v5841_v61 = vld [vmem:[#allocation9 + $0x1c4] ss:$16 sps:$4 sm:$0xff]   ;;  %v5842_v15 = vld [vmem:[#allocation9 + $0x1cc] ss:$16 sps:$4 sm:$0xff]   ;;  %v5843_v35 = vld [vmem:[#allocation9 + $0x1c0] ss:$16 sps:$4 sm:$0xff]  }
 0xfcc   :  { %v4946_v41 = vmul.f32 -1.442695, %v2934_v37  ;;  %v5844_v36 = vld [vmem:[#allocation9 + $0x1c8] ss:$16 sps:$4 sm:$0xff]   ;;  %v5845_v37 = vld [vmem:[#allocation9 + $0x1e4] ss:$16 sps:$4 sm:$0xff]  }
 0xfcd   :  { %v4947_v42 = vmul.f32 -1.442695, %v2935_v40  ;;  %v4948_v46 = vmul.f32 -1.442695, %v2937_v44  ;;  %v5846_v38 = vld [vmem:[#allocation9 + $0x1ec] ss:$16 sps:$4 sm:$0xff]  }
 0xfce   :  { %5605 = vpow2.f32 %v4946_v41  ;;  %v5847_v39 = vld [vmem:[#allocation9 + $0x1e0] ss:$16 sps:$4 sm:$0xff]   ;;  %v5848_v40 = vld [vmem:[#allocation9 + $0x1e8] ss:$16 sps:$4 sm:$0xff]  }
 0xfcf   :  { %5607 = vpow2.f32 %v4947_v42 }
 0xfd0   :  { %5609 = vpow2.f32 %v4948_v46 }
 0xfd1   :  { %5611 = vtanh.f32 %v2936_v47 }
 0xfd8   :  { %v5606_v48 = vpop.eup %5605 }
 0xfd9   :  { %v5608_v1 = vpop.eup %5607  ;;  %v2941_v14 = vadd.f32 1.0, %v5606_v48 }
 0xfda   :  { %v2947_v13 = vadd.f32 1.0, %v5608_v1  ;;  %v5610_v50 = vpop.eup %5609 }
 0xfdb   :  { %5613 = vrcp.f32 %v2941_v14  ;;  %v5612_v17 = vpop.eup %5611  ;;  %v2954_v28 = vadd.f32 1.0, %v5610_v50 }
 0xfdc   :  { %5615 = vrcp.f32 %v2947_v13 }
 0xfdd   :  { %5617 = vrcp.f32 %v2954_v28 }
 0xfe5   :  { %v5614_v52 = vpop.eup %5613 }
 0xfe6   :  { %v5616_v3 = vpop.eup %5615  ;;  %v2961_v18 = vmul.f32 %v5614_v52, %v5612_v17 }
 0xfe7   :  { %v2960_v53 = vmul.f32 %v5616_v3, %v2958_v16  ;;  %v5618_v23 = vpop.eup %5617 }
 0xfe9   :  { %v6945_v51 = vadd.f32 %v2961_v18, %v2960_v53 }
 0xfeb   :  { %5619 = vtanh.f32 %v6945_v51 }
 0xff5   :  { %v5620_v27 = vpop.eup %5619 }
 0xff6   :  { %v6948_v49 = vmul.f32 %v5620_v27, %v5618_v23 }
 0xff8   :  { %v2965_v11 = vpack.c.bf16 %v6948_v49, %v6948_v49 }
 0xffa   :  { %v2967_v54 = vrot.slane %v2965_v11, 1 }
 0xffc   :  { %3002 = vmatmul.mubr.bf16.vlgmr.msra.gmra.mrb[64].mxu1 %v2967_v54  ;;  %3043 = vmatmul.mubr.bf16.vlgmr.msra.gmra.mrb[76].mxu0 %v2967_v54 }
 0xffd   :  { %3099 = vmatpush1.bf16.msra.mxu1 %v5819_v7  ;;  %3140 = vmatpush1.bf16.msra.mxu0 %v5820_v58 }
 0xffe   :  { %3100 = vmatprep.subr.bf16.mxu1 %v5821_v9  ;;  %3141 = vmatprep.subr.bf16.mxu0 %v5822_v20  ;;  %v3087_v20 = vrot.slane %v6945_v51, 6 }
 0xfff   :  { %3130 = vmatprep.mubr.bf16.mxu1 %v7395_v5  ;;  %3171 = vmatprep.mubr.bf16.mxu0 %v7395_v5 }
0x1001   :  { %3101 = vmatpush1.bf16.msra.mxu1 %v5823_v24  ;;  %3142 = vmatpush1.bf16.msra.mxu0 %v5824_v62 }
0x1002   :  { %3102 = vmatprep.subr.bf16.mxu1 %v5825_v31  ;;  %3143 = vmatprep.subr.bf16.mxu0 %v5826_v10 }
0x1005   :  { %3103 = vmatpush1.bf16.msra.mxu1 %v5827_v60  ;;  %3144 = vmatpush1.bf16.msra.mxu0 %v5828_v8 }
0x1006   :  { %3104 = vmatprep.subr.bf16.mxu1 %v5829_v26  ;;  %3145 = vmatprep.subr.bf16.mxu0 %v5830_v63 }
0x1009   :  { %3105 = vmatpush1.bf16.msra.mxu1 %v5831_v4  ;;  %3146 = vmatpush1.bf16.msra.mxu0 %v5832_v25  ;;  %v3226_v4 = vsel %vm1723_vm1, %v6904_v0, %v6948_v49  ;;  %v5309_v0 = vld [vmem:[#allocation8 + $0x224] ss:$16 sps:$4 sm:$0xff]   ;;  %v5312_v49 = vld [vmem:[#allocation8 + $0x22c] ss:$16 sps:$4 sm:$0xff]  }
0x100a   :  { %3106 = vmatprep.subr.bf16.mxu1 %v5833_v59  ;;  %3147 = vmatprep.subr.bf16.mxu0 %v5834_v12  ;;  %v5303_v12 = vld [vmem:[#allocation8 + $0x204] ss:$16 sps:$4 sm:$0xff]  }
0x100d   :  { %3107 = vmatpush1.bf16.msra.mxu1 %v5835_v29  ;;  %3148 = vmatpush1.bf16.msra.mxu0 %v5836_v30  ;;  %v5306_v29 = vld [vmem:[#allocation8 + $0x20c] ss:$16 sps:$4 sm:$0xff]   ;;  %v5301_v30 = vld [vmem:[#allocation8 + $0x200] ss:$16 sps:$4 sm:$0xff]  }
0x100e   :  { %3108 = vmatprep.subr.bf16.mxu1 %v5837_v2  ;;  %3149 = vmatprep.subr.bf16.mxu0 %v5838_v32  ;;  %v5304_v2 = vld [vmem:[#allocation8 + $0x208] ss:$16 sps:$4 sm:$0xff]   ;;  %v5307_v32 = vld [vmem:[#allocation8 + $0x220] ss:$16 sps:$4 sm:$0xff]  }
0x1011   :  { %3109 = vmatpush1.bf16.msra.mxu1 %v5839_v33  ;;  %3150 = vmatpush1.bf16.msra.mxu0 %v5840_v34  ;;  %v5310_v33 = vld [vmem:[#allocation8 + $0x228] ss:$16 sps:$4 sm:$0xff]   ;;  %v5315_v34 = vld [vmem:[#allocation8 + $0x244] ss:$16 sps:$4 sm:$0xff]  }
0x1012   :  { %3110 = vmatprep.subr.bf16.mxu1 %v5841_v61  ;;  %3151 = vmatprep.subr.bf16.mxu0 %v5842_v15  ;;  %v5318_v61 = vld [vmem:[#allocation8 + $0x24c] ss:$16 sps:$4 sm:$0xff]   ;;  %v5313_v15 = vld [vmem:[#allocation8 + $0x240] ss:$16 sps:$4 sm:$0xff]  }
0x1015   :  { %3111 = vmatpush1.bf16.msra.mxu1 %v5843_v35  ;;  %3152 = vmatpush1.bf16.msra.mxu0 %v5844_v36  ;;  %v5316_v35 = vld [vmem:[#allocation8 + $0x248] ss:$16 sps:$4 sm:$0xff]   ;;  %v5321_v36 = vld [vmem:[#allocation8 + $0x264] ss:$16 sps:$4 sm:$0xff]  }
0x1016   :  { %3112 = vmatprep.subr.bf16.mxu1 %v5845_v37  ;;  %3153 = vmatprep.subr.bf16.mxu0 %v5846_v38  ;;  %v5324_v37 = vld [vmem:[#allocation8 + $0x26c] ss:$16 sps:$4 sm:$0xff]   ;;  %v5319_v38 = vld [vmem:[#allocation8 + $0x260] ss:$16 sps:$4 sm:$0xff]  }
0x1019   :  { %3113 = vmatpush1.bf16.msra.mxu1 %v5847_v39  ;;  %3154 = vmatpush1.bf16.msra.mxu0 %v5848_v40  ;;  %v5322_v39 = vld [vmem:[#allocation8 + $0x268] ss:$16 sps:$4 sm:$0xff]   ;;  %v5327_v40 = vld [vmem:[#allocation8 + $0x284] ss:$16 sps:$4 sm:$0xff]  }
0x101a   :  { %3446 = vmatprep.subr.bf16.mxu1 %v5303_v12  ;;  %3489 = vmatprep.subr.bf16.mxu0 %v5306_v29 }
0x10cf   :  { %v3003_v41 = vpop.f32.mrb[64].mxu1  ;;  %v3044_v42 = vpop.f32.mrb[76].mxu0 }
0x10d0   :  { %v3055_v43 = vrot.slane %v3003_v41, 4  ;;  %v3005_v44 = vpop.f32.mrb[65].mxu1  ;;  %v3046_v45 = vpop.f32.mrb[77].mxu0  ;;  %v3057_v18 = vrot.slane %v3044_v42, 4  ;;  %v5330_v41 = vld [vmem:[#allocation8 + $0x28c] ss:$16 sps:$4 sm:$0xff]  }
0x10d1   :  { %v3056_v46 = vrot.slane %v3005_v44, 4  ;;  %v3007_v47 = vpop.f32.mrb[66].mxu1  ;;  %v3048_v48 = vpop.f32.mrb[78].mxu0  ;;  %v3058_v16 = vrot.slane %v3046_v45, 4  ;;  %v5325_v42 = vld [vmem:[#allocation8 + $0x280] ss:$16 sps:$4 sm:$0xff]  }
0x10d2   :  { %v3063_v1 = vadd.f32 %v3055_v43, %v6695_v19  ;;  %v3008_v14 = vpop.f32.mrb[67].mxu1  ;;  %v3049_v13 = vpop.f32.mrb[79].mxu0  ;;  %v3065_v53 = vadd.f32 %v3057_v18, %v6697_v6  ;;  %v5328_v43 = vld [vmem:[#allocation8 + $0x288] ss:$16 sps:$4 sm:$0xff]   ;;  %v5333_v44 = vld [vmem:[#allocation8 + $0x2a4] ss:$16 sps:$4 sm:$0xff]  }
0x10d3   :  { %v3064_v50 = vadd.f32 %v3056_v46, %v6699_v22  ;;  %v3066_v3 = vadd.f32 %v3058_v16, %v6701_v21  ;;  %v5331_v45 = vld [vmem:[#allocation8 + $0x2a0] ss:$16 sps:$4 sm:$0xff]   ;;  %v5334_v46 = vld [vmem:[#allocation8 + $0x2a8] ss:$16 sps:$4 sm:$0xff]   ;;  %v5336_v47 = vld [vmem:[#allocation8 + $0x2ac] ss:$16 sps:$4 sm:$0xff]  }
0x10d4   :  { %v4949_v17 = vmul.f32 -1.442695, %v3063_v1  ;;  %v5339_v48 = vld [vmem:[#allocation8 + $0x2c4] ss:$16 sps:$4 sm:$0xff]   ;;  %v5342_v1 = vld [vmem:[#allocation8 + $0x2cc] ss:$16 sps:$4 sm:$0xff]  }
0x10d5   :  { %v4950_v52 = vmul.f32 -1.442695, %v3064_v50  ;;  %v4951_v28 = vmul.f32 -1.442695, %v3066_v3  ;;  %v5337_v14 = vld [vmem:[#allocation8 + $0x2c0] ss:$16 sps:$4 sm:$0xff]  }
0x10d6   :  { %5621 = vpow2.f32 %v4949_v17  ;;  %v5340_v13 = vld [vmem:[#allocation8 + $0x2c8] ss:$16 sps:$4 sm:$0xff]   ;;  %v5345_v50 = vld [vmem:[#allocation8 + $0x2e4] ss:$16 sps:$4 sm:$0xff]   ;;  %v5348_v17 = vld [vmem:[#allocation8 + $0x2ec] ss:$16 sps:$4 sm:$0xff]  }
0x10d7   :  { %5623 = vpow2.f32 %v4950_v52  ;;  %v5343_v52 = vld [vmem:[#allocation8 + $0x2e0] ss:$16 sps:$4 sm:$0xff]   ;;  %v5346_v16 = vld [vmem:[#allocation8 + $0x2e8] ss:$16 sps:$4 sm:$0xff]   ;;  %v6970_v3 = vld [vmem:[#allocation9 + $0x204] ss:$16 sps:$4 sm:$0xff]  }
0x10d8   :  { %5625 = vpow2.f32 %v4951_v28  ;;  %v6972_v18 = vld [vmem:[#allocation9 + $0x20c] ss:$16 sps:$4 sm:$0xff]  }
0x10d9   :  { %5627 = vtanh.f32 %v3065_v53 }
0x10e0   :  { %v5622_v23 = vpop.eup %5621 }
0x10e1   :  { %v5624_v27 = vpop.eup %5623  ;;  %v3070_v11 = vadd.f32 1.0, %v5622_v23 }
0x10e2   :  { %v3076_v54 = vadd.f32 1.0, %v5624_v27  ;;  %v5626_v7 = vpop.eup %5625 }
0x10e3   :  { %5629 = vrcp.f32 %v3070_v11  ;;  %v5628_v58 = vpop.eup %5627  ;;  %v3083_v31 = vadd.f32 1.0, %v5626_v7 }
0x10e4   :  { %5631 = vrcp.f32 %v3076_v54 }
0x10e5   :  { %5633 = vrcp.f32 %v3083_v31 }
0x10ed   :  { %v5630_v9 = vpop.eup %5629 }
0x10ee   :  { %v5632_v24 = vpop.eup %5631  ;;  %v3090_v62 = vmul.f32 %v5630_v9, %v5628_v58 }
0x10ef   :  { %v3089_v10 = vmul.f32 %v5632_v24, %v3087_v20  ;;  %v5634_v8 = vpop.eup %5633 }
0x10f1   :  { %v6959_v60 = vadd.f32 %v3090_v62, %v3089_v10 }
0x10f3   :  { %5635 = vtanh.f32 %v6959_v60 }
0x10fd   :  { %v5636_v26 = vpop.eup %5635 }
0x10fe   :  { %v3093_v63 = vmul.f32 %v5636_v26, %v5634_v8 }
0x1100   :  { %v3094_v25 = vpack.c.bf16 %v3093_v63, %v3093_v63  ;;  %v6966_v59 = vsel %vm1725_vm2, %v3226_v4, %v3093_v63 }
0x1102   :  { %v3096_v51 = vrot.slane %v3094_v25, 2 }
0x1104   :  { %3131 = vmatmul.mubr.bf16.vlgmr.msra.gmra.mrb[68].mxu1 %v3096_v51  ;;  %3172 = vmatmul.mubr.bf16.vlgmr.msra.gmra.mrb[80].mxu0 %v3096_v51 }
0x1105   :  { %3478 = vmatprep.mubr.bf16.mxu1 %v7395_v5  ;;  %3521 = vmatprep.mubr.bf16.mxu0 %v7395_v5 }
0x1106   :  { %3447 = vmatpush1.bf16.msra.mxu1 %v5301_v30  ;;  %3490 = vmatpush1.bf16.msra.mxu0 %v5304_v2 }
0x1107   :  { %3448 = vmatprep.subr.bf16.mxu1 %v5309_v0  ;;  %3491 = vmatprep.subr.bf16.mxu0 %v5312_v49  ;;  %v3216_v0 = vrot.slane %v6959_v60, 6  ;;  %v6988_v60 = vld [vmem:[#allocation9 + $0x224] ss:$16 sps:$4 sm:$0xff]  }
0x110a   :  { %3449 = vmatpush1.bf16.msra.mxu1 %v5307_v32  ;;  %3492 = vmatpush1.bf16.msra.mxu0 %v5310_v33 }
0x110b   :  { %3450 = vmatprep.subr.bf16.mxu1 %v5315_v34  ;;  %3493 = vmatprep.subr.bf16.mxu0 %v5318_v61 }
0x110e   :  { %3451 = vmatpush1.bf16.msra.mxu1 %v5313_v15  ;;  %3494 = vmatpush1.bf16.msra.mxu0 %v5316_v35 }
0x110f   :  { %3452 = vmatprep.subr.bf16.mxu1 %v5321_v36  ;;  %3495 = vmatprep.subr.bf16.mxu0 %v5324_v37  ;;  %v6983_v36 = vld [vmem:[#allocation9 + $0x200] ss:$16 sps:$4 sm:$0xff]   ;;  %v6985_v37 = vld [vmem:[#allocation9 + $0x208] ss:$16 sps:$4 sm:$0xff]  }
0x1112   :  { %3453 = vmatpush1.bf16.msra.mxu1 %v5319_v38  ;;  %3496 = vmatpush1.bf16.msra.mxu0 %v5322_v39  ;;  %v6990_v39 = vld [vmem:[#allocation9 + $0x22c] ss:$16 sps:$4 sm:$0xff]  }
0x1113   :  { %3454 = vmatprep.subr.bf16.mxu1 %v5327_v40  ;;  %3497 = vmatprep.subr.bf16.mxu0 %v5330_v41  ;;  %v6994_v40 = vld [vmem:[#allocation9 + $0x220] ss:$16 sps:$4 sm:$0xff]   ;;  %v6996_v41 = vld [vmem:[#allocation9 + $0x228] ss:$16 sps:$4 sm:$0xff]  }
0x1116   :  { %3455 = vmatpush1.bf16.msra.mxu1 %v5325_v42  ;;  %3498 = vmatpush1.bf16.msra.mxu0 %v5328_v43  ;;  %v7008_v42 = vld [vmem:[#allocation9 + $0x240] ss:$16 sps:$4 sm:$0xff]   ;;  %v7010_v43 = vld [vmem:[#allocation9 + $0x248] ss:$16 sps:$4 sm:$0xff]  }
0x1117   :  { %3456 = vmatprep.subr.bf16.mxu1 %v5333_v44  ;;  %3499 = vmatprep.subr.bf16.mxu0 %v5336_v47  ;;  %v7014_v44 = vld [vmem:[#allocation9 + $0x264] ss:$16 sps:$4 sm:$0xff]   ;;  %v7022_v47 = vld [vmem:[#allocation9 + $0x268] ss:$16 sps:$4 sm:$0xff]  }
0x111a   :  { %3457 = vmatpush1.bf16.msra.mxu1 %v5331_v45  ;;  %3500 = vmatpush1.bf16.msra.mxu0 %v5334_v46  ;;  %v7016_v45 = vld [vmem:[#allocation9 + $0x26c] ss:$16 sps:$4 sm:$0xff]   ;;  %v7020_v46 = vld [vmem:[#allocation9 + $0x260] ss:$16 sps:$4 sm:$0xff]  }
0x111b   :  { %3458 = vmatprep.subr.bf16.mxu1 %v5339_v48  ;;  %3501 = vmatprep.subr.bf16.mxu0 %v5342_v1  ;;  %v7026_v48 = vld [vmem:[#allocation9 + $0x284] ss:$16 sps:$4 sm:$0xff]   ;;  %v7028_v1 = vld [vmem:[#allocation9 + $0x28c] ss:$16 sps:$4 sm:$0xff]  }
0x111e   :  { %3459 = vmatpush1.bf16.msra.mxu1 %v5337_v14  ;;  %3502 = vmatpush1.bf16.msra.mxu0 %v5340_v13  ;;  %v7032_v14 = vld [vmem:[#allocation9 + $0x280] ss:$16 sps:$4 sm:$0xff]   ;;  %v7034_v13 = vld [vmem:[#allocation9 + $0x288] ss:$16 sps:$4 sm:$0xff]  }
0x111f   :  { %3460 = vmatprep.subr.bf16.mxu1 %v5345_v50  ;;  %3503 = vmatprep.subr.bf16.mxu0 %v5348_v17  ;;  %v7038_v50 = vld [vmem:[#allocation9 + $0x2a4] ss:$16 sps:$4 sm:$0xff]   ;;  %v7040_v17 = vld [vmem:[#allocation9 + $0x2ac] ss:$16 sps:$4 sm:$0xff]  }
0x1122   :  { %3461 = vmatpush1.bf16.msra.mxu1 %v5343_v52  ;;  %3504 = vmatpush1.bf16.msra.mxu0 %v5346_v16  ;;  %v7044_v52 = vld [vmem:[#allocation9 + $0x2a0] ss:$16 sps:$4 sm:$0xff]   ;;  %v7046_v16 = vld [vmem:[#allocation9 + $0x2a8] ss:$16 sps:$4 sm:$0xff]  }
0x1123   :  { %3725 = vmatprep.subr.bf16.mxu1 %v6970_v3  ;;  %3766 = vmatprep.subr.bf16.mxu0 %v6972_v18 }
0x11d7   :  { %v3132_v28 = vpop.f32.mrb[68].mxu1  ;;  %v3173_v53 = vpop.f32.mrb[80].mxu0 }
0x11d8   :  { %v3184_v23 = vrot.slane %v3132_v28, 2  ;;  %v3134_v27 = vpop.f32.mrb[69].mxu1  ;;  %v3175_v11 = vpop.f32.mrb[81].mxu0  ;;  %v3186_v63 = vrot.slane %v3173_v53, 2  ;;  %v7050_v28 = vld [vmem:[#allocation9 + $0x2c4] ss:$16 sps:$4 sm:$0xff]  }
0x11d9   :  { %v3185_v54 = vrot.slane %v3134_v27, 2  ;;  %v3136_v7 = vpop.f32.mrb[70].mxu1  ;;  %v3177_v58 = vpop.f32.mrb[82].mxu0  ;;  %v3187_v8 = vrot.slane %v3175_v11, 2  ;;  %v7052_v53 = vld [vmem:[#allocation9 + $0x2cc] ss:$16 sps:$4 sm:$0xff]  }
0x11da   :  { %v3192_v9 = vadd.f32 %v3184_v23, %v6695_v19  ;;  %v3137_v20 = vpop.f32.mrb[71].mxu1  ;;  %v3178_v24 = vpop.f32.mrb[83].mxu0  ;;  %v3194_v25 = vadd.f32 %v3186_v63, %v6697_v6  ;;  %v7056_v23 = vld [vmem:[#allocation9 + $0x2c0] ss:$16 sps:$4 sm:$0xff]   ;;  %v7058_v27 = vld [vmem:[#allocation9 + $0x2c8] ss:$16 sps:$4 sm:$0xff]  }
0x11db   :  { %v3193_v62 = vadd.f32 %v3185_v54, %v6699_v22  ;;  %v3195_v26 = vadd.f32 %v3187_v8, %v6701_v21  ;;  %v7062_v11 = vld [vmem:[#allocation9 + $0x2e4] ss:$16 sps:$4 sm:$0xff]   ;;  %v7064_v54 = vld [vmem:[#allocation9 + $0x2ec] ss:$16 sps:$4 sm:$0xff]   ;;  %v7068_v7 = vld [vmem:[#allocation9 + $0x2e0] ss:$16 sps:$4 sm:$0xff]  }
0x11dc   :  { %v4952_v31 = vmul.f32 -1.442695, %v3192_v9  ;;  %v7070_v58 = vld [vmem:[#allocation9 + $0x2e8] ss:$16 sps:$4 sm:$0xff]  }
0x11dd   :  { %v4953_v10 = vmul.f32 -1.442695, %v3193_v62  ;;  %v4954_v4 = vmul.f32 -1.442695, %v3195_v26  ;;  %v4955_v9 = vld [vmem:[%s7383_s5 + $0x8] sm:$0xf] }
0x11de   :  { %5637 = vpow2.f32 %v4952_v31  ;;  %v3269_v62 = vrot.slane %v4955_v9, %v6254_v55  ;;  %v3277_v31 = vrot.slane %v4955_v9, %v6256_v56  ;;  %v7398_v26 = vld [vmem:[#allocation16_spill] sm:$0xff] }
0x11df   :  { %5639 = vpow2.f32 %v4953_v10  ;;  %v3273_v63 = vrot.slane %v4955_v9, %v7398_v26 }
0x11e0   :  { %5641 = vpow2.f32 %v4954_v4  ;;  %v7399_v4 = vld [vmem:[#allocation17_spill] sm:$0xff] }
0x11e1   :  { %5643 = vtanh.f32 %v3194_v25  ;;  %v3281_v25 = vrot.slane %v4955_v9, %v7399_v4 }
0x11e8   :  { %v5638_v51 = vpop.eup %5637 }
0x11e9   :  { %v5640_v12 = vpop.eup %5639  ;;  %v3199_v29 = vadd.f32 1.0, %v5638_v51 }
0x11ea   :  { %v3205_v19 = vadd.f32 1.0, %v5640_v12  ;;  %v5642_v22 = vpop.eup %5641 }
0x11eb   :  { %5645 = vrcp.f32 %v3199_v29  ;;  %v5644_v30 = vpop.eup %5643  ;;  %v3212_v21 = vadd.f32 1.0, %v5642_v22 }
0x11ec   :  { %5647 = vrcp.f32 %v3205_v19 }
0x11ed   :  { %5649 = vrcp.f32 %v3212_v21 }
0x11f5   :  { %v5646_v2 = vpop.eup %5645 }
0x11f6   :  { %v5648_v49 = vpop.eup %5647  ;;  %v3219_v32 = vmul.f32 %v5646_v2, %v5644_v30 }
0x11f7   :  { %v3218_v33 = vmul.f32 %v5648_v49, %v3216_v0  ;;  %v5650_v6 = vpop.eup %5649 }
0x11f9   :  { %v3220_v34 = vadd.f32 %v3219_v32, %v3218_v33 }
0x11fb   :  { %5651 = vtanh.f32 %v3220_v34 }
0x1205   :  { %v5652_v61 = vpop.eup %5651 }
0x1206   :  { %v3222_v15 = vmul.f32 %v5652_v61, %v5650_v6 }
0x1208   :  { %v3228_v35 = vsel %vm1727_vm3, %v6966_v59, %v3222_v15  ;;  %v7000_v59 = vld [vmem:[#allocation9 + $0x244] ss:$16 sps:$4 sm:$0xff]  }
0x1209   :  { %v3229_v38 = vpack.c.bf16 %v3228_v35, %v6860_v57  ;;  %v7002_v57 = vld [vmem:[#allocation9 + $0x24c] ss:$16 sps:$4 sm:$0xff]  }
0x120b   :  { %3479 = vmatmul.mubr.bf16.vlgmr.msra.gmra.mrb[72].mxu1 %v3229_v38  ;;  %3522 = vmatmul.mubr.bf16.vlgmr.msra.gmra.mrb[84].mxu0 %v3229_v38 }
0x120c   :  { %3726 = vmatpush1.bf16.msra.mxu1 %v6983_v36  ;;  %3767 = vmatpush1.bf16.msra.mxu0 %v6985_v37 }
0x120d   :  { %3727 = vmatprep.subr.bf16.mxu1 %v6988_v60  ;;  %3768 = vmatprep.subr.bf16.mxu0 %v6990_v39 }
0x120e   :  { %3757 = vmatprep.mubr.bf16.mxu1 %v7395_v5  ;;  %3798 = vmatprep.mubr.bf16.mxu0 %v7395_v5 }
0x1210   :  { %3728 = vmatpush1.bf16.msra.mxu1 %v6994_v40  ;;  %3769 = vmatpush1.bf16.msra.mxu0 %v6996_v41 }
0x1211   :  { %3729 = vmatprep.subr.bf16.mxu1 %v7000_v59  ;;  %3770 = vmatprep.subr.bf16.mxu0 %v7002_v57 }
0x1214   :  { %3730 = vmatpush1.bf16.msra.mxu1 %v7008_v42  ;;  %3771 = vmatpush1.bf16.msra.mxu0 %v7010_v43 }
0x1215   :  { %3731 = vmatprep.subr.bf16.mxu1 %v7014_v44  ;;  %3772 = vmatprep.subr.bf16.mxu0 %v7016_v45 }
0x1218   :  { %3732 = vmatpush1.bf16.msra.mxu1 %v7020_v46  ;;  %3773 = vmatpush1.bf16.msra.mxu0 %v7022_v47 }
0x1219   :  { %3733 = vmatprep.subr.bf16.mxu1 %v7026_v48  ;;  %3774 = vmatprep.subr.bf16.mxu0 %v7028_v1 }
0x121c   :  { %3734 = vmatpush1.bf16.msra.mxu1 %v7032_v14  ;;  %3775 = vmatpush1.bf16.msra.mxu0 %v7034_v13 }
0x121d   :  { %3735 = vmatprep.subr.bf16.mxu1 %v7038_v50  ;;  %3776 = vmatprep.subr.bf16.mxu0 %v7040_v17 }
0x1220   :  { %3736 = vmatpush1.bf16.msra.mxu1 %v7044_v52  ;;  %3777 = vmatpush1.bf16.msra.mxu0 %v7046_v16 }
0x1221   :  { %3737 = vmatprep.subr.bf16.mxu1 %v7050_v28  ;;  %3778 = vmatprep.subr.bf16.mxu0 %v7052_v53 }
0x1224   :  { %3738 = vmatpush1.bf16.msra.mxu1 %v7056_v23  ;;  %3779 = vmatpush1.bf16.msra.mxu0 %v7058_v27 }
0x1225   :  { %3739 = vmatprep.subr.bf16.mxu1 %v7062_v11  ;;  %3780 = vmatprep.subr.bf16.mxu0 %v7064_v54 }
0x1228   :  { %3740 = vmatpush1.bf16.msra.mxu1 %v7068_v7  ;;  %3781 = vmatpush1.bf16.msra.mxu0 %v7070_v58 }
0x1229   :  { %3836 = vmatprep.subr.bf16.mxu1 %v6970_v3  ;;  %3877 = vmatprep.subr.bf16.mxu0 %v6972_v18 }
0x122b   :  { %3758 = vmatmul.mubr.bf16.vlgmr.msra.gmra.mrb[76].mxu1 %v7395_v5  ;;  %3799 = vmatmul.mubr.bf16.vlgmr.msra.gmra.mrb[88].mxu0 %v7395_v5 }
0x122c   :  { %3837 = vmatpush1.bf16.msra.mxu1 %v6983_v36  ;;  %3878 = vmatpush1.bf16.msra.mxu0 %v6985_v37 }
0x122d   :  { %3838 = vmatprep.subr.bf16.mxu1 %v6988_v60  ;;  %3879 = vmatprep.subr.bf16.mxu0 %v6990_v39 }
0x122e   :  { %3868 = vmatprep.mubr.bf16.mxu1 %v7395_v5  ;;  %3909 = vmatprep.mubr.bf16.mxu0 %v7395_v5 }
0x1230   :  { %3839 = vmatpush1.bf16.msra.mxu1 %v6994_v40  ;;  %3880 = vmatpush1.bf16.msra.mxu0 %v6996_v41 }
0x1231   :  { %3840 = vmatprep.subr.bf16.mxu1 %v7000_v59  ;;  %3881 = vmatprep.subr.bf16.mxu0 %v7002_v57 }
0x1234   :  { %3841 = vmatpush1.bf16.msra.mxu1 %v7008_v42  ;;  %3882 = vmatpush1.bf16.msra.mxu0 %v7010_v43 }
0x1235   :  { %3842 = vmatprep.subr.bf16.mxu1 %v7014_v44  ;;  %3883 = vmatprep.subr.bf16.mxu0 %v7016_v45 }
0x1238   :  { %3843 = vmatpush1.bf16.msra.mxu1 %v7020_v46  ;;  %3884 = vmatpush1.bf16.msra.mxu0 %v7022_v47 }
0x1239   :  { %3844 = vmatprep.subr.bf16.mxu1 %v7026_v48  ;;  %3885 = vmatprep.subr.bf16.mxu0 %v7028_v1 }
0x123c   :  { %3845 = vmatpush1.bf16.msra.mxu1 %v7032_v14  ;;  %3886 = vmatpush1.bf16.msra.mxu0 %v7034_v13 }
0x123d   :  { %3846 = vmatprep.subr.bf16.mxu1 %v7038_v50  ;;  %3887 = vmatprep.subr.bf16.mxu0 %v7040_v17 }
0x1240   :  { %3847 = vmatpush1.bf16.msra.mxu1 %v7044_v52  ;;  %3888 = vmatpush1.bf16.msra.mxu0 %v7046_v16 }
0x1241   :  { %3848 = vmatprep.subr.bf16.mxu1 %v7050_v28  ;;  %3889 = vmatprep.subr.bf16.mxu0 %v7052_v53 }
0x1244   :  { %3849 = vmatpush1.bf16.msra.mxu1 %v7056_v23  ;;  %3890 = vmatpush1.bf16.msra.mxu0 %v7058_v27 }
0x1245   :  { %3850 = vmatprep.subr.bf16.mxu1 %v7062_v11  ;;  %3891 = vmatprep.subr.bf16.mxu0 %v7064_v54 }
0x1248   :  { %3851 = vmatpush1.bf16.msra.mxu1 %v7068_v7  ;;  %3892 = vmatpush1.bf16.msra.mxu0 %v7070_v58 }
0x1249   :  { %3965 = vmatprep.subr.bf16.mxu1 %v6970_v3  ;;  %4006 = vmatprep.subr.bf16.mxu0 %v6972_v18 }
0x12de   :  { %v3480_v20 = vpop.f32.mrb[72].mxu1  ;;  %v3523_v24 = vpop.f32.mrb[84].mxu0 }
0x12df   :  { %v3482_v10 = vpop.f32.mrb[73].mxu1  ;;  %v3525_v8 = vpop.f32.mrb[85].mxu0  ;;  %v7129_v55 = vadd.f32 %v3480_v20, %v3269_v62 }
0x12e0   :  { %v3484_v51 = vpop.f32.mrb[74].mxu1  ;;  %v3527_v12 = vpop.f32.mrb[86].mxu0  ;;  %v7131_v56 = vadd.f32 %v3482_v10, %v3273_v63  ;;  %v7135_v4 = vadd.f32 %v3525_v8, %v3281_v25 }
0x12e1   :  { %v7121_v29 = vadd.f32 %v3484_v51, %v3269_v62  ;;  %v7123_v19 = vadd.f32 %v3527_v12, %v3277_v31  ;;  %v3486_v22 = vpop.f32.mrb[75].mxu1  ;;  %v3529_v30 = vpop.f32.mrb[87].mxu0  ;;  %v7138_v62 = vadd.f32 %v3523_v24, %v3277_v31 }
0x12e2   :  { %v7125_v2 = vadd.f32 %v3486_v22, %v3273_v63  ;;  %v7127_v0 = vadd.f32 %v3529_v30, %v3281_v25 }
0x12fe   :  { %v3759_v49 = vpop.f32.mrb[76].mxu1  ;;  %v3800_v32 = vpop.f32.mrb[88].mxu0 }
0x12ff   :  { %v3807_v21 = vadd.f32 %v3759_v49, %v7129_v55  ;;  %v3761_v33 = vpop.f32.mrb[77].mxu1  ;;  %v3802_v34 = vpop.f32.mrb[89].mxu0  ;;  %v3809_v63 = vadd.f32 %v3800_v32, %v7138_v62 }
0x1300   :  { %v3808_v6 = vadd.f32 %v3761_v33, %v7131_v56  ;;  %v3763_v61 = vpop.f32.mrb[78].mxu1  ;;  %v3804_v15 = vpop.f32.mrb[90].mxu0  ;;  %v3810_v20 = vadd.f32 %v3802_v34, %v7135_v4 }
0x1301   :  { %v5020_v35 = vmul.f32 -1.442695, %v3807_v21  ;;  %v3764_v38 = vpop.f32.mrb[79].mxu1  ;;  %v3805_v9 = vpop.f32.mrb[91].mxu0 }
0x1302   :  { %v5021_v26 = vmul.f32 -1.442695, %v3808_v6  ;;  %v5022_v10 = vmul.f32 -1.442695, %v3810_v20 }
0x1303   :  { %5653 = vpow2.f32 %v5020_v35 }
0x1304   :  { %5655 = vpow2.f32 %v5021_v26 }
0x1305   :  { %5657 = vpow2.f32 %v5022_v10 }
0x1306   :  { %5659 = vtanh.f32 %v3809_v63 }
0x130d   :  { %v5654_v51 = vpop.eup %5653 }
0x130e   :  { %v5656_v12 = vpop.eup %5655  ;;  %v3814_v22 = vadd.f32 1.0, %v5654_v51 }
0x130f   :  { %v3820_v30 = vadd.f32 1.0, %v5656_v12  ;;  %v5658_v49 = vpop.eup %5657 }
0x1310   :  { %5661 = vrcp.f32 %v3814_v22  ;;  %v5660_v21 = vpop.eup %5659  ;;  %v3827_v6 = vadd.f32 1.0, %v5658_v49 }
0x1311   :  { %5663 = vrcp.f32 %v3820_v30 }
0x1312   :  { %5665 = vrcp.f32 %v3827_v6 }
0x131a   :  { %v5662_v8 = vpop.eup %5661 }
0x131b   :  { %v5664_v25 = vpop.eup %5663  ;;  %v3831_v33 = vmul.f32 %v5662_v8, %v5660_v21 }
0x131c   :  { %v3830_v34 = vmul.f32 0.0, %v5664_v25  ;;  %v5666_v31 = vpop.eup %5665 }
0x131e   :  { %v7141_v24 = vadd.f32 %v3831_v33, %v3830_v34 }
0x1320   :  { %5667 = vtanh.f32 %v7141_v24 }
0x132a   :  { %v5668_v32 = vpop.eup %5667 }
0x132b   :  { %v3834_v61 = vmul.f32 %v5668_v32, %v5666_v31 }
0x132d   :  { %v3835_v15 = vpack.c.bf16 %v3834_v61, %v3834_v61 }
0x132f   :  { %3869 = vmatmul.mubr.bf16.vlgmr.msra.gmra.mrb[80].mxu1 %v3835_v15  ;;  %3910 = vmatmul.mubr.bf16.vlgmr.msra.gmra.mrb[92].mxu0 %v3835_v15 }
0x1330   :  { %3966 = vmatpush1.bf16.msra.mxu1 %v6983_v36  ;;  %4007 = vmatpush1.bf16.msra.mxu0 %v6985_v37 }
0x1331   :  { %3967 = vmatprep.subr.bf16.mxu1 %v6988_v60  ;;  %4008 = vmatprep.subr.bf16.mxu0 %v6990_v39 }
0x1332   :  { %3997 = vmatprep.mubr.bf16.mxu1 %v7395_v5  ;;  %4038 = vmatprep.mubr.bf16.mxu0 %v7395_v5 }
0x1334   :  { %3968 = vmatpush1.bf16.msra.mxu1 %v6994_v40  ;;  %4009 = vmatpush1.bf16.msra.mxu0 %v6996_v41 }
0x1335   :  { %3969 = vmatprep.subr.bf16.mxu1 %v7000_v59  ;;  %4010 = vmatprep.subr.bf16.mxu0 %v7002_v57 }
0x1338   :  { %3970 = vmatpush1.bf16.msra.mxu1 %v7008_v42  ;;  %4011 = vmatpush1.bf16.msra.mxu0 %v7010_v43 }
0x1339   :  { %3971 = vmatprep.subr.bf16.mxu1 %v7014_v44  ;;  %4012 = vmatprep.subr.bf16.mxu0 %v7016_v45 }
0x133c   :  { %3972 = vmatpush1.bf16.msra.mxu1 %v7020_v46  ;;  %4013 = vmatpush1.bf16.msra.mxu0 %v7022_v47 }
0x133d   :  { %3973 = vmatprep.subr.bf16.mxu1 %v7026_v48  ;;  %4014 = vmatprep.subr.bf16.mxu0 %v7028_v1 }
0x1340   :  { %3974 = vmatpush1.bf16.msra.mxu1 %v7032_v14  ;;  %4015 = vmatpush1.bf16.msra.mxu0 %v7034_v13 }
0x1341   :  { %3975 = vmatprep.subr.bf16.mxu1 %v7038_v50  ;;  %4016 = vmatprep.subr.bf16.mxu0 %v7040_v17 }
0x1344   :  { %3976 = vmatpush1.bf16.msra.mxu1 %v7044_v52  ;;  %4017 = vmatpush1.bf16.msra.mxu0 %v7046_v16 }
0x1345   :  { %3977 = vmatprep.subr.bf16.mxu1 %v7050_v28  ;;  %4018 = vmatprep.subr.bf16.mxu0 %v7052_v53 }
0x1348   :  { %3978 = vmatpush1.bf16.msra.mxu1 %v7056_v23  ;;  %4019 = vmatpush1.bf16.msra.mxu0 %v7058_v27 }
0x1349   :  { %3979 = vmatprep.subr.bf16.mxu1 %v7062_v11  ;;  %4020 = vmatprep.subr.bf16.mxu0 %v7064_v54 }
0x134c   :  { %3980 = vmatpush1.bf16.msra.mxu1 %v7068_v7  ;;  %4021 = vmatpush1.bf16.msra.mxu0 %v7070_v58 }
0x134d   :  { %4094 = vmatprep.subr.bf16.mxu1 %v6970_v3  ;;  %4135 = vmatprep.subr.bf16.mxu0 %v6972_v18 }
0x1402   :  { %v3870_v35 = vpop.f32.mrb[80].mxu1  ;;  %v3911_v38 = vpop.f32.mrb[92].mxu0 }
0x1403   :  { %v3922_v9 = vrot.slane %v3870_v35, 6  ;;  %v3872_v26 = vpop.f32.mrb[81].mxu1  ;;  %v3913_v20 = vpop.f32.mrb[93].mxu0  ;;  %v3924_v6 = vrot.slane %v3911_v38, 6 }
0x1404   :  { %v3923_v10 = vrot.slane %v3872_v26, 6  ;;  %v3874_v63 = vpop.f32.mrb[82].mxu1  ;;  %v3915_v51 = vpop.f32.mrb[94].mxu0  ;;  %v3925_v25 = vrot.slane %v3913_v20, 6  ;;  %v3954_v20 = vrot.slane %v7141_v24, 6 }
0x1405   :  { %v3930_v12 = vadd.f32 %v3922_v9, %v7129_v55  ;;  %v3875_v22 = vpop.f32.mrb[83].mxu1  ;;  %v3916_v30 = vpop.f32.mrb[95].mxu0  ;;  %v3932_v31 = vadd.f32 %v3924_v6, %v7138_v62 }
0x1406   :  { %v3931_v49 = vadd.f32 %v3923_v10, %v7131_v56  ;;  %v3933_v33 = vadd.f32 %v3925_v25, %v7135_v4 }
0x1407   :  { %v5023_v21 = vmul.f32 -1.442695, %v3930_v12 }
0x1408   :  { %v5024_v8 = vmul.f32 -1.442695, %v3931_v49  ;;  %v5025_v34 = vmul.f32 -1.442695, %v3933_v33 }
0x1409   :  { %5669 = vpow2.f32 %v5023_v21 }
0x140a   :  { %5671 = vpow2.f32 %v5024_v8 }
0x140b   :  { %5673 = vpow2.f32 %v5025_v34 }
0x140c   :  { %5675 = vtanh.f32 %v3932_v31 }
0x1413   :  { %v5670_v32 = vpop.eup %5669 }
0x1414   :  { %v5672_v61 = vpop.eup %5671  ;;  %v3937_v15 = vadd.f32 1.0, %v5670_v32 }
0x1415   :  { %v3943_v35 = vadd.f32 1.0, %v5672_v61  ;;  %v5674_v9 = vpop.eup %5673 }
0x1416   :  { %5677 = vrcp.f32 %v3937_v15  ;;  %v5676_v26 = vpop.eup %5675  ;;  %v3950_v12 = vadd.f32 1.0, %v5674_v9 }
0x1417   :  { %5679 = vrcp.f32 %v3943_v35 }
0x1418   :  { %5681 = vrcp.f32 %v3950_v12 }
0x1420   :  { %v5678_v10 = vpop.eup %5677 }
0x1421   :  { %v5680_v63 = vpop.eup %5679  ;;  %v3957_v51 = vmul.f32 %v5678_v10, %v5676_v26 }
0x1422   :  { %v3956_v38 = vmul.f32 %v5680_v63, %v3954_v20  ;;  %v5682_v30 = vpop.eup %5681 }
0x1424   :  { %v7183_v22 = vadd.f32 %v3957_v51, %v3956_v38 }
0x1426   :  { %5683 = vtanh.f32 %v7183_v22 }
0x1430   :  { %v5684_v49 = vpop.eup %5683 }
0x1431   :  { %v3960_v21 = vmul.f32 %v5684_v49, %v5682_v30 }
0x1433   :  { %v3961_v8 = vpack.c.bf16 %v3960_v21, %v3960_v21 }
0x1435   :  { %v3963_v25 = vrot.slane %v3961_v8, 1 }
0x1437   :  { %3998 = vmatmul.mubr.bf16.vlgmr.msra.gmra.mrb[84].mxu1 %v3963_v25  ;;  %4039 = vmatmul.mubr.bf16.vlgmr.msra.gmra.mrb[96].mxu0 %v3963_v25 }
0x1438   :  { %4095 = vmatpush1.bf16.msra.mxu1 %v6983_v36  ;;  %4136 = vmatpush1.bf16.msra.mxu0 %v6985_v37 }
0x1439   :  { %4096 = vmatprep.subr.bf16.mxu1 %v6988_v60  ;;  %4137 = vmatprep.subr.bf16.mxu0 %v6990_v39 }
0x143a   :  { %4126 = vmatprep.mubr.bf16.mxu1 %v7395_v5  ;;  %4167 = vmatprep.mubr.bf16.mxu0 %v7395_v5 }
0x143c   :  { %4097 = vmatpush1.bf16.msra.mxu1 %v6994_v40  ;;  %4138 = vmatpush1.bf16.msra.mxu0 %v6996_v41 }
0x143d   :  { %4098 = vmatprep.subr.bf16.mxu1 %v7000_v59  ;;  %4139 = vmatprep.subr.bf16.mxu0 %v7002_v57 }
0x1440   :  { %4099 = vmatpush1.bf16.msra.mxu1 %v7008_v42  ;;  %4140 = vmatpush1.bf16.msra.mxu0 %v7010_v43 }
0x1441   :  { %4100 = vmatprep.subr.bf16.mxu1 %v7014_v44  ;;  %4141 = vmatprep.subr.bf16.mxu0 %v7016_v45 }
0x1444   :  { %4101 = vmatpush1.bf16.msra.mxu1 %v7020_v46  ;;  %4142 = vmatpush1.bf16.msra.mxu0 %v7022_v47 }
0x1445   :  { %4102 = vmatprep.subr.bf16.mxu1 %v7026_v48  ;;  %4143 = vmatprep.subr.bf16.mxu0 %v7028_v1 }
0x1448   :  { %4103 = vmatpush1.bf16.msra.mxu1 %v7032_v14  ;;  %4144 = vmatpush1.bf16.msra.mxu0 %v7034_v13 }
0x1449   :  { %4104 = vmatprep.subr.bf16.mxu1 %v7038_v50  ;;  %4145 = vmatprep.subr.bf16.mxu0 %v7040_v17 }
0x144c   :  { %4105 = vmatpush1.bf16.msra.mxu1 %v7044_v52  ;;  %4146 = vmatpush1.bf16.msra.mxu0 %v7046_v16 }
0x144d   :  { %4106 = vmatprep.subr.bf16.mxu1 %v7050_v28  ;;  %4147 = vmatprep.subr.bf16.mxu0 %v7052_v53 }
0x1450   :  { %4107 = vmatpush1.bf16.msra.mxu1 %v7056_v23  ;;  %4148 = vmatpush1.bf16.msra.mxu0 %v7058_v27 }
0x1451   :  { %4108 = vmatprep.subr.bf16.mxu1 %v7062_v11  ;;  %4149 = vmatprep.subr.bf16.mxu0 %v7064_v54 }
0x1454   :  { %4109 = vmatpush1.bf16.msra.mxu1 %v7068_v7  ;;  %4150 = vmatpush1.bf16.msra.mxu0 %v7070_v58 }
0x1455   :  { %4223 = vmatprep.subr.bf16.mxu1 %v6970_v3  ;;  %4264 = vmatprep.subr.bf16.mxu0 %v6972_v18 }
0x150a   :  { %v3999_v24 = vpop.f32.mrb[84].mxu1  ;;  %v4040_v33 = vpop.f32.mrb[96].mxu0 }
0x150b   :  { %v4051_v6 = vrot.slane %v3999_v24, 4  ;;  %v4001_v34 = vpop.f32.mrb[85].mxu1  ;;  %v4042_v31 = vpop.f32.mrb[97].mxu0  ;;  %v4053_v38 = vrot.slane %v4040_v33, 4 }
0x150c   :  { %v4052_v32 = vrot.slane %v4001_v34, 4  ;;  %v4003_v61 = vpop.f32.mrb[86].mxu1  ;;  %v4044_v15 = vpop.f32.mrb[98].mxu0  ;;  %v4054_v51 = vrot.slane %v4042_v31, 4  ;;  %v4083_v31 = vrot.slane %v7183_v22, 6 }
0x150d   :  { %v4059_v35 = vadd.f32 %v4051_v6, %v7129_v55  ;;  %v4004_v9 = vpop.f32.mrb[87].mxu1  ;;  %v4045_v26 = vpop.f32.mrb[99].mxu0  ;;  %v4061_v49 = vadd.f32 %v4053_v38, %v7138_v62 }
0x150e   :  { %v4060_v10 = vadd.f32 %v4052_v32, %v7131_v56  ;;  %v4062_v12 = vadd.f32 %v4054_v51, %v7135_v4 }
0x150f   :  { %v5026_v20 = vmul.f32 -1.442695, %v4059_v35 }
0x1510   :  { %v5027_v63 = vmul.f32 -1.442695, %v4060_v10  ;;  %v5028_v30 = vmul.f32 -1.442695, %v4062_v12 }
0x1511   :  { %5685 = vpow2.f32 %v5026_v20 }
0x1512   :  { %5687 = vpow2.f32 %v5027_v63 }
0x1513   :  { %5689 = vpow2.f32 %v5028_v30 }
0x1514   :  { %5691 = vtanh.f32 %v4061_v49 }
0x151b   :  { %v5686_v21 = vpop.eup %5685 }
0x151c   :  { %v5688_v8 = vpop.eup %5687  ;;  %v4066_v25 = vadd.f32 1.0, %v5686_v21 }
0x151d   :  { %v4072_v24 = vadd.f32 1.0, %v5688_v8  ;;  %v5690_v6 = vpop.eup %5689 }
0x151e   :  { %5693 = vrcp.f32 %v4066_v25  ;;  %v5692_v34 = vpop.eup %5691  ;;  %v4079_v35 = vadd.f32 1.0, %v5690_v6 }
0x151f   :  { %5695 = vrcp.f32 %v4072_v24 }
0x1520   :  { %5697 = vrcp.f32 %v4079_v35 }
0x1528   :  { %v5694_v32 = vpop.eup %5693 }
0x1529   :  { %v5696_v61 = vpop.eup %5695  ;;  %v4086_v15 = vmul.f32 %v5694_v32, %v5692_v34 }
0x152a   :  { %v4085_v33 = vmul.f32 %v5696_v61, %v4083_v31  ;;  %v5698_v26 = vpop.eup %5697 }
0x152c   :  { %v7225_v9 = vadd.f32 %v4086_v15, %v4085_v33 }
0x152e   :  { %5699 = vtanh.f32 %v7225_v9 }
0x1538   :  { %v5700_v10 = vpop.eup %5699 }
0x1539   :  { %v4089_v20 = vmul.f32 %v5700_v10, %v5698_v26 }
0x153b   :  { %v4090_v63 = vpack.c.bf16 %v4089_v20, %v4089_v20 }
0x153d   :  { %v4092_v51 = vrot.slane %v4090_v63, 2 }
0x153f   :  { %4127 = vmatmul.mubr.bf16.vlgmr.msra.gmra.mrb[88].mxu1 %v4092_v51  ;;  %4168 = vmatmul.mubr.bf16.vlgmr.msra.gmra.mrb[100].mxu0 %v4092_v51 }
0x1540   :  { %4224 = vmatpush1.bf16.msra.mxu1 %v6983_v36  ;;  %4265 = vmatpush1.bf16.msra.mxu0 %v6985_v37 }
0x1541   :  { %4225 = vmatprep.subr.bf16.mxu1 %v6988_v60  ;;  %4266 = vmatprep.subr.bf16.mxu0 %v6990_v39 }
0x1542   :  { %4255 = vmatprep.mubr.bf16.mxu1 %v7395_v5  ;;  %4296 = vmatprep.mubr.bf16.mxu0 %v7395_v5 }
0x1544   :  { %4226 = vmatpush1.bf16.msra.mxu1 %v6994_v40  ;;  %4267 = vmatpush1.bf16.msra.mxu0 %v6996_v41 }
0x1545   :  { %4227 = vmatprep.subr.bf16.mxu1 %v7000_v59  ;;  %4268 = vmatprep.subr.bf16.mxu0 %v7002_v57 }
0x1548   :  { %4228 = vmatpush1.bf16.msra.mxu1 %v7008_v42  ;;  %4269 = vmatpush1.bf16.msra.mxu0 %v7010_v43 }
0x1549   :  { %4229 = vmatprep.subr.bf16.mxu1 %v7014_v44  ;;  %4270 = vmatprep.subr.bf16.mxu0 %v7016_v45 }
0x154c   :  { %4230 = vmatpush1.bf16.msra.mxu1 %v7020_v46  ;;  %4271 = vmatpush1.bf16.msra.mxu0 %v7022_v47 }
0x154d   :  { %4231 = vmatprep.subr.bf16.mxu1 %v7026_v48  ;;  %4272 = vmatprep.subr.bf16.mxu0 %v7028_v1 }
0x1550   :  { %4232 = vmatpush1.bf16.msra.mxu1 %v7032_v14  ;;  %4273 = vmatpush1.bf16.msra.mxu0 %v7034_v13 }
0x1551   :  { %4233 = vmatprep.subr.bf16.mxu1 %v7038_v50  ;;  %4274 = vmatprep.subr.bf16.mxu0 %v7040_v17 }
0x1554   :  { %4234 = vmatpush1.bf16.msra.mxu1 %v7044_v52  ;;  %4275 = vmatpush1.bf16.msra.mxu0 %v7046_v16 }
0x1555   :  { %4235 = vmatprep.subr.bf16.mxu1 %v7050_v28  ;;  %4276 = vmatprep.subr.bf16.mxu0 %v7052_v53 }
0x1558   :  { %4236 = vmatpush1.bf16.msra.mxu1 %v7056_v23  ;;  %4277 = vmatpush1.bf16.msra.mxu0 %v7058_v27 }
0x1559   :  { %4237 = vmatprep.subr.bf16.mxu1 %v7062_v11  ;;  %4278 = vmatprep.subr.bf16.mxu0 %v7064_v54 }
0x155c   :  { %4238 = vmatpush1.bf16.msra.mxu1 %v7068_v7  ;;  %4279 = vmatpush1.bf16.msra.mxu0 %v7070_v58 }
0x155d   :  { %4337 = vmatprep.subr.bf16.mxu1 %v6970_v3  ;;  %4378 = vmatprep.subr.bf16.mxu0 %v6972_v18 }
0x1612   :  { %v4128_v22 = vpop.f32.mrb[88].mxu1  ;;  %v4169_v12 = vpop.f32.mrb[100].mxu0 }
0x1613   :  { %v4180_v38 = vrot.slane %v4128_v22, 2  ;;  %v4130_v30 = vpop.f32.mrb[89].mxu1  ;;  %v4171_v49 = vpop.f32.mrb[101].mxu0  ;;  %v4182_v33 = vrot.slane %v4169_v12, 2 }
0x1614   :  { %v4181_v21 = vrot.slane %v4130_v30, 2  ;;  %v4132_v8 = vpop.f32.mrb[90].mxu1  ;;  %v4173_v25 = vpop.f32.mrb[102].mxu0  ;;  %v4183_v15 = vrot.slane %v4171_v49, 2  ;;  %v4212_v30 = vrot.slane %v7225_v9, 6 }
0x1615   :  { %v4188_v24 = vadd.f32 %v4180_v38, %v7129_v55  ;;  %v4133_v6 = vpop.f32.mrb[91].mxu1  ;;  %v4174_v34 = vpop.f32.mrb[103].mxu0  ;;  %v4190_v10 = vadd.f32 %v4182_v33, %v7138_v62 }
0x1616   :  { %v4189_v32 = vadd.f32 %v4181_v21, %v7131_v56  ;;  %v4191_v35 = vadd.f32 %v4183_v15, %v7135_v4 }
0x1617   :  { %v5029_v31 = vmul.f32 -1.442695, %v4188_v24 }
0x1618   :  { %v5030_v61 = vmul.f32 -1.442695, %v4189_v32  ;;  %v5031_v26 = vmul.f32 -1.442695, %v4191_v35 }
0x1619   :  { %5701 = vpow2.f32 %v5029_v31 }
0x161a   :  { %5703 = vpow2.f32 %v5030_v61 }
0x161b   :  { %5705 = vpow2.f32 %v5031_v26 }
0x161c   :  { %5707 = vtanh.f32 %v4190_v10 }
0x1623   :  { %v5702_v20 = vpop.eup %5701 }
0x1624   :  { %v5704_v63 = vpop.eup %5703  ;;  %v4195_v51 = vadd.f32 1.0, %v5702_v20 }
0x1625   :  { %v4201_v55 = vadd.f32 1.0, %v5704_v63  ;;  %v5706_v56 = vpop.eup %5705 }
0x1626   :  { %5709 = vrcp.f32 %v4195_v51  ;;  %v5708_v22 = vpop.eup %5707  ;;  %v4208_v4 = vadd.f32 1.0, %v5706_v56 }
0x1627   :  { %5711 = vrcp.f32 %v4201_v55 }
0x1628   :  { %5713 = vrcp.f32 %v4208_v4 }
0x1630   :  { %v5710_v38 = vpop.eup %5709 }
0x1631   :  { %v5712_v49 = vpop.eup %5711  ;;  %v4215_v21 = vmul.f32 %v5710_v38, %v5708_v22 }
0x1632   :  { %v4214_v12 = vmul.f32 %v5712_v49, %v4212_v30  ;;  %v5714_v62 = vpop.eup %5713 }
0x1634   :  { %v7267_v8 = vadd.f32 %v4215_v21, %v4214_v12 }
0x1636   :  { %5715 = vtanh.f32 %v7267_v8  ;;  %v4329_v12 = vrot.slane %v7267_v8, 6 }
0x1640   :  { %v5716_v25 = vpop.eup %5715 }
0x1641   :  { %v4218_v24 = vmul.f32 %v5716_v25, %v5714_v62 }
0x1643   :  { %v4219_v6 = vpack.c.bf16 %v4218_v24, %v4218_v24 }
0x1645   :  { %v4221_v34 = vrot.slane %v4219_v6, 3 }
0x1647   :  { %4256 = vmatmul.mubr.bf16.vlgmr.msra.gmra.mrb[92].mxu1 %v4221_v34  ;;  %4297 = vmatmul.mubr.bf16.vlgmr.msra.gmra.mrb[104].mxu0 %v4221_v34 }
0x1648   :  { %4338 = vmatpush1.bf16.msra.mxu1 %v6983_v36  ;;  %4379 = vmatpush1.bf16.msra.mxu0 %v6985_v37 }
0x1649   :  { %4339 = vmatprep.subr.bf16.mxu1 %v6988_v60  ;;  %4380 = vmatprep.subr.bf16.mxu0 %v6990_v39 }
0x164a   :  { %4369 = vmatprep.mubr.bf16.mxu1 %v7395_v5  ;;  %4410 = vmatprep.mubr.bf16.mxu0 %v7395_v5 }
0x164c   :  { %4340 = vmatpush1.bf16.msra.mxu1 %v6994_v40  ;;  %4381 = vmatpush1.bf16.msra.mxu0 %v6996_v41 }
0x164d   :  { %4341 = vmatprep.subr.bf16.mxu1 %v7000_v59  ;;  %4382 = vmatprep.subr.bf16.mxu0 %v7002_v57 }
0x1650   :  { %4342 = vmatpush1.bf16.msra.mxu1 %v7008_v42  ;;  %4383 = vmatpush1.bf16.msra.mxu0 %v7010_v43 }
0x1651   :  { %4343 = vmatprep.subr.bf16.mxu1 %v7014_v44  ;;  %4384 = vmatprep.subr.bf16.mxu0 %v7016_v45 }
0x1654   :  { %4344 = vmatpush1.bf16.msra.mxu1 %v7020_v46  ;;  %4385 = vmatpush1.bf16.msra.mxu0 %v7022_v47 }
0x1655   :  { %4345 = vmatprep.subr.bf16.mxu1 %v7026_v48  ;;  %4386 = vmatprep.subr.bf16.mxu0 %v7028_v1 }
0x1658   :  { %4346 = vmatpush1.bf16.msra.mxu1 %v7032_v14  ;;  %4387 = vmatpush1.bf16.msra.mxu0 %v7034_v13 }
0x1659   :  { %4347 = vmatprep.subr.bf16.mxu1 %v7038_v50  ;;  %4388 = vmatprep.subr.bf16.mxu0 %v7040_v17 }
0x165c   :  { %4348 = vmatpush1.bf16.msra.mxu1 %v7044_v52  ;;  %4389 = vmatpush1.bf16.msra.mxu0 %v7046_v16 }
0x165d   :  { %4349 = vmatprep.subr.bf16.mxu1 %v7050_v28  ;;  %4390 = vmatprep.subr.bf16.mxu0 %v7052_v53 }
0x1660   :  { %4350 = vmatpush1.bf16.msra.mxu1 %v7056_v23  ;;  %4391 = vmatpush1.bf16.msra.mxu0 %v7058_v27 }
0x1661   :  { %4351 = vmatprep.subr.bf16.mxu1 %v7062_v11  ;;  %4392 = vmatprep.subr.bf16.mxu0 %v7064_v54 }
0x1664   :  { %4352 = vmatpush1.bf16.msra.mxu1 %v7068_v7  ;;  %4393 = vmatpush1.bf16.msra.mxu0 %v7070_v58 }
0x1665   :  { %4466 = vmatprep.subr.bf16.mxu1 %v6970_v3  ;;  %4507 = vmatprep.subr.bf16.mxu0 %v6972_v18 }
0x171a   :  { %v4257_v9 = vpop.f32.mrb[92].mxu1  ;;  %v4298_v32 = vpop.f32.mrb[104].mxu0 }
0x171b   :  { %v4305_v31 = vadd.f32 %v4257_v9, %v7121_v29  ;;  %v4259_v61 = vpop.f32.mrb[93].mxu1  ;;  %v4300_v15 = vpop.f32.mrb[105].mxu0  ;;  %v4307_v18 = vadd.f32 %v4298_v32, %v7123_v19 }
0x171c   :  { %v4306_v35 = vadd.f32 %v4259_v61, %v7125_v2  ;;  %v4261_v33 = vpop.f32.mrb[94].mxu1  ;;  %v4302_v26 = vpop.f32.mrb[106].mxu0  ;;  %v4308_v3 = vadd.f32 %v4300_v15, %v7127_v0 }
0x171d   :  { %v5032_v10 = vmul.f32 -1.442695, %v4305_v31  ;;  %v4262_v20 = vpop.f32.mrb[95].mxu1  ;;  %v4303_v63 = vpop.f32.mrb[107].mxu0 }
0x171e   :  { %v5033_v51 = vmul.f32 -1.442695, %v4306_v35  ;;  %v5034_v55 = vmul.f32 -1.442695, %v4308_v3  ;;  %v5851_v3 = vld [vmem:[#allocation9 + $0x200] ss:$16 sps:$4 sm:$0xff]  }
0x171f   :  { %5717 = vpow2.f32 %v5032_v10 }
0x1720   :  { %5719 = vpow2.f32 %v5033_v51 }
0x1721   :  { %5721 = vpow2.f32 %v5034_v55  ;;  %v5852_v55 = vld [vmem:[#allocation9 + $0x208] ss:$16 sps:$4 sm:$0xff]  }
0x1722   :  { %5723 = vtanh.f32 %v4307_v18  ;;  %v5853_v18 = vld [vmem:[#allocation9 + $0x224] ss:$16 sps:$4 sm:$0xff]  }
0x1729   :  { %v5718_v56 = vpop.eup %5717 }
0x172a   :  { %v5720_v22 = vpop.eup %5719  ;;  %v4312_v38 = vadd.f32 1.0, %v5718_v56  ;;  %v5854_v56 = vld [vmem:[#allocation9 + $0x22c] ss:$16 sps:$4 sm:$0xff]  }
0x172b   :  { %v4318_v30 = vadd.f32 1.0, %v5720_v22  ;;  %v5722_v49 = vpop.eup %5721  ;;  %v5855_v22 = vld [vmem:[#allocation9 + $0x220] ss:$16 sps:$4 sm:$0xff]  }
0x172c   :  { %5725 = vrcp.f32 %v4312_v38  ;;  %v5724_v21 = vpop.eup %5723  ;;  %v4325_v24 = vadd.f32 1.0, %v5722_v49  ;;  %v5856_v38 = vld [vmem:[#allocation9 + $0x228] ss:$16 sps:$4 sm:$0xff]   ;;  %v5858_v49 = vld [vmem:[#allocation9 + $0x24c] ss:$16 sps:$4 sm:$0xff]  }
0x172d   :  { %5727 = vrcp.f32 %v4318_v30  ;;  %v5857_v30 = vld [vmem:[#allocation9 + $0x244] ss:$16 sps:$4 sm:$0xff]  }
0x172e   :  { %5729 = vrcp.f32 %v4325_v24  ;;  %v5864_v24 = vld [vmem:[#allocation9 + $0x268] ss:$16 sps:$4 sm:$0xff]  }
0x1736   :  { %v5726_v4 = vpop.eup %5725 }
0x1737   :  { %v5728_v62 = vpop.eup %5727  ;;  %v4332_v25 = vmul.f32 %v5726_v4, %v5724_v21  ;;  %v5859_v21 = vld [vmem:[#allocation9 + $0x240] ss:$16 sps:$4 sm:$0xff]   ;;  %v5860_v4 = vld [vmem:[#allocation9 + $0x248] ss:$16 sps:$4 sm:$0xff]  }
0x1738   :  { %v4331_v6 = vmul.f32 %v5728_v62, %v4329_v12  ;;  %v5730_v9 = vpop.eup %5729  ;;  %v5861_v12 = vld [vmem:[#allocation9 + $0x264] ss:$16 sps:$4 sm:$0xff]   ;;  %v5862_v62 = vld [vmem:[#allocation9 + $0x26c] ss:$16 sps:$4 sm:$0xff]  }
0x173a   :  { %v7309_v34 = vadd.f32 %v4332_v25, %v4331_v6  ;;  %v5863_v25 = vld [vmem:[#allocation9 + $0x260] ss:$16 sps:$4 sm:$0xff]   ;;  %v5866_v6 = vld [vmem:[#allocation9 + $0x28c] ss:$16 sps:$4 sm:$0xff]  }
0x173c   :  { %5731 = vtanh.f32 %v7309_v34 }
0x1746   :  { %v5732_v32 = vpop.eup %5731 }
0x1747   :  { %v4335_v31 = vmul.f32 %v5732_v32, %v5730_v9  ;;  %v5868_v9 = vld [vmem:[#allocation9 + $0x288] ss:$16 sps:$4 sm:$0xff]   ;;  %v5869_v32 = vld [vmem:[#allocation9 + $0x2a4] ss:$16 sps:$4 sm:$0xff]  }
0x1749   :  { %v4336_v61 = vpack.c.bf16 %v4335_v31, %v4335_v31  ;;  %v5870_v31 = vld [vmem:[#allocation9 + $0x2ac] ss:$16 sps:$4 sm:$0xff]  }
0x174b   :  { %4370 = vmatmul.mubr.bf16.vlgmr.msra.gmra.mrb[96].mxu1 %v4336_v61  ;;  %4411 = vmatmul.mubr.bf16.vlgmr.msra.gmra.mrb[108].mxu0 %v4336_v61  ;;  %v5871_v61 = vld [vmem:[#allocation9 + $0x2a0] ss:$16 sps:$4 sm:$0xff]  }
0x174c   :  { %4467 = vmatpush1.bf16.msra.mxu1 %v6983_v36  ;;  %4508 = vmatpush1.bf16.msra.mxu0 %v6985_v37  ;;  %v5849_v36 = vld [vmem:[#allocation9 + $0x204] ss:$16 sps:$4 sm:$0xff]   ;;  %v5850_v37 = vld [vmem:[#allocation9 + $0x20c] ss:$16 sps:$4 sm:$0xff]  }
0x174d   :  { %4468 = vmatprep.subr.bf16.mxu1 %v6988_v60  ;;  %4509 = vmatprep.subr.bf16.mxu0 %v6990_v39 }
0x174e   :  { %4498 = vmatprep.mubr.bf16.mxu1 %v7395_v5  ;;  %4539 = vmatprep.mubr.bf16.mxu0 %v7395_v5 }
0x1750   :  { %4469 = vmatpush1.bf16.msra.mxu1 %v6994_v40  ;;  %4510 = vmatpush1.bf16.msra.mxu0 %v6996_v41 }
0x1751   :  { %4470 = vmatprep.subr.bf16.mxu1 %v7000_v59  ;;  %4511 = vmatprep.subr.bf16.mxu0 %v7002_v57 }
0x1754   :  { %4471 = vmatpush1.bf16.msra.mxu1 %v7008_v42  ;;  %4512 = vmatpush1.bf16.msra.mxu0 %v7010_v43 }
0x1755   :  { %4472 = vmatprep.subr.bf16.mxu1 %v7014_v44  ;;  %4513 = vmatprep.subr.bf16.mxu0 %v7016_v45 }
0x1758   :  { %4473 = vmatpush1.bf16.msra.mxu1 %v7020_v46  ;;  %4514 = vmatpush1.bf16.msra.mxu0 %v7022_v47 }
0x1759   :  { %4474 = vmatprep.subr.bf16.mxu1 %v7026_v48  ;;  %4515 = vmatprep.subr.bf16.mxu0 %v7028_v1 }
0x175c   :  { %4475 = vmatpush1.bf16.msra.mxu1 %v7032_v14  ;;  %4516 = vmatpush1.bf16.msra.mxu0 %v7034_v13 }
0x175d   :  { %4476 = vmatprep.subr.bf16.mxu1 %v7038_v50  ;;  %4517 = vmatprep.subr.bf16.mxu0 %v7040_v17 }
0x1760   :  { %4477 = vmatpush1.bf16.msra.mxu1 %v7044_v52  ;;  %4518 = vmatpush1.bf16.msra.mxu0 %v7046_v16 }
0x1761   :  { %4478 = vmatprep.subr.bf16.mxu1 %v7050_v28  ;;  %4519 = vmatprep.subr.bf16.mxu0 %v7052_v53 }
0x1764   :  { %4479 = vmatpush1.bf16.msra.mxu1 %v7056_v23  ;;  %4520 = vmatpush1.bf16.msra.mxu0 %v7058_v27 }
0x1765   :  { %4480 = vmatprep.subr.bf16.mxu1 %v7062_v11  ;;  %4521 = vmatprep.subr.bf16.mxu0 %v7064_v54 }
0x1768   :  { %4481 = vmatpush1.bf16.msra.mxu1 %v7068_v7  ;;  %4522 = vmatpush1.bf16.msra.mxu0 %v7070_v58  ;;  %v4455_v7 = vrot.slane %v7309_v34, 6  ;;  %v5867_v34 = vld [vmem:[#allocation9 + $0x280] ss:$16 sps:$4 sm:$0xff]  }
0x1769   :  { %4595 = vmatprep.subr.bf16.mxu1 %v5849_v36  ;;  %4636 = vmatprep.subr.bf16.mxu0 %v5850_v37  ;;  %v5872_v36 = vld [vmem:[#allocation9 + $0x2a8] ss:$16 sps:$4 sm:$0xff]   ;;  %v5873_v37 = vld [vmem:[#allocation9 + $0x2c4] ss:$16 sps:$4 sm:$0xff]  }
0x181e   :  { %v4371_v60 = vpop.f32.mrb[96].mxu1  ;;  %v4412_v39 = vpop.f32.mrb[108].mxu0 }
0x181f   :  { %v4423_v40 = vrot.slane %v4371_v60, 6  ;;  %v4373_v41 = vpop.f32.mrb[97].mxu1  ;;  %v4414_v59 = vpop.f32.mrb[109].mxu0  ;;  %v4425_v50 = vrot.slane %v4412_v39, 6  ;;  %v5874_v60 = vld [vmem:[#allocation9 + $0x2cc] ss:$16 sps:$4 sm:$0xff]  }
0x1820   :  { %v4424_v57 = vrot.slane %v4373_v41, 6  ;;  %v4375_v42 = vpop.f32.mrb[98].mxu1  ;;  %v4416_v43 = vpop.f32.mrb[110].mxu0  ;;  %v4426_v14 = vrot.slane %v4414_v59, 6  ;;  %v5875_v39 = vld [vmem:[#allocation9 + $0x2c0] ss:$16 sps:$4 sm:$0xff]  }
0x1821   :  { %v4431_v44 = vadd.f32 %v4423_v40, %v7121_v29  ;;  %v4376_v45 = vpop.f32.mrb[99].mxu1  ;;  %v4417_v46 = vpop.f32.mrb[111].mxu0  ;;  %v4433_v52 = vadd.f32 %v4425_v50, %v7123_v19  ;;  %v5876_v40 = vld [vmem:[#allocation9 + $0x2c8] ss:$16 sps:$4 sm:$0xff]   ;;  %v5877_v41 = vld [vmem:[#allocation9 + $0x2e4] ss:$16 sps:$4 sm:$0xff]  }
0x1822   :  { %v4432_v47 = vadd.f32 %v4424_v57, %v7125_v2  ;;  %v4434_v13 = vadd.f32 %v4426_v14, %v7127_v0  ;;  %v5878_v59 = vld [vmem:[#allocation9 + $0x2ec] ss:$16 sps:$4 sm:$0xff]   ;;  %v5879_v57 = vld [vmem:[#allocation9 + $0x2e0] ss:$16 sps:$4 sm:$0xff]   ;;  %v5880_v42 = vld [vmem:[#allocation9 + $0x2e8] ss:$16 sps:$4 sm:$0xff]  }
0x1823   :  { %v5035_v48 = vmul.f32 -1.442695, %v4431_v44 }
0x1824   :  { %v5036_v1 = vmul.f32 -1.442695, %v4432_v47  ;;  %v5037_v17 = vmul.f32 -1.442695, %v4434_v13 }
0x1825   :  { %5733 = vpow2.f32 %v5035_v48 }
0x1826   :  { %5735 = vpow2.f32 %v5036_v1 }
0x1827   :  { %5737 = vpow2.f32 %v5037_v17 }
0x1828   :  { %5739 = vtanh.f32 %v4433_v52 }
0x182f   :  { %v5734_v16 = vpop.eup %5733 }
0x1830   :  { %v5736_v28 = vpop.eup %5735  ;;  %v4438_v53 = vadd.f32 1.0, %v5734_v16 }
0x1831   :  { %v4444_v23 = vadd.f32 1.0, %v5736_v28  ;;  %v5738_v27 = vpop.eup %5737 }
0x1832   :  { %5741 = vrcp.f32 %v4438_v53  ;;  %v5740_v11 = vpop.eup %5739  ;;  %v4451_v15 = vadd.f32 1.0, %v5738_v27 }
0x1833   :  { %5743 = vrcp.f32 %v4444_v23 }
0x1834   :  { %5745 = vrcp.f32 %v4451_v15 }
0x183c   :  { %v5742_v54 = vpop.eup %5741 }
0x183d   :  { %v5744_v58 = vpop.eup %5743  ;;  %v4458_v8 = vmul.f32 %v5742_v54, %v5740_v11 }
0x183e   :  { %v4457_v35 = vmul.f32 %v5744_v58, %v4455_v7  ;;  %v5746_v26 = vpop.eup %5745 }
0x1840   :  { %v7349_v33 = vadd.f32 %v4458_v8, %v4457_v35 }
0x1842   :  { %5747 = vtanh.f32 %v7349_v33 }
0x184c   :  { %v5748_v10 = vpop.eup %5747 }
0x184d   :  { %v4461_v20 = vmul.f32 %v5748_v10, %v5746_v26 }
0x184f   :  { %v4462_v63 = vpack.c.bf16 %v4461_v20, %v4461_v20  ;;  %v4584_v20 = vrot.slane %v7349_v33, 6 }
0x1851   :  { %v4464_v51 = vrot.slane %v4462_v63, 1 }
0x1853   :  { %4499 = vmatmul.mubr.bf16.vlgmr.msra.gmra.mrb[100].mxu1 %v4464_v51  ;;  %4540 = vmatmul.mubr.bf16.vlgmr.msra.gmra.mrb[112].mxu0 %v4464_v51 }
0x1854   :  { %4596 = vmatpush1.bf16.msra.mxu1 %v5851_v3  ;;  %4637 = vmatpush1.bf16.msra.mxu0 %v5852_v55 }
0x1855   :  { %4597 = vmatprep.subr.bf16.mxu1 %v5853_v18  ;;  %4638 = vmatprep.subr.bf16.mxu0 %v5854_v56 }
0x1856   :  { %4627 = vmatprep.mubr.bf16.mxu1 %v7395_v5  ;;  %4668 = vmatprep.mubr.bf16.mxu0 %v7395_v5  ;;  %v5865_v5 = vld [vmem:[#allocation9 + $0x284] ss:$16 sps:$4 sm:$0xff]  }
0x1858   :  { %4598 = vmatpush1.bf16.msra.mxu1 %v5855_v22  ;;  %4639 = vmatpush1.bf16.msra.mxu0 %v5856_v38 }
0x1859   :  { %4599 = vmatprep.subr.bf16.mxu1 %v5857_v30  ;;  %4640 = vmatprep.subr.bf16.mxu0 %v5858_v49 }
0x185c   :  { %4600 = vmatpush1.bf16.msra.mxu1 %v5859_v21  ;;  %4641 = vmatpush1.bf16.msra.mxu0 %v5860_v4 }
0x185d   :  { %4601 = vmatprep.subr.bf16.mxu1 %v5861_v12  ;;  %4642 = vmatprep.subr.bf16.mxu0 %v5862_v62 }
0x1860   :  { %4602 = vmatpush1.bf16.msra.mxu1 %v5863_v25  ;;  %4643 = vmatpush1.bf16.msra.mxu0 %v5864_v24 }
0x1861   :  { %4603 = vmatprep.subr.bf16.mxu1 %v5865_v5  ;;  %4644 = vmatprep.subr.bf16.mxu0 %v5866_v6 }
0x1864   :  { %4604 = vmatpush1.bf16.msra.mxu1 %v5867_v34  ;;  %4645 = vmatpush1.bf16.msra.mxu0 %v5868_v9 }
0x1865   :  { %4605 = vmatprep.subr.bf16.mxu1 %v5869_v32  ;;  %4646 = vmatprep.subr.bf16.mxu0 %v5870_v31 }
0x1868   :  { %4606 = vmatpush1.bf16.msra.mxu1 %v5871_v61  ;;  %4647 = vmatpush1.bf16.msra.mxu0 %v5872_v36 }
0x1869   :  { %4607 = vmatprep.subr.bf16.mxu1 %v5873_v37  ;;  %4648 = vmatprep.subr.bf16.mxu0 %v5874_v60 }
0x186c   :  { %4608 = vmatpush1.bf16.msra.mxu1 %v5875_v39  ;;  %4649 = vmatpush1.bf16.msra.mxu0 %v5876_v40 }
0x186d   :  { %4609 = vmatprep.subr.bf16.mxu1 %v5877_v41  ;;  %4650 = vmatprep.subr.bf16.mxu0 %v5878_v59 }
0x1870   :  { %4610 = vmatpush1.bf16.msra.mxu1 %v5879_v57  ;;  %4651 = vmatpush1.bf16.msra.mxu0 %v5880_v42 }
0x1926   :  { %v4500_v43 = vpop.f32.mrb[100].mxu1  ;;  %v4541_v44 = vpop.f32.mrb[112].mxu0 }
0x1927   :  { %v4552_v45 = vrot.slane %v4500_v43, 4  ;;  %v4502_v46 = vpop.f32.mrb[101].mxu1  ;;  %v4543_v47 = vpop.f32.mrb[113].mxu0  ;;  %v4554_v27 = vrot.slane %v4541_v44, 4 }
0x1928   :  { %v4553_v48 = vrot.slane %v4502_v46, 4  ;;  %v4504_v1 = vpop.f32.mrb[102].mxu1  ;;  %v4545_v14 = vpop.f32.mrb[114].mxu0  ;;  %v4555_v53 = vrot.slane %v4543_v47, 4 }
0x1929   :  { %v4560_v13 = vadd.f32 %v4552_v45, %v7121_v29  ;;  %v4505_v50 = vpop.f32.mrb[103].mxu1  ;;  %v4546_v17 = vpop.f32.mrb[115].mxu0  ;;  %v4562_v54 = vadd.f32 %v4554_v27, %v7123_v19  ;;  %v5044_v14 = vld [vmem:[%s7384_s6] ss:$0 sm:$0xff]  ;;  %s5969_s6 = scalar_lea.vmem %s4759_s18, 32 }
0x192a   :  { %v4561_v52 = vadd.f32 %v4553_v48, %v7125_v2  ;;  %v4563_v23 = vadd.f32 %v4555_v53, %v7127_v0  ;;  %p5970_p4 = scmp.ne.s32.totalorder %s4759_s18, %s5969_s6  ;;  %p5975_p6 = scmp.lt.s32.totalorder %s5969_s6, %s5969_s6 }
0x192b   :  { %v5038_v16 = vmul.f32 -1.442695, %v4560_v13 }
0x192c   :  { %v5039_v28 = vmul.f32 -1.442695, %v4561_v52  ;;  %v5040_v11 = vmul.f32 -1.442695, %v4563_v23  ;;  %v5045_v52 = vld [vmem:[#allocation2] ss:$0 sm:$0xff]  ;;  %p5976_p7 = por %p5975_p6, %p5974_p5 }
0x192d   :  { %5749 = vpow2.f32 %v5038_v16 }
0x192e   :  { %5751 = vpow2.f32 %v5039_v28  ;;  %p5977_p8 = pnand %p5976_p7, %p5970_p4 }
0x192f   :  { %5753 = vpow2.f32 %v5040_v11 }
0x1930   :  { %5755 = vtanh.f32 %v4562_v54 }
0x1937   :  { %v5750_v7 = vpop.eup %5749 }
0x1938   :  { %v5752_v58 = vpop.eup %5751  ;;  %v4567_v8 = vadd.f32 1.0, %v5750_v7 }
0x1939   :  { %v4573_v15 = vadd.f32 1.0, %v5752_v58  ;;  %v5754_v35 = vpop.eup %5753 }
0x193a   :  { %5757 = vrcp.f32 %v4567_v8  ;;  %v5756_v26 = vpop.eup %5755  ;;  %v4580_v3 = vadd.f32 1.0, %v5754_v35 }
0x193b   :  { %5759 = vrcp.f32 %v4573_v15 }
0x193c   :  { %5761 = vrcp.f32 %v4580_v3 }
0x1944   :  { %v5758_v10 = vpop.eup %5757 }
0x1945   :  { %v5760_v63 = vpop.eup %5759  ;;  %v4587_v51 = vmul.f32 %v5758_v10, %v5756_v26 }
0x1946   :  { %v4586_v55 = vmul.f32 %v5760_v63, %v4584_v20  ;;  %v5762_v56 = vpop.eup %5761 }
0x1948   :  { %v4588_v18 = vadd.f32 %v4587_v51, %v4586_v55 }
0x194a   :  { %5763 = vtanh.f32 %v4588_v18  ;;  %v4713_v44 = vrot.slane %v4588_v18, 6 }
0x1954   :  { %v5764_v22 = vpop.eup %5763 }
0x1955   :  { %v4590_v38 = vmul.f32 %v5764_v22, %v5762_v56 }
0x1957   :  { %v4591_v30 = vpack.c.bf16 %v4590_v38, %v4590_v38 }
0x1959   :  { %v4593_v49 = vrot.slane %v4591_v30, 2 }
0x195b   :  { %4628 = vmatmul.mubr.bf16.vlgmr.msra.gmra.mrb[104].mxu1 %v4593_v49  ;;  %4669 = vmatmul.mubr.bf16.vlgmr.msra.gmra.mrb[116].mxu0 %v4593_v49 }
0x1a2e   :  { %v4629_v21 = vpop.f32.mrb[104].mxu1  ;;  %v4670_v4 = vpop.f32.mrb[116].mxu0 }
0x1a2f   :  { %v4681_v12 = vrot.slane %v4629_v21, 2  ;;  %v4631_v62 = vpop.f32.mrb[105].mxu1  ;;  %v4672_v25 = vpop.f32.mrb[117].mxu0  ;;  %v4683_v60 = vrot.slane %v4670_v4, 2 }
0x1a30   :  { %v4682_v33 = vrot.slane %v4631_v62, 2  ;;  %v4633_v24 = vpop.f32.mrb[106].mxu1  ;;  %v4674_v5 = vpop.f32.mrb[118].mxu0  ;;  %v4684_v36 = vrot.slane %v4672_v25, 2 }
0x1a31   :  { %v4689_v6 = vadd.f32 %v4681_v12, %v7121_v29  ;;  %v4634_v34 = vpop.f32.mrb[107].mxu1  ;;  %v4675_v9 = vpop.f32.mrb[119].mxu0  ;;  %v4691_v40 = vadd.f32 %v4683_v60, %v7123_v19 }
0x1a32   :  { %v4690_v32 = vadd.f32 %v4682_v33, %v7125_v2  ;;  %v4692_v37 = vadd.f32 %v4684_v36, %v7127_v0 }
0x1a33   :  { %v5041_v31 = vmul.f32 -1.442695, %v4689_v6 }
0x1a34   :  { %v5042_v61 = vmul.f32 -1.442695, %v4690_v32  ;;  %v5043_v39 = vmul.f32 -1.442695, %v4692_v37 }
0x1a35   :  { %5765 = vpow2.f32 %v5041_v31 }
0x1a36   :  { %5767 = vpow2.f32 %v5042_v61 }
0x1a37   :  { %5769 = vpow2.f32 %v5043_v39 }
0x1a38   :  { %5771 = vtanh.f32 %v4691_v40 }
0x1a3f   :  { %v5766_v41 = vpop.eup %5765 }
0x1a40   :  { %v5768_v59 = vpop.eup %5767  ;;  %v4696_v57 = vadd.f32 1.0, %v5766_v41 }
0x1a41   :  { %v4702_v29 = vadd.f32 1.0, %v5768_v59  ;;  %v5770_v2 = vpop.eup %5769 }
0x1a42   :  { %5773 = vrcp.f32 %v4696_v57  ;;  %v5772_v42 = vpop.eup %5771  ;;  %v4709_v47 = vadd.f32 1.0, %v5770_v2 }
0x1a43   :  { %5775 = vrcp.f32 %v4702_v29 }
0x1a44   :  { %5777 = vrcp.f32 %v4709_v47 }
0x1a4c   :  { %v5774_v43 = vpop.eup %5773 }
0x1a4d   :  { %v5776_v45 = vpop.eup %5775  ;;  %v4716_v46 = vmul.f32 %v5774_v43, %v5772_v42 }
0x1a4e   :  { %v4715_v0 = vmul.f32 %v5776_v45, %v4713_v44  ;;  %v5778_v19 = vpop.eup %5777 }
0x1a50   :  { %v4717_v48 = vadd.f32 %v4716_v46, %v4715_v0 }
0x1a52   :  { %5779 = vtanh.f32 %v4717_v48 }
0x1a5c   :  { %v5780_v1 = vpop.eup %5779 }
0x1a5d   :  { %v4719_v13 = vmul.f32 %v5780_v1, %v5778_v19 }
0x1a5f   :  { %v4727_v50 = vmul.f32 %v5044_v14, %v4719_v13 }
0x1a61   :  { %v4729_v17 = vsel %vm4728_vm4, %v4727_v50, 0.0 }
0x1a62   :  { %4730 = vadd.xlane.f32.xlu0 %v4729_v17 }
0x1aef   :  { %v4731_v16 = vpop.xlane.xlu0 %4730 }
0x1af0   :  { %v4739_v28 = vadd.f32 %v5045_v52, %v4731_v16 }
0x1af2   :  { %v5046_v53 = vmul.f32 -1.442695, %v4739_v28 }
0x1af4   :  { %5781 = vpow2.f32 %v5046_v53 }
0x1afe   :  { %v5782_v23 = vpop.eup %5781 }
0x1aff   :  { %v4743_v27 = vadd.f32 1.0, %v5782_v23 }
0x1b01   :  { %5783 = vrcp.f32 %v4743_v27 }
0x1b0b   :  { %v5784_v11 = vpop.eup %5783 }
0x1b0c   :  { %4748 = vperm.xlu0 %5100, %v5784_v11  }
0x1b8b   :  { %v4749_v54 = vpop.permute.xlu0 %4748 }
0x1b8c   :  { %4751 = vst [vmem:[#allocation11 - $0x6] sm:$0xc0] %v4749_v54 }
0x1b8d   :  { %5980 = shalt.err (!%p5977_p8)
}
0x1b8e   :  { %s5981_s20 = scalar_lea.hbm %s7386_s8, 32 }
0x1b8f   :  { %p5982_p9 = scmp.ne.s32.totalorder %s7386_s8, %s5981_s20  ;;  %p5985_p10 = scmp.lt.u32.totalorder %s5981_s20, %s7386_s8 }
0x1b91   :  { %p5987_p11 = pnand %p5985_p10, %p5982_p9 }
0x1b93   :  { %5990 = shalt.err (!%p5987_p11)
}
0x1b94   :  { %4761 = dma.vmem_to_hbm [thread:$0]  %s4759_s18, 32, %s7386_s8, [#allocation5]  }
0x1b95   :  { %5997 = dma.done.wait [#allocation5], 32  }
0x1b96   :  { %5998 = vsyncadd [#allocation5], 4294967264 }
0x1b97   :  { %4765 = vsyncpa [#allocation4], 1 }
0x1b98   :  { %4766 = vsyncpa [#allocation7], 1 }
0x1b99   :  { %4767 = vsyncpa [#allocation10], 1 }
0x1b9a   :  { %4768 = vsyncpa [#allocation5], 1 }

</bundles_post_ra>
